<compile_context>
chip_gen: v5e
topology: v5e:2x2
jax: 0.10.0
libtpu: 0.0.40
codegen_flags: <defaults>
</compile_context>

<pallas_src>
import functools

import jax
import jax.numpy as jnp
from jax.experimental import pallas as pl
from jax.experimental.pallas import tpu as pltpu


_LANE = 128
_VMEM_LIMIT_BYTES = 32 * 1024 * 1024


def _round_up(n, m=_LANE):
    return ((n + m - 1) // m) * m


# ----------------------------- Pallas kernels -----------------------------

def _conv1x1_bias_kernel(x_ref, w_ref, b_ref, o_ref):
    # x: (TM, Cinp) bf16, w: (Cinp, Coutp) bf16, b: (1, Coutp) f32
    acc = jnp.dot(x_ref[...], w_ref[...], preferred_element_type=jnp.float32)
    o_ref[...] = (acc + b_ref[...]).astype(o_ref.dtype)


def conv1x1(x2d, w, b, *, out_dtype=jnp.bfloat16, block_m=1024):
    """Pointwise (1x1) conv as a row-tiled matmul on flattened pixels."""
    M, Cinp = x2d.shape
    Coutp = w.shape[-1]
    TM = min(block_m, _round_up(M, 8))
    Mp = _round_up(M, TM)
    if Mp != M:
        x2d = jnp.pad(x2d, ((0, Mp - M), (0, 0)))
    out = pl.pallas_call(
        _conv1x1_bias_kernel,
        out_shape=jax.ShapeDtypeStruct((Mp, Coutp), out_dtype),
        grid=(Mp // TM,),
        in_specs=[
            pl.BlockSpec((TM, Cinp), lambda i: (i, 0)),
            pl.BlockSpec((Cinp, Coutp), lambda i: (0, 0)),
            pl.BlockSpec((1, Coutp), lambda i: (0, 0)),
        ],
        out_specs=pl.BlockSpec((TM, Coutp), lambda i: (i, 0)),
        compiler_params=pltpu.CompilerParams(
            dimension_semantics=("parallel",),
            vmem_limit_bytes=_VMEM_LIMIT_BYTES),
    )(x2d, w, b.reshape(1, Coutp).astype(jnp.float32))
    return out[:M]


def _conv3x3_bn_relu_kernel(*refs, n_in, TR, W, Coutp):
    # refs = [x_0 .. x_{n_in-1}, wcat, scale, shift, out]
    x_refs = refs[:n_in]
    w_ref, scale_ref, shift_ref = refs[n_in], refs[n_in + 1], refs[n_in + 2]
    o_ref = refs[n_in + 3]

    Wp = W + 2
    Mfat = TR * Wp  # "fat" rows: every padded column of the TR output rows

    # Build the im2col slab from contiguous row-slab shifts (flat layout), so
    # every tap is a plain sublane-offset slice, then do ONE long-K matmul.
    slabs = []
    for xi in range(n_in):
        x = x_refs[xi][...]                       # (flat_rows, Cp_i) bf16
        for dy in range(3):
            for dx in range(3):
                off = dy * Wp + dx
                slabs.append(x[off:off + Mfat, :])
    imcol = jnp.concatenate(slabs, axis=-1)       # (Mfat, sum_i 9*Cp_i)

    acc = jnp.dot(imcol, w_ref[...], preferred_element_type=jnp.float32)
    acc = acc * scale_ref[...] + shift_ref[...]   # conv bias + BatchNorm (eval), f32
    acc = jnp.maximum(acc, 0.0)                   # ReLU (Dropout2d = identity in eval)

    out = acc.reshape(TR, Wp, Coutp)[:, :W, :]    # drop the 2 fat columns per row
    o_ref[...] = out.astype(o_ref.dtype)


def _pick_block_rows(H, W, cin_total_p, cout_p, budget=6 * 1024 * 1024):
    """Largest divisor of H whose per-block working set fits the VMEM budget."""
    best = 1
    wp = W + 2
    for tr in range(1, H + 1):
        if H % tr:
            continue
        working = ((tr + 2) * wp * cin_total_p * 2 * 2   # double-buffered inputs (bf16)
                   + 9 * tr * wp * cin_total_p * 2       # im2col value (bf16)
                   + tr * wp * cout_p * 4                # f32 accumulator
                   + tr * W * cout_p * 4 * 2)            # double-buffered output
        if working <= budget:
            best = tr
    return best


def conv3x3_bn_relu(inputs, wcat, scale, shift, *, out_dtype, block_rows=None):
    """Fused [concat(inputs, C) -> 3x3 conv (pad=1) -> BN(eval) -> ReLU].

    inputs : list of (N, H, W, Cp_i) channel-padded bf16 arrays.
    wcat   : (sum_i 9*Cp_i, Coutp) bf16 — per-input HWIO weights flattened
             tap-major and stacked along K in the same input order.
    scale, shift : (Coutp,) f32 folded conv-bias + BatchNorm affine.
    """
    N, H, W, _ = inputs[0].shape
    Coutp = wcat.shape[-1]
    cin_total = sum(int(a.shape[-1]) for a in inputs)

    if block_rows is None or H % block_rows != 0:
        block_rows = _pick_block_rows(H, W, cin_total, Coutp)
    TR = block_rows
    R = H // TR
    Wp = W + 2
    # flat rows per block: TR+2 padded rows, +2 spare zeros reachable only by the
    # discarded fat columns of the last row; rounded up to a sublane multiple.
    min_rows = (TR + 2) * Wp
    flat_rows = _round_up(min_rows + 2, 8)

    blocked = []
    for a in inputs:
        ap = jnp.pad(a, ((0, 0), (1, 1), (1, 1), (0, 0)))           # spatial halo
        ab = jnp.stack([ap[:, r * TR: r * TR + TR + 2] for r in range(R)], axis=1)
        ab = ab.reshape(N, R, min_rows, a.shape[-1])
        ab = jnp.pad(ab, ((0, 0), (0, 0), (0, flat_rows - min_rows), (0, 0)))
        blocked.append(ab)                                          # (N,R,flat,Cp)

    kernel = functools.partial(_conv3x3_bn_relu_kernel,
                               n_in=len(inputs), TR=TR, W=W, Coutp=Coutp)
    in_specs = [pl.BlockSpec((None, None, flat_rows, int(a.shape[-1])),
                             lambda n, r: (n, r, 0, 0)) for a in blocked]
    in_specs += [
        pl.BlockSpec(wcat.shape, lambda n, r: (0, 0)),
        pl.BlockSpec((1, Coutp), lambda n, r: (0, 0)),
        pl.BlockSpec((1, Coutp), lambda n, r: (0, 0)),
    ]
    return pl.pallas_call(
        kernel,
        out_shape=jax.ShapeDtypeStruct((N, H, W, Coutp), out_dtype),
        grid=(N, R),
        in_specs=in_specs,
        out_specs=pl.BlockSpec((None, TR, W, Coutp), lambda n, r: (n, r, 0, 0)),
        compiler_params=pltpu.CompilerParams(
            dimension_semantics=("parallel", "parallel"),
            vmem_limit_bytes=_VMEM_LIMIT_BYTES),
    )(*blocked, wcat,
      scale.reshape(1, Coutp).astype(jnp.float32),
      shift.reshape(1, Coutp).astype(jnp.float32))


# --------------------------- parameters & forward ---------------------------

def init_decoder_params(key, inchannels, outchannels):
    ks = jax.random.split(key, 6)
    p = {}
    # expansion ('upsample' mode): Conv2d(in, out, kernel_size=1)
    p["exp_w"] = 0.05 * jax.random.normal(ks[0], (inchannels, outchannels), jnp.float32)
    p["exp_b"] = 0.05 * jax.random.normal(ks[1], (outchannels,), jnp.float32)
    # conv block 1: Conv2d(in, out, 3, padding=1) + BatchNorm2d(out)
    p["w1"] = 0.05 * jax.random.normal(ks[2], (3, 3, inchannels, outchannels), jnp.float32)
    p["b1"] = 0.05 * jax.random.normal(ks[3], (outchannels,), jnp.float32)
    p["bn1_gamma"] = jnp.ones((outchannels,), jnp.float32)
    p["bn1_beta"] = jnp.zeros((outchannels,), jnp.float32)
    p["bn1_mean"] = jnp.zeros((outchannels,), jnp.float32)
    p["bn1_var"] = jnp.ones((outchannels,), jnp.float32)
    # conv block 2: Conv2d(out, out, 3, padding=1) + BatchNorm2d(out)
    p["w2"] = 0.05 * jax.random.normal(ks[4], (3, 3, outchannels, outchannels), jnp.float32)
    p["b2"] = 0.05 * jax.random.normal(ks[5], (outchannels,), jnp.float32)
    p["bn2_gamma"] = jnp.ones((outchannels,), jnp.float32)
    p["bn2_beta"] = jnp.zeros((outchannels,), jnp.float32)
    p["bn2_mean"] = jnp.zeros((outchannels,), jnp.float32)
    p["bn2_var"] = jnp.ones((outchannels,), jnp.float32)
    return p


def _fold_bn(conv_bias, gamma, beta, mean, var, eps=1e-5):
    scale = gamma / jnp.sqrt(var + eps)
    shift = beta + (conv_bias - mean) * scale
    return scale, shift


def decoder_forward(params, x_nchw, skip_nchw, *, block_rows=None):
    """Decoder forward (eval mode). Inputs/outputs are NCHW to match PyTorch."""
    x = jnp.transpose(x_nchw, (0, 2, 3, 1))         # (N, Hl, Wl, Cin)
    skip = jnp.transpose(skip_nchw, (0, 2, 3, 1))   # (N, H,  W,  Cs)
    N, Hl, Wl, Cin = x.shape
    _, H, W, Cs = skip.shape
    Cout = params["exp_w"].shape[1]
    assert (2 * Hl, 2 * Wl) == (H, W), "skip must be at 2x the spatial size of x"

    Cinp, Cep, Csp, Coutp = (_round_up(Cin), _round_up(Cout),
                             _round_up(Cs), _round_up(Cout))

    # ---- expansion: 1x1 conv on the LOW-RES x, then nearest 2x upsample ----
    # (pointwise conv commutes exactly with nearest-neighbour upsampling)
    xp = jnp.pad(x, ((0, 0), (0, 0), (0, 0), (0, Cinp - Cin))).astype(jnp.bfloat16)
    w_exp = jnp.pad(params["exp_w"],
                    ((0, Cinp - Cin), (0, Cep - Cout))).astype(jnp.bfloat16)
    b_exp = jnp.pad(params["exp_b"], (0, Cep - Cout))
    y = conv1x1(xp.reshape(N * Hl * Wl, Cinp), w_exp, b_exp)     # (M, Cep) bf16
    y = y.reshape(N, Hl, Wl, Cep)
    y = jnp.repeat(jnp.repeat(y, 2, axis=1), 2, axis=2)          # (N, H, W, Cep)

    # ---- conv block 1: fused concat([y, skip]) -> 3x3 conv -> BN -> ReLU ----
    skip_p = jnp.pad(skip, ((0, 0), (0, 0), (0, 0), (0, Csp - Cs))).astype(jnp.bfloat16)
    w1 = params["w1"]                                            # (3,3,Cout+Cs,Cout)
    w1x = jnp.pad(w1[:, :, :Cout, :], ((0, 0), (0, 0), (0, Cep - Cout), (0, Coutp - Cout)))
    w1s = jnp.pad(w1[:, :, Cout:, :], ((0, 0), (0, 0), (0, Csp - Cs), (0, Coutp - Cout)))
    wcat1 = jnp.concatenate([w1x.reshape(9 * Cep, Coutp),
                             w1s.reshape(9 * Csp, Coutp)], axis=0).astype(jnp.bfloat16)
    s1, t1 = _fold_bn(params["b1"], params["bn1_gamma"], params["bn1_beta"],
                      params["bn1_mean"], params["bn1_var"])
    s1 = jnp.pad(s1, (0, Coutp - Cout))
    t1 = jnp.pad(t1, (0, Coutp - Cout))
    h = conv3x3_bn_relu([y, skip_p], wcat1, s1, t1,
                        out_dtype=jnp.bfloat16, block_rows=block_rows)

    # ---- conv block 2: 3x3 conv -> BN -> ReLU ----
    w2 = jnp.pad(params["w2"], ((0, 0), (0, 0), (0, Coutp - Cout), (0, Coutp - Cout)))
    wcat2 = w2.reshape(9 * Coutp, Coutp).astype(jnp.bfloat16)
    s2, t2 = _fold_bn(params["b2"], params["bn2_gamma"], params["bn2_beta"],
                      params["bn2_mean"], params["bn2_var"])
    s2 = jnp.pad(s2, (0, Coutp - Cout))
    t2 = jnp.pad(t2, (0, Coutp - Cout))
    h = conv3x3_bn_relu([h], wcat2, s2, t2,
                        out_dtype=jnp.float32, block_rows=block_rows)

    # strip channel padding, back to NCHW (Dropout2d is identity in eval mode)
    return jnp.transpose(h[..., :Cout], (0, 3, 1, 2))


# --------------------------- pure-JAX reference ---------------------------

def _reference_forward(params, x_nchw, skip_nchw):
    x = jnp.transpose(x_nchw, (0, 2, 3, 1))
    skip = jnp.transpose(skip_nchw, (0, 2, 3, 1))
    # expansion: upsample then 1x1 conv (same op order as the PyTorch module)
    x = jnp.repeat(jnp.repeat(x, 2, axis=1), 2, axis=2)
    x = jnp.einsum("nhwc,cd->nhwd", x, params["exp_w"]) + params["exp_b"]
    x = jnp.concatenate([x, skip], axis=-1)

    def block(z, w, b, g, beta, mean, var):
        z = jax.lax.conv_general_dilated(z, w, (1, 1), "SAME",
                                         dimension_numbers=("NHWC", "HWIO", "NHWC"))
        z = z + b
        z = (z - mean) / jnp.sqrt(var + 1e-5) * g + beta
        return jnp.maximum(z, 0.0)

    x = block(x, params["w1"], params["b1"], params["bn1_gamma"], params["bn1_beta"],
              params["bn1_mean"], params["bn1_var"])
    x = block(x, params["w2"], params["b2"], params["bn2_gamma"], params["bn2_beta"],
              params["bn2_mean"], params["bn2_var"])
    return jnp.transpose(x, (0, 3, 1, 2))


# --------------------------------- main ---------------------------------

if __name__ == "__main__":
    key = jax.random.PRNGKey(0)
    kx, ks, kp = jax.random.split(key, 3)

    inchannels, outchannels = 8, 4
    N, Hl, Wl = 2, 8, 8  # x is at half the spatial resolution of skip

    # PyTorch-convention NCHW inputs; skip carries (inchannels - outchannels) ch.
    x = jax.random.normal(kx, (N, inchannels, Hl, Wl), jnp.float32)
    skip = jax.random.normal(ks, (N, inchannels - outchannels, 2 * Hl, 2 * Wl),
                             jnp.float32)

    params = init_decoder_params(kp, inchannels, outchannels)

    fwd = jax.jit(functools.partial(decoder_forward, block_rows=8))
    out = jax.block_until_ready(fwd(params, x, skip))

    assert out.shape == (N, outchannels, 2 * Hl, 2 * Wl), out.shape
    assert bool(jnp.all(jnp.isfinite(out)))

    # correctness check vs a pure-JAX reference (bf16 matmul tolerance)
    ref = _reference_forward(params, x, skip)
    err = float(jnp.max(jnp.abs(out - ref)))
    assert err < 0.15, f"max abs error vs reference: {err}"

    print("KERNEL_OK")
</pallas_src>

<mosaic_0001>
module attributes {stable_mosaic.version = 11 : i64} {
  func.func @_conv1x1_bias_kernel(%arg0: i32, %arg1: memref<128x128xbf16, #tpu.memory_space<vmem>>, %arg2: memref<128x128xbf16, #tpu.memory_space<vmem>>, %arg3: memref<1x128xf32, #tpu.memory_space<vmem>>, %arg4: memref<128x128xbf16, #tpu.memory_space<vmem>>) attributes {dimension_semantics = [#tpu.dimension_semantics<parallel>], iteration_bounds = array<i64: 1>, scalar_prefetch = 0 : i64, scratch_operands = 0 : i64, tpu.core_type = #tpu.core_type<tc>, window_params = [{transform_indices = @transform_0, window_bounds = array<i64: 128, 128>}, {pipeline_mode = #tpu.pipeline_mode<synchronous>, transform_indices = @transform_1, window_bounds = array<i64: 128, 128>}, {pipeline_mode = #tpu.pipeline_mode<synchronous>, transform_indices = @transform_2, window_bounds = array<i64: 1, 128>}, {transform_indices = @transform_3, window_bounds = array<i64: 128, 128>}]} {
    %c0 = arith.constant 0 : index
    %c0_0 = arith.constant 0 : index
    %0 = vector.load %arg1[%c0, %c0_0] : memref<128x128xbf16, #tpu.memory_space<vmem>>, vector<128x128xbf16>
    %c0_1 = arith.constant 0 : index
    %c0_2 = arith.constant 0 : index
    %1 = vector.load %arg2[%c0_1, %c0_2] : memref<128x128xbf16, #tpu.memory_space<vmem>>, vector<128x128xbf16>
    %cst = arith.constant dense<0.000000e+00> : vector<128x128xf32>
    %2 = tpu.matmul %0, %1, %cst {dimension_numbers = #tpu.dot_dimension_numbers<[1], [0], [0], [1], [0, 0, 1, 1], [], []>} : vector<128x128xbf16>, vector<128x128xbf16>, vector<128x128xf32> -> vector<128x128xf32>
    %c0_3 = arith.constant 0 : index
    %c0_4 = arith.constant 0 : index
    %3 = vector.load %arg3[%c0_3, %c0_4] : memref<1x128xf32, #tpu.memory_space<vmem>>, vector<1x128xf32>
    %4 = vector.broadcast %3 : vector<1x128xf32> to vector<128x128xf32>
    %5 = arith.addf %2, %4 : vector<128x128xf32>
    %6 = arith.truncf %5 : vector<128x128xf32> to vector<128x128xbf16>
    %c0_5 = arith.constant 0 : index
    %c0_6 = arith.constant 0 : index
    %7 = vector.load %arg4[%c0_5, %c0_6] : memref<128x128xbf16, #tpu.memory_space<vmem>>, vector<128x128xbf16>
    tpu.vector_store %arg4[%c0_5, %c0_6], %6 {strides = array<i32>} : memref<128x128xbf16, #tpu.memory_space<vmem>>, vector<128x128xbf16>,
    return
  }
  func.func @transform_0(%arg0: i32) -> (i32, i32) {
    %c0_i32 = arith.constant 0 : i32
    %c0_i32_0 = arith.constant 0 : i32
    return %arg0, %c0_i32 : i32, i32
  }
  func.func @transform_1(%arg0: i32) -> (i32, i32) {
    %c0_i32 = arith.constant 0 : i32
    %c0_i32_0 = arith.constant 0 : i32
    %c0_i32_1 = arith.constant 0 : i32
    return %c0_i32, %c0_i32_0 : i32, i32
  }
  func.func @transform_2(%arg0: i32) -> (i32, i32) {
    %c0_i32 = arith.constant 0 : i32
    %c0_i32_0 = arith.constant 0 : i32
    %c0_i32_1 = arith.constant 0 : i32
    return %c0_i32, %c0_i32_0 : i32, i32
  }
  func.func @transform_3(%arg0: i32) -> (i32, i32) {
    %c0_i32 = arith.constant 0 : i32
    %c0_i32_0 = arith.constant 0 : i32
    return %arg0, %c0_i32 : i32, i32
  }
}

module attributes {stable_mosaic.version = 11 : i64} {
  func.func @_conv3x3_bn_relu_kernel(%arg0: i32, %arg1: i32, %arg2: memref<1x1x184x128xbf16, #tpu.memory_space<vmem>>, %arg3: memref<1x1x184x128xbf16, #tpu.memory_space<vmem>>, %arg4: memref<2304x128xbf16, #tpu.memory_space<vmem>>, %arg5: memref<1x128xf32, #tpu.memory_space<vmem>>, %arg6: memref<1x128xf32, #tpu.memory_space<vmem>>, %arg7: memref<1x8x16x128xbf16, #tpu.memory_space<vmem>>) attributes {dimension_semantics = [#tpu.dimension_semantics<parallel>, #tpu.dimension_semantics<parallel>], iteration_bounds = array<i64: 2, 2>, scalar_prefetch = 0 : i64, scratch_operands = 0 : i64, tpu.core_type = #tpu.core_type<tc>, window_params = [{transform_indices = @transform_0, window_bounds = array<i64: 1, 1, 184, 128>}, {transform_indices = @transform_1, window_bounds = array<i64: 1, 1, 184, 128>}, {pipeline_mode = #tpu.pipeline_mode<synchronous>, transform_indices = @transform_2, window_bounds = array<i64: 2304, 128>}, {pipeline_mode = #tpu.pipeline_mode<synchronous>, transform_indices = @transform_3, window_bounds = array<i64: 1, 128>}, {pipeline_mode = #tpu.pipeline_mode<synchronous>, transform_indices = @transform_4, window_bounds = array<i64: 1, 128>}, {transform_indices = @transform_5, window_bounds = array<i64: 1, 8, 16, 128>}]} {
    %c0 = arith.constant 0 : index
    %c0_0 = arith.constant 0 : index
    %c0_1 = arith.constant 0 : index
    %c0_2 = arith.constant 0 : index
    %0 = vector.load %arg2[%c0, %c0_0, %c0_1, %c0_2] : memref<1x1x184x128xbf16, #tpu.memory_space<vmem>>, vector<1x1x184x128xbf16>
    %1 = vector.shape_cast %0 : vector<1x1x184x128xbf16> to vector<184x128xbf16>
    %2 = vector.extract_strided_slice %1 {offsets = [0, 0], sizes = [144, 128], strides = [1, 1]} : vector<184x128xbf16> to vector<144x128xbf16>
    %3 = vector.extract_strided_slice %1 {offsets = [1, 0], sizes = [144, 128], strides = [1, 1]} : vector<184x128xbf16> to vector<144x128xbf16>
    %4 = vector.extract_strided_slice %1 {offsets = [2, 0], sizes = [144, 128], strides = [1, 1]} : vector<184x128xbf16> to vector<144x128xbf16>
    %5 = vector.extract_strided_slice %1 {offsets = [18, 0], sizes = [144, 128], strides = [1, 1]} : vector<184x128xbf16> to vector<144x128xbf16>
    %6 = vector.extract_strided_slice %1 {offsets = [19, 0], sizes = [144, 128], strides = [1, 1]} : vector<184x128xbf16> to vector<144x128xbf16>
    %7 = vector.extract_strided_slice %1 {offsets = [20, 0], sizes = [144, 128], strides = [1, 1]} : vector<184x128xbf16> to vector<144x128xbf16>
    %8 = vector.extract_strided_slice %1 {offsets = [36, 0], sizes = [144, 128], strides = [1, 1]} : vector<184x128xbf16> to vector<144x128xbf16>
    %9 = vector.extract_strided_slice %1 {offsets = [37, 0], sizes = [144, 128], strides = [1, 1]} : vector<184x128xbf16> to vector<144x128xbf16>
    %10 = vector.extract_strided_slice %1 {offsets = [38, 0], sizes = [144, 128], strides = [1, 1]} : vector<184x128xbf16> to vector<144x128xbf16>
    %c0_3 = arith.constant 0 : index
    %c0_4 = arith.constant 0 : index
    %c0_5 = arith.constant 0 : index
    %c0_6 = arith.constant 0 : index
    %11 = vector.load %arg3[%c0_3, %c0_4, %c0_5, %c0_6] : memref<1x1x184x128xbf16, #tpu.memory_space<vmem>>, vector<1x1x184x128xbf16>
    %12 = vector.shape_cast %11 : vector<1x1x184x128xbf16> to vector<184x128xbf16>
    %13 = vector.extract_strided_slice %12 {offsets = [0, 0], sizes = [144, 128], strides = [1, 1]} : vector<184x128xbf16> to vector<144x128xbf16>
    %14 = vector.extract_strided_slice %12 {offsets = [1, 0], sizes = [144, 128], strides = [1, 1]} : vector<184x128xbf16> to vector<144x128xbf16>
    %15 = vector.extract_strided_slice %12 {offsets = [2, 0], sizes = [144, 128], strides = [1, 1]} : vector<184x128xbf16> to vector<144x128xbf16>
    %16 = vector.extract_strided_slice %12 {offsets = [18, 0], sizes = [144, 128], strides = [1, 1]} : vector<184x128xbf16> to vector<144x128xbf16>
    %17 = vector.extract_strided_slice %12 {offsets = [19, 0], sizes = [144, 128], strides = [1, 1]} : vector<184x128xbf16> to vector<144x128xbf16>
    %18 = vector.extract_strided_slice %12 {offsets = [20, 0], sizes = [144, 128], strides = [1, 1]} : vector<184x128xbf16> to vector<144x128xbf16>
    %19 = vector.extract_strided_slice %12 {offsets = [36, 0], sizes = [144, 128], strides = [1, 1]} : vector<184x128xbf16> to vector<144x128xbf16>
    %20 = vector.extract_strided_slice %12 {offsets = [37, 0], sizes = [144, 128], strides = [1, 1]} : vector<184x128xbf16> to vector<144x128xbf16>
    %21 = vector.extract_strided_slice %12 {offsets = [38, 0], sizes = [144, 128], strides = [1, 1]} : vector<184x128xbf16> to vector<144x128xbf16>
    %22 = tpu.concatenate %2, %3, %4, %5, %6, %7, %8, %9, %10, %13, %14, %15, %16, %17, %18, %19 in 1 : vector<144x128xbf16>, vector<144x128xbf16>, vector<144x128xbf16>, vector<144x128xbf16>, vector<144x128xbf16>, vector<144x128xbf16>, vector<144x128xbf16>, vector<144x128xbf16>, vector<144x128xbf16>, vector<144x128xbf16>, vector<144x128xbf16>, vector<144x128xbf16>, vector<144x128xbf16>, vector<144x128xbf16>, vector<144x128xbf16>, vector<144x128xbf16> -> vector<144x2048xbf16>
    %23 = tpu.concatenate %20, %21 in 1 : vector<144x128xbf16>, vector<144x128xbf16> -> vector<144x256xbf16>
    %24 = tpu.concatenate %22, %23 in 1 : vector<144x2048xbf16>, vector<144x256xbf16> -> vector<144x2304xbf16>
    %c0_7 = arith.constant 0 : index
    %c0_8 = arith.constant 0 : index
    %25 = vector.load %arg4[%c0_7, %c0_8] : memref<2304x128xbf16, #tpu.memory_space<vmem>>, vector<2304x128xbf16>
    %cst = arith.constant dense<0.000000e+00> : vector<144x128xf32>
    %26 = tpu.matmul %24, %25, %cst {dimension_numbers = #tpu.dot_dimension_numbers<[1], [0], [0], [1], [0, 0, 1, 1], [], []>} : vector<144x2304xbf16>, vector<2304x128xbf16>, vector<144x128xf32> -> vector<144x128xf32>
    %c0_9 = arith.constant 0 : index
    %c0_10 = arith.constant 0 : index
    %27 = vector.load %arg5[%c0_9, %c0_10] : memref<1x128xf32, #tpu.memory_space<vmem>>, vector<1x128xf32>
    %28 = vector.broadcast %27 : vector<1x128xf32> to vector<144x128xf32>
    %29 = arith.mulf %26, %28 : vector<144x128xf32>
    %c0_11 = arith.constant 0 : index
    %c0_12 = arith.constant 0 : index
    %30 = vector.load %arg6[%c0_11, %c0_12] : memref<1x128xf32, #tpu.memory_space<vmem>>, vector<1x128xf32>
    %31 = vector.broadcast %30 : vector<1x128xf32> to vector<144x128xf32>
    %32 = arith.addf %29, %31 : vector<144x128xf32>
    %cst_13 = arith.constant 0.000000e+00 : f32
    %33 = vector.broadcast %cst_13 : f32 to vector<144x128xf32>
    %34 = arith.maximumf %32, %33 : vector<144x128xf32>
    %35 = vector.shape_cast %34 : vector<144x128xf32> to vector<8x18x128xf32>
    %36 = vector.extract_strided_slice %35 {offsets = [0, 0, 0], sizes = [8, 16, 128], strides = [1, 1, 1]} : vector<8x18x128xf32> to vector<8x16x128xf32>
    %37 = arith.truncf %36 : vector<8x16x128xf32> to vector<8x16x128xbf16>
    %c0_14 = arith.constant 0 : index
    %c0_15 = arith.constant 0 : index
    %c0_16 = arith.constant 0 : index
    %c0_17 = arith.constant 0 : index
    %38 = vector.load %arg7[%c0_14, %c0_15, %c0_16, %c0_17] : memref<1x8x16x128xbf16, #tpu.memory_space<vmem>>, vector<1x8x16x128xbf16>
    %39 = vector.shape_cast %38 : vector<1x8x16x128xbf16> to vector<8x16x128xbf16>
    %40 = vector.shape_cast %37 : vector<8x16x128xbf16> to vector<1x8x16x128xbf16>
    tpu.vector_store %arg7[%c0_14, %c0_15, %c0_16, %c0_17], %40 {strides = array<i32>} : memref<1x8x16x128xbf16, #tpu.memory_space<vmem>>, vector<1x8x16x128xbf16>,
    return
  }
  func.func @transform_0(%arg0: i32, %arg1: i32) -> (i32, i32, i32, i32) {
    %c0_i32 = arith.constant 0 : i32
    %c0_i32_0 = arith.constant 0 : i32
    %c0_i32_1 = arith.constant 0 : i32
    return %arg0, %arg1, %c0_i32, %c0_i32_0 : i32, i32, i32, i32
  }
  func.func @transform_1(%arg0: i32, %arg1: i32) -> (i32, i32, i32, i32) {
    %c0_i32 = arith.constant 0 : i32
    %c0_i32_0 = arith.constant 0 : i32
    %c0_i32_1 = arith.constant 0 : i32
    return %arg0, %arg1, %c0_i32, %c0_i32_0 : i32, i32, i32, i32
  }
  func.func @transform_2(%arg0: i32, %arg1: i32) -> (i32, i32) {
    %c0_i32 = arith.constant 0 : i32
    %c0_i32_0 = arith.constant 0 : i32
    %c0_i32_1 = arith.constant 0 : i32
    return %c0_i32, %c0_i32_0 : i32, i32
  }
  func.func @transform_3(%arg0: i32, %arg1: i32) -> (i32, i32) {
    %c0_i32 = arith.constant 0 : i32
    %c0_i32_0 = arith.constant 0 : i32
    %c0_i32_1 = arith.constant 0 : i32
    return %c0_i32, %c0_i32_0 : i32, i32
  }
  func.func @transform_4(%arg0: i32, %arg1: i32) -> (i32, i32) {
    %c0_i32 = arith.constant 0 : i32
    %c0_i32_0 = arith.constant 0 : i32
    %c0_i32_1 = arith.constant 0 : i32
    return %c0_i32, %c0_i32_0 : i32, i32
  }
  func.func @transform_5(%arg0: i32, %arg1: i32) -> (i32, i32, i32, i32) {
    %c0_i32 = arith.constant 0 : i32
    %c0_i32_0 = arith.constant 0 : i32
    %c0_i32_1 = arith.constant 0 : i32
    return %arg0, %arg1, %c0_i32, %c0_i32_0 : i32, i32, i32, i32
  }
}

module attributes {stable_mosaic.version = 11 : i64} {
  func.func @_conv3x3_bn_relu_kernel(%arg0: i32, %arg1: i32, %arg2: memref<1x1x184x128xbf16, #tpu.memory_space<vmem>>, %arg3: memref<1152x128xbf16, #tpu.memory_space<vmem>>, %arg4: memref<1x128xf32, #tpu.memory_space<vmem>>, %arg5: memref<1x128xf32, #tpu.memory_space<vmem>>, %arg6: memref<1x8x16x128xf32, #tpu.memory_space<vmem>>) attributes {dimension_semantics = [#tpu.dimension_semantics<parallel>, #tpu.dimension_semantics<parallel>], iteration_bounds = array<i64: 2, 2>, scalar_prefetch = 0 : i64, scratch_operands = 0 : i64, tpu.core_type = #tpu.core_type<tc>, window_params = [{transform_indices = @transform_0, window_bounds = array<i64: 1, 1, 184, 128>}, {pipeline_mode = #tpu.pipeline_mode<synchronous>, transform_indices = @transform_1, window_bounds = array<i64: 1152, 128>}, {pipeline_mode = #tpu.pipeline_mode<synchronous>, transform_indices = @transform_2, window_bounds = array<i64: 1, 128>}, {pipeline_mode = #tpu.pipeline_mode<synchronous>, transform_indices = @transform_3, window_bounds = array<i64: 1, 128>}, {transform_indices = @transform_4, window_bounds = array<i64: 1, 8, 16, 128>}]} {
    %c0 = arith.constant 0 : index
    %c0_0 = arith.constant 0 : index
    %c0_1 = arith.constant 0 : index
    %c0_2 = arith.constant 0 : index
    %0 = vector.load %arg2[%c0, %c0_0, %c0_1, %c0_2] : memref<1x1x184x128xbf16, #tpu.memory_space<vmem>>, vector<1x1x184x128xbf16>
    %1 = vector.shape_cast %0 : vector<1x1x184x128xbf16> to vector<184x128xbf16>
    %2 = vector.extract_strided_slice %1 {offsets = [0, 0], sizes = [144, 128], strides = [1, 1]} : vector<184x128xbf16> to vector<144x128xbf16>
    %3 = vector.extract_strided_slice %1 {offsets = [1, 0], sizes = [144, 128], strides = [1, 1]} : vector<184x128xbf16> to vector<144x128xbf16>
    %4 = vector.extract_strided_slice %1 {offsets = [2, 0], sizes = [144, 128], strides = [1, 1]} : vector<184x128xbf16> to vector<144x128xbf16>
    %5 = vector.extract_strided_slice %1 {offsets = [18, 0], sizes = [144, 128], strides = [1, 1]} : vector<184x128xbf16> to vector<144x128xbf16>
    %6 = vector.extract_strided_slice %1 {offsets = [19, 0], sizes = [144, 128], strides = [1, 1]} : vector<184x128xbf16> to vector<144x128xbf16>
    %7 = vector.extract_strided_slice %1 {offsets = [20, 0], sizes = [144, 128], strides = [1, 1]} : vector<184x128xbf16> to vector<144x128xbf16>
    %8 = vector.extract_strided_slice %1 {offsets = [36, 0], sizes = [144, 128], strides = [1, 1]} : vector<184x128xbf16> to vector<144x128xbf16>
    %9 = vector.extract_strided_slice %1 {offsets = [37, 0], sizes = [144, 128], strides = [1, 1]} : vector<184x128xbf16> to vector<144x128xbf16>
    %10 = vector.extract_strided_slice %1 {offsets = [38, 0], sizes = [144, 128], strides = [1, 1]} : vector<184x128xbf16> to vector<144x128xbf16>
    %11 = tpu.concatenate %2, %3, %4, %5, %6, %7, %8, %9, %10 in 1 : vector<144x128xbf16>, vector<144x128xbf16>, vector<144x128xbf16>, vector<144x128xbf16>, vector<144x128xbf16>, vector<144x128xbf16>, vector<144x128xbf16>, vector<144x128xbf16>, vector<144x128xbf16> -> vector<144x1152xbf16>
    %c0_3 = arith.constant 0 : index
    %c0_4 = arith.constant 0 : index
    %12 = vector.load %arg3[%c0_3, %c0_4] : memref<1152x128xbf16, #tpu.memory_space<vmem>>, vector<1152x128xbf16>
    %cst = arith.constant dense<0.000000e+00> : vector<144x128xf32>
    %13 = tpu.matmul %11, %12, %cst {dimension_numbers = #tpu.dot_dimension_numbers<[1], [0], [0], [1], [0, 0, 1, 1], [], []>} : vector<144x1152xbf16>, vector<1152x128xbf16>, vector<144x128xf32> -> vector<144x128xf32>
    %c0_5 = arith.constant 0 : index
    %c0_6 = arith.constant 0 : index
    %14 = vector.load %arg4[%c0_5, %c0_6] : memref<1x128xf32, #tpu.memory_space<vmem>>, vector<1x128xf32>
    %15 = vector.broadcast %14 : vector<1x128xf32> to vector<144x128xf32>
    %16 = arith.mulf %13, %15 : vector<144x128xf32>
    %c0_7 = arith.constant 0 : index
    %c0_8 = arith.constant 0 : index
    %17 = vector.load %arg5[%c0_7, %c0_8] : memref<1x128xf32, #tpu.memory_space<vmem>>, vector<1x128xf32>
    %18 = vector.broadcast %17 : vector<1x128xf32> to vector<144x128xf32>
    %19 = arith.addf %16, %18 : vector<144x128xf32>
    %cst_9 = arith.constant 0.000000e+00 : f32
    %20 = vector.broadcast %cst_9 : f32 to vector<144x128xf32>
    %21 = arith.maximumf %19, %20 : vector<144x128xf32>
    %22 = vector.shape_cast %21 : vector<144x128xf32> to vector<8x18x128xf32>
    %23 = vector.extract_strided_slice %22 {offsets = [0, 0, 0], sizes = [8, 16, 128], strides = [1, 1, 1]} : vector<8x18x128xf32> to vector<8x16x128xf32>
    %c0_10 = arith.constant 0 : index
    %c0_11 = arith.constant 0 : index
    %c0_12 = arith.constant 0 : index
    %c0_13 = arith.constant 0 : index
    %24 = vector.load %arg6[%c0_10, %c0_11, %c0_12, %c0_13] : memref<1x8x16x128xf32, #tpu.memory_space<vmem>>, vector<1x8x16x128xf32>
    %25 = vector.shape_cast %24 : vector<1x8x16x128xf32> to vector<8x16x128xf32>
    %26 = vector.shape_cast %23 : vector<8x16x128xf32> to vector<1x8x16x128xf32>
    tpu.vector_store %arg6[%c0_10, %c0_11, %c0_12, %c0_13], %26 {strides = array<i32>} : memref<1x8x16x128xf32, #tpu.memory_space<vmem>>, vector<1x8x16x128xf32>,
    return
  }
  func.func @transform_0(%arg0: i32, %arg1: i32) -> (i32, i32, i32, i32) {
    %c0_i32 = arith.constant 0 : i32
    %c0_i32_0 = arith.constant 0 : i32
    %c0_i32_1 = arith.constant 0 : i32
    return %arg0, %arg1, %c0_i32, %c0_i32_0 : i32, i32, i32, i32
  }
  func.func @transform_1(%arg0: i32, %arg1: i32) -> (i32, i32) {
    %c0_i32 = arith.constant 0 : i32
    %c0_i32_0 = arith.constant 0 : i32
    %c0_i32_1 = arith.constant 0 : i32
    return %c0_i32, %c0_i32_0 : i32, i32
  }
  func.func @transform_2(%arg0: i32, %arg1: i32) -> (i32, i32) {
    %c0_i32 = arith.constant 0 : i32
    %c0_i32_0 = arith.constant 0 : i32
    %c0_i32_1 = arith.constant 0 : i32
    return %c0_i32, %c0_i32_0 : i32, i32
  }
  func.func @transform_3(%arg0: i32, %arg1: i32) -> (i32, i32) {
    %c0_i32 = arith.constant 0 : i32
    %c0_i32_0 = arith.constant 0 : i32
    %c0_i32_1 = arith.constant 0 : i32
    return %c0_i32, %c0_i32_0 : i32, i32
  }
  func.func @transform_4(%arg0: i32, %arg1: i32) -> (i32, i32, i32, i32) {
    %c0_i32 = arith.constant 0 : i32
    %c0_i32_0 = arith.constant 0 : i32
    %c0_i32_1 = arith.constant 0 : i32
    return %arg0, %arg1, %c0_i32, %c0_i32_0 : i32, i32, i32, i32
  }
}

</mosaic_0001>

<bundles_post_ra>
// kernel: decoder_forward.3
= control target key start
LH: loop header
LB: loop body
LE: loop exit
PB: predicated region body
PF: predicated region fallthrough
CT: control target
= control target key end

     0   :  { %s478_s1 = inlined_call_operand.vmem [shape: bf16[128,128], index: 1, kind: input, shape index: {}]   ;;  %s479_s2 = inlined_call_operand.vmem [shape: f32[1,128], index: 2, kind: input, shape index: {}]   ;;  %s480_s0 = inlined_call_operand.vmem [shape: bf16[128,128], index: 0, kind: input, shape index: {}]   ;;  %s481_s3 = inlined_call_operand.vmem [shape: bf16[128,128], index: 3, kind: output, shape index: {}]  }
   0x1   :  { %v310_v0 = vld [vmem:[%s478_s1 + $0x38] sm:$0xff]  ;;  %v309_v1 = vld [vmem:[%s478_s1 + $0x30] sm:$0xff]  ;;  %v308_v2 = vld [vmem:[%s478_s1 + $0x28] sm:$0xff] }
   0x2   :  { %146 = vmatpush.bf16.msra.mxu0 %v310_v0  ;;  %358 = vmatpush.bf16.msra.mxu1 %v310_v0  ;;  %v307_v3 = vld [vmem:[%s478_s1 + $0x20] sm:$0xff]  ;;  %v306_v4 = vld [vmem:[%s478_s1 + $0x18] sm:$0xff]  ;;  %v305_v5 = vld [vmem:[%s478_s1 + $0x10] sm:$0xff] }
   0x3   :  { %359 = vmatpush.bf16.msra.mxu2 %v310_v0  ;;  %360 = vmatpush.bf16.msra.mxu3 %v310_v0  ;;  %v304_v6 = vld [vmem:[%s478_s1 + $0x8] sm:$0xff]  ;;  %v303_v7 = vld [vmem:[%s478_s1] sm:$0xff]  ;;  %v297_v9 = vld [vmem:[%s480_s0 + $0x10] sm:$0xff] }
   0x4   :  { %v295_v8 = vld [vmem:[%s480_s0] sm:$0xff]  ;;  %v301_v11 = vld [vmem:[%s480_s0 + $0x30] sm:$0xff]  ;;  %v296_v12 = vld [vmem:[%s480_s0 + $0x8] sm:$0xff] }
   0x5   :  { %v299_v10 = vld [vmem:[%s480_s0 + $0x20] sm:$0xff]  ;;  %v298_v13 = vld [vmem:[%s480_s0 + $0x18] sm:$0xff]  ;;  %v300_v14 = vld [vmem:[%s480_s0 + $0x28] sm:$0xff] }
   0x6   :  { %147 = vmatpush.bf16.msra.mxu0 %v309_v1  ;;  %361 = vmatpush.bf16.msra.mxu1 %v309_v1  ;;  %v302_v15 = vld [vmem:[%s480_s0 + $0x38] sm:$0xff]  ;;  %v382_v18 = vld [vmem:[%s479_s2] ss:$0 sm:$0xff] }
   0x7   :  { %362 = vmatpush.bf16.msra.mxu2 %v309_v1  ;;  %363 = vmatpush.bf16.msra.mxu3 %v309_v1 }
   0xa   :  { %148 = vmatpush.bf16.msra.mxu0 %v308_v2  ;;  %364 = vmatpush.bf16.msra.mxu1 %v308_v2 }
   0xb   :  { %365 = vmatpush.bf16.msra.mxu2 %v308_v2  ;;  %366 = vmatpush.bf16.msra.mxu3 %v308_v2 }
   0xe   :  { %149 = vmatpush.bf16.msra.mxu0 %v307_v3  ;;  %367 = vmatpush.bf16.msra.mxu1 %v307_v3 }
   0xf   :  { %368 = vmatpush.bf16.msra.mxu2 %v307_v3  ;;  %369 = vmatpush.bf16.msra.mxu3 %v307_v3 }
  0x12   :  { %150 = vmatpush.bf16.msra.mxu0 %v306_v4  ;;  %370 = vmatpush.bf16.msra.mxu1 %v306_v4 }
  0x13   :  { %371 = vmatpush.bf16.msra.mxu2 %v306_v4  ;;  %372 = vmatpush.bf16.msra.mxu3 %v306_v4 }
  0x16   :  { %151 = vmatpush.bf16.msra.mxu0 %v305_v5  ;;  %373 = vmatpush.bf16.msra.mxu1 %v305_v5 }
  0x17   :  { %374 = vmatpush.bf16.msra.mxu2 %v305_v5  ;;  %375 = vmatpush.bf16.msra.mxu3 %v305_v5 }
  0x1a   :  { %152 = vmatpush.bf16.msra.mxu0 %v304_v6  ;;  %376 = vmatpush.bf16.msra.mxu1 %v304_v6 }
  0x1b   :  { %377 = vmatpush.bf16.msra.mxu2 %v304_v6  ;;  %378 = vmatpush.bf16.msra.mxu3 %v304_v6 }
  0x1e   :  { %153 = vmatpush.bf16.msra.mxu0 %v303_v7  ;;  %379 = vmatpush.bf16.msra.mxu1 %v303_v7 }
  0x1f   :  { %380 = vmatpush.bf16.msra.mxu2 %v303_v7  ;;  %381 = vmatpush.bf16.msra.mxu3 %v303_v7 }
  0x21   :  { %154 = vmatmul.bf16.vlgmr.msra.gmra.mxu0 %v295_v8  ;;  %164 = vmatmul.bf16.vlgmr.msra.gmra.mxu1 %v297_v9 }
  0x22   :  { %174 = vmatmul.bf16.vlgmr.msra.gmra.mxu2 %v299_v10  ;;  %184 = vmatmul.bf16.vlgmr.msra.gmra.mxu3 %v301_v11 }
  0x31   :  { %159 = vmatmul.bf16.gmra.mxu0 %v296_v12  ;;  %169 = vmatmul.bf16.gmra.mxu1 %v298_v13 }
  0x32   :  { %179 = vmatmul.bf16.gmra.mxu2 %v300_v14  ;;  %189 = vmatmul.bf16.gmra.mxu3 %v302_v15 }
  0x9e   :  { %v155_v16 = vpop.f32.mrf.mxu0  ;;  %v165_v17 = vpop.f32.mrf.mxu1 }
  0x9f   :  { %v156_v23 = vadd.f32 %v382_v18, %v155_v16  ;;  %v166_v24 = vadd.f32 %v382_v18, %v165_v17 }
  0xa5   :  { %v175_v19 = vpop.f32.mrf.mxu2  ;;  %v185_v20 = vpop.f32.mrf.mxu3 }
  0xa6   :  { %v157_v21 = vpop.f32.mrf.mxu0  ;;  %v167_v22 = vpop.f32.mrf.mxu1  ;;  %v176_v31 = vadd.f32 %v382_v18, %v175_v19  ;;  %v186_v32 = vadd.f32 %v382_v18, %v185_v20 }
  0xa7   :  { %v158_v25 = vadd.f32 %v382_v18, %v157_v21  ;;  %v168_v26 = vadd.f32 %v382_v18, %v167_v22 }
  0xa9   :  { %v314_v27 = vpack.c.bf16 %v158_v25, %v156_v23  ;;  %v324_v28 = vpack.c.bf16 %v168_v26, %v166_v24 }
  0xab   :  { %315 = vst [vmem:[%s481_s3] sm:$0xff] %v314_v27  }
  0xac   :  { %352 = vst [vmem:[%s481_s3 + $0x10] sm:$0xff] %v324_v28  }
  0xad   :  { %v177_v29 = vpop.f32.mrf.mxu2  ;;  %v187_v30 = vpop.f32.mrf.mxu3 }
  0xae   :  { %v178_v33 = vadd.f32 %v382_v18, %v177_v29  ;;  %v188_v34 = vadd.f32 %v382_v18, %v187_v30  ;;  %v160_v35 = vpop.f32.mrf.mxu0  ;;  %v170_v36 = vpop.f32.mrf.mxu1 }
  0xaf   :  { %v161_v43 = vadd.f32 %v382_v18, %v160_v35  ;;  %v171_v44 = vadd.f32 %v382_v18, %v170_v36 }
  0xb0   :  { %v334_v37 = vpack.c.bf16 %v178_v33, %v176_v31  ;;  %v344_v38 = vpack.c.bf16 %v188_v34, %v186_v32 }
  0xb2   :  { %354 = vst [vmem:[%s481_s3 + $0x20] sm:$0xff] %v334_v37  }
  0xb3   :  { %356 = vst [vmem:[%s481_s3 + $0x30] sm:$0xff] %v344_v38  }
  0xb5   :  { %v180_v39 = vpop.f32.mrf.mxu2  ;;  %v190_v40 = vpop.f32.mrf.mxu3 }
  0xb6   :  { %v162_v41 = vpop.f32.mrf.mxu0  ;;  %v172_v42 = vpop.f32.mrf.mxu1  ;;  %v181_v51 = vadd.f32 %v382_v18, %v180_v39  ;;  %v191_v52 = vadd.f32 %v382_v18, %v190_v40 }
  0xb7   :  { %v163_v45 = vadd.f32 %v382_v18, %v162_v41  ;;  %v173_v46 = vadd.f32 %v382_v18, %v172_v42 }
  0xb9   :  { %v319_v47 = vpack.c.bf16 %v163_v45, %v161_v43  ;;  %v329_v48 = vpack.c.bf16 %v173_v46, %v171_v44 }
  0xbb   :  { %351 = vst [vmem:[%s481_s3 + $0x8] sm:$0xff] %v319_v47  }
  0xbc   :  { %353 = vst [vmem:[%s481_s3 + $0x18] sm:$0xff] %v329_v48  }
  0xbd   :  { %v182_v49 = vpop.f32.mrf.mxu2  ;;  %v192_v50 = vpop.f32.mrf.mxu3 }
  0xbe   :  { %v183_v53 = vadd.f32 %v382_v18, %v182_v49  ;;  %v193_v54 = vadd.f32 %v382_v18, %v192_v50 }
  0xc0   :  { %v339_v55 = vpack.c.bf16 %v183_v53, %v181_v51  ;;  %v349_v56 = vpack.c.bf16 %v193_v54, %v191_v52 }
  0xc2   :  { %355 = vst [vmem:[%s481_s3 + $0x28] sm:$0xff] %v339_v55  }
  0xc3   :  { %357 = vst [vmem:[%s481_s3 + $0x38] sm:$0xff] %v349_v56  }

// kernel: decoder_forward.4
= control target key start
LH: loop header
LB: loop body
LE: loop exit
PB: predicated region body
PF: predicated region fallthrough
CT: control target
= control target key end

     0   :  { %s4700_s18 = smov 0   ;;  %s4702_s19 = smov 0   ;;  %s6073_s0 = inlined_call_operand.vmem [shape: bf16[2,2,184,128], index: 0, kind: input, shape index: {}]   ;;  %s6074_s1 = inlined_call_operand.vmem [shape: bf16[2,2,184,128], index: 1, kind: input, shape index: {}]   ;;  %s6075_s2 = inlined_call_operand.vmem [shape: bf16[2304,128], index: 2, kind: input, shape index: {}]   ;;  %s6076_s3 = inlined_call_operand.vmem [shape: f32[1,128], index: 3, kind: input, shape index: {}]   ;;  %s6077_s4 = inlined_call_operand.vmem [shape: f32[1,128], index: 4, kind: input, shape index: {}]   ;;  %s6078_s5 = inlined_call_operand.vmem [shape: bf16[2,16,16,128], index: 5, kind: output, shape index: {}]  }
   0x1   :  { %s4704_s20 = smov 0   ;;  %s4706_s21 = smov 0  }
   0x2   :  { %s4708_s22 = smov 0  }
   0x3 LB: > { %s24_s23 = sadd.s32 1, %s4660_s20  ;;  %s27_s24 = sadd.s32 1, %s4664_s21  ;;  %s4668_s22 = sphi %s4708_s22, %s15_s22   ;;  %s4664_s21 = sphi %s4706_s21, %s6099_s21   ;;  %s4660_s20 = sphi %s4704_s20, %s6098_s20   ;;  %s4656_s19 = sphi %s4702_s19, %s6097_s19   ;;  %s4652_s18 = sphi %s4700_s18, %s6096_s18  }
   0x4   : > { %p25_p0 = scmp.ge.s32.totalorder %s24_s23, 2  ;;  %p3672_p1 = scmp.ge.s32.totalorder %s4668_s22, 1 }
   0x5   : > { %p223_p2 = scmp.lt.s32.totalorder %s4668_s22, 5 }
   0x6   : > { %s6101_s23 = smov (%p25_p0, %s24_s23), 0  ;;  %s6103_s24 = smov (!%p25_p0, %s27_s24), %s4664_s21 }
   0x7   : > { %p224_p3 = pnand %p3672_p1, %p223_p2  ;;  %p29_p4 = scmp.ge.s32.totalorder %s6103_s24, 2 }
   0x9   : > { %s6105_s24 = smov (%p29_p4, %s6103_s24), 0  ;;  %227 = sbr.rel (%p224_p3) target bundleno = 844 (0x34c), region = 40 }
   0xe   : > { %v4354_v0 = vld [vmem:[%s6075_s2 + $0x38] sm:$0xff]  ;;  %p269_p5 = scmp.lt.s32.totalorder %s4656_s19, 1  ;;  %p271_p6 = scmp.lt.s32.totalorder %s4652_s18, 1  ;;  %v4353_v2 = vld [vmem:[%s6075_s2 + $0x30] sm:$0xff]  ;;  %v4352_v4 = vld [vmem:[%s6075_s2 + $0x28] sm:$0xff]  ;;  %vm487_vm1 = vcmask 1046528  }
   0xf   : > { %v4362_v1 = vld [vmem:[%s6075_s2 + $0x78] sm:$0xff]  ;;  %2313 = vmatpush.bf16.msra.mxu0 %v4354_v0  ;;  %4558 = vmatpush.bf16.msra.mxu2 %v4354_v0  ;;  %v4361_v3 = vld [vmem:[%s6075_s2 + $0x70] sm:$0xff]  ;;  %v4360_v5 = vld [vmem:[%s6075_s2 + $0x68] sm:$0xff]  ;;  %vm401_vm0 = vsmask.f32 7424  ;;  %vm587_vm3 = vcmask 1045504  }
  0x10   : > { %s6107_s19 = smov (!%p269_p5, %s4656_s19), 1  ;;  %2367 = vmatpush.bf16.msra.mxu1 %v4362_v1  ;;  %4566 = vmatpush.bf16.msra.mxu3 %v4362_v1  ;;  %v4351_v6 = vld [vmem:[%s6075_s2 + $0x20] sm:$0xff]  ;;  %v4350_v8 = vld [vmem:[%s6075_s2 + $0x18] sm:$0xff]  ;;  %v4349_v12 = vld [vmem:[%s6075_s2 + $0x10] sm:$0xff]  ;;  %vm528_vm2 = vsmask.f32 6400 }
  0x11   : > { %s272_s8 = scalar_select %p271_p6, %s4652_s18, 1  ;;  %v4359_v7 = vld [vmem:[%s6075_s2 + $0x60] sm:$0xff]  ;;  %v4358_v9 = vld [vmem:[%s6075_s2 + $0x58] sm:$0xff]  ;;  %v4357_v14 = vld [vmem:[%s6075_s2 + $0x50] sm:$0xff]  ;;  %vm628_vm4 = vsmask.f32 5376 }
  0x12   : > { %s4575_s9 = smul.u32 46, %s6107_s19  ;;  %v4348_v18 = vld [vmem:[%s6075_s2 + $0x8] sm:$0xff]  ;;  %v4347_v26 = vld [vmem:[%s6075_s2] sm:$0xff]  ;;  %v4386_v32 = vld [vmem:[%s6075_s2 + $0x138] sm:$0xff]  ;;  %vm687_vm5 = vcmask 1044480   ;;  %s3675_s25 = sshll.u32 %s4652_s18, 3 }
  0x13   : > { %s4574_s10 = smul.u32 23, %s272_s8  ;;  %2314 = vmatpush.bf16.msra.mxu0 %v4353_v2  ;;  %4559 = vmatpush.bf16.msra.mxu2 %v4353_v2  ;;  %v4356_v21 = vld [vmem:[%s6075_s2 + $0x48] sm:$0xff]  ;;  %v4355_v27 = vld [vmem:[%s6075_s2 + $0x40] sm:$0xff]  ;;  %v4394_v33 = vld [vmem:[%s6075_s2 + $0x178] sm:$0xff]  ;;  %p290_p7 = scmp.lt.s32.totalorder %s3675_s25, 15 }
  0x14   : > { %2368 = vmatpush.bf16.msra.mxu1 %v4361_v3  ;;  %4567 = vmatpush.bf16.msra.mxu3 %v4361_v3  ;;  %v4370_v36 = vld [vmem:[%s6075_s2 + $0xb8] sm:$0xff]  ;;  %v4385_v38 = vld [vmem:[%s6075_s2 + $0x130] sm:$0xff]  ;;  %v4384_v44 = vld [vmem:[%s6075_s2 + $0x128] sm:$0xff]  ;;  %s3677_s26 = sshll.u32 %s6107_s19, 5 }
  0x15   : > { %s4755_s15 = sadd.s32 %s4575_s9, %s4574_s10  ;;  %v4378_v37 = vld [vmem:[%s6075_s2 + $0xf8] sm:$0xff]  ;;  %v4393_v39 = vld [vmem:[%s6075_s2 + $0x170] sm:$0xff]  ;;  %v4392_v45 = vld [vmem:[%s6075_s2 + $0x168] sm:$0xff]  ;;  %s6109_s25 = smov (!%p290_p7, %s3675_s25), 15 }
  0x16   : > { %s3673_s16 = sshll.u32 %s4755_s15, 2  ;;  %v4369_v40 = vld [vmem:[%s6075_s2 + $0xb0] sm:$0xff]  ;;  %v4368_v50 = vld [vmem:[%s6075_s2 + $0xa8] sm:$0xff]  ;;  %v4383_v52 = vld [vmem:[%s6075_s2 + $0x120] sm:$0xff]  ;;  %s3676_s18 = sshll.u32 %s6109_s25, 1 }
  0x17   : > { %2315 = vmatpush.bf16.msra.mxu0 %v4352_v4  ;;  %4560 = vmatpush.bf16.msra.mxu2 %v4352_v4  ;;  %s4769_s30 = scalar_lea.vmem %s6073_s0, %s3673_s16  ;;  %v4377_v43 = vld [vmem:[%s6075_s2 + $0xf0] sm:$0xff]  ;;  %v4376_v51 = vld [vmem:[%s6075_s2 + $0xe8] sm:$0xff]  ;;  %v4391_v53 = vld [vmem:[%s6075_s2 + $0x160] sm:$0xff]  ;;  %s5299_s29 = scalar_lea.vmem %s6074_s1, %s3673_s16 }
  0x18   : > { %2369 = vmatpush.bf16.msra.mxu1 %v4360_v5  ;;  %4568 = vmatpush.bf16.msra.mxu3 %v4360_v5  ;;  %v4778_v10 = vld [vmem:[%s4769_s30] sm:$0xff]  ;;  %v4781_v11 = vld [vmem:[%s4769_s30 + $0x28] sm:$0xff]  ;;  %v4794_v16 = vld [vmem:[%s4769_s30 + $0x30] sm:$0xff]  ;;  %s294_s27 = sadd.s32 %s3677_s26, %s3676_s18 }
  0x19   : > { %v4787_v13 = vld [vmem:[%s4769_s30 + $0x8] sm:$0xff]  ;;  %v405_v15 = vshll.u32 %v4778_v10, 16  ;;  %v4797_v17 = vshll.u32 %v4781_v11, 16  ;;  %v403_v19 = vshrl.u32 %v4778_v10, 16  ;;  %v4809_v24 = vshrl.u32 %v4781_v11, 16  ;;  %v4852_v41 = vld [vmem:[%s4769_s30 + $0x10] sm:$0xff] }
  0x1a   : > { %v410_v20 = vshll.u32 %v4787_v13, 16  ;;  %v4812_v25 = vshll.u32 %v4794_v16, 16  ;;  %v4855_v42 = vld [vmem:[%s4769_s30 + $0x38] sm:$0xff]  ;;  %v414_v46 = vshrl.u32 %v4787_v13, 16  ;;  %v4868_v47 = vshll.u32 %v4852_v41, 16  ;;  %v4367_v58 = vld [vmem:[%s6075_s2 + $0xa0] sm:$0xff] }
  0x1b   : > { %2316 = vmatpush.bf16.msra.mxu0 %v4351_v6  ;;  %4561 = vmatpush.bf16.msra.mxu2 %v4351_v6  ;;  %v407_v22 = vrot.slane %v405_v15, 1  ;;  %v444_v23 = vrot.slane %v4797_v17, 1  ;;  %v4871_v48 = vshrl.u32 %v4794_v16, 16  ;;  %v4874_v49 = vshll.u32 %v4855_v42, 16  ;;  %v4375_v59 = vld [vmem:[%s6075_s2 + $0xe0] sm:$0xff]  ;;  %v4382_v60 = vld [vmem:[%s6075_s2 + $0x118] sm:$0xff] }
  0x1c   : > { %2370 = vmatpush.bf16.msra.mxu1 %v4359_v7  ;;  %4569 = vmatpush.bf16.msra.mxu3 %v4359_v7  ;;  %v412_v29 = vrot.slane %v410_v20, 1  ;;  %v452_v31 = vrot.slane %v4812_v25, 1  ;;  %v420_v55 = vrot.slane %v4868_v47, 1  ;;  %v4390_v61 = vld [vmem:[%s6075_s2 + $0x158] sm:$0xff]  ;;  %v4381_v3 = vld [vmem:[%s6075_s2 + $0x110] sm:$0xff]  ;;  %v4925_v5 = vld [vmem:[%s4769_s30 + $0x40] sm:$0xff] }
  0x1d   : > { %v408_v28 = vor.u32 %v407_v22, %v403_v19  ;;  %v448_v30 = vor.u32 %v4809_v24, %v444_v23  ;;  %v460_v57 = vrot.slane %v4874_v49, 1  ;;  %v4366_v0 = vld [vmem:[%s6075_s2 + $0x98] sm:$0xff]  ;;  %v4389_v4 = vld [vmem:[%s6075_s2 + $0x150] sm:$0xff]  ;;  %v4946_v15 = vshrl.u32 %v4855_v42, 16  ;;  %v4364_v19 = vld [vmem:[%s6075_s2 + $0x88] sm:$0xff]  ;;  %s3678_s28 = sshll.u32 %s294_s27, 2 }
  0x1e   : > { %v416_v54 = vor.u32 %v414_v46, %v412_v29  ;;  %v456_v56 = vor.u32 %v4871_v48, %v452_v31  ;;  %v4374_v1 = vld [vmem:[%s6075_s2 + $0xd8] sm:$0xff]  ;;  %v4365_v6 = vld [vmem:[%s6075_s2 + $0x90] sm:$0xff]  ;;  %s6006_s16 = scalar_lea.vmem %s6078_s5, %s3678_s28 }
  0x1f   : > { %2317 = vmatpush.bf16.msra.mxu0 %v4350_v8  ;;  %4562 = vmatpush.bf16.msra.mxu2 %v4350_v8  ;;  %v413_v34 = vsel %vm401_vm0, %v408_v28, %v412_v29  ;;  %v453_v35 = vsel %vm401_vm0, %v448_v30, %v452_v31  ;;  %v4916_v2 = vld [vmem:[%s4769_s30 + $0x18] sm:$0xff]  ;;  %v4373_v7 = vld [vmem:[%s6075_s2 + $0xd0] sm:$0xff]  ;;  %v4380_v8 = vld [vmem:[%s6075_s2 + $0x108] sm:$0xff] }
  0x20   : > { %2371 = vmatpush.bf16.msra.mxu1 %v4358_v9  ;;  %4570 = vmatpush.bf16.msra.mxu3 %v4358_v9  ;;  %v421_v62 = vsel %vm401_vm0, %v416_v54, %v420_v55  ;;  %v461_v63 = vsel %vm401_vm0, %v456_v56, %v460_v57  ;;  %v4388_v9 = vld [vmem:[%s6075_s2 + $0x148] sm:$0xff]  ;;  %v4363_v29 = vld [vmem:[%s6075_s2 + $0x80] sm:$0xff] }
  0x21   : > { %v4371_v30 = vld [vmem:[%s6075_s2 + $0xc0] sm:$0xff]  ;;  %v4968_v31 = vld [vmem:[%s4769_s30 + $0x48] sm:$0xff]  }
  0x23   : > { %2318 = vmatpush.bf16.msra.mxu0 %v4349_v12  ;;  %4563 = vmatpush.bf16.msra.mxu2 %v4349_v12  ;;  %v4940_v12 = vshrl.u32 %v4852_v41, 16 }
  0x24   : > { %2372 = vmatpush.bf16.msra.mxu1 %v4357_v14  ;;  %4571 = vmatpush.bf16.msra.mxu3 %v4357_v14  ;;  %v4943_v14 = vshll.u32 %v4916_v2, 16 }
  0x25   : > { %v424_v22 = vor.u32 %v4940_v12, %v420_v55 }
  0x27   : > { %2319 = vmatpush.bf16.msra.mxu0 %v4348_v18  ;;  %4564 = vmatpush.bf16.msra.mxu2 %v4348_v18  ;;  %v4949_v18 = vshll.u32 %v4925_v5, 16 }
  0x28   : > { %2373 = vmatpush.bf16.msra.mxu1 %v4356_v21  ;;  %4572 = vmatpush.bf16.msra.mxu3 %v4356_v21  ;;  %v4372_v21 = vld [vmem:[%s6075_s2 + $0xc8] sm:$0xff] }
  0x29   : > { %v468_v28 = vrot.slane %v4949_v18, 1 }
  0x2b   : > { %2320 = vmatpush.bf16.msra.mxu0 %v4347_v26  ;;  %4565 = vmatpush.bf16.msra.mxu2 %v4347_v26  ;;  %v428_v26 = vrot.slane %v4943_v14, 1 }
  0x2c   : > { %2374 = vmatpush.bf16.msra.mxu1 %v4355_v27  ;;  %4573 = vmatpush.bf16.msra.mxu3 %v4355_v27  ;;  %v464_v27 = vor.u32 %v4946_v15, %v460_v57  ;;  %v4418_v57 = vld [vmem:[%s6075_s2 + $0x238] sm:$0xff] }
  0x2e   : > { %2321 = vmatmul.bf16.vlgmr.msra.gmra.mxu0 %v4778_v10  ;;  %2346 = vmatmul.bf16.vlgmr.msra.gmra.mxu2 %v4781_v11 }
  0x2f   : > { %2529 = vmatpush.bf16.msrb.mxu0 %v4386_v32  ;;  %2375 = vmatmul.bf16.vlgmr.msra.gmra.mxu1 %v413_v34  ;;  %v429_v32 = vsel %vm401_vm0, %v424_v22, %v428_v26  ;;  %v4493_v34 = vunpack.c.l.b16 %v4968_v31  ;;  %v533_v22 = vrot.slane %v4868_v47, 2 }
  0x30   : > { %2583 = vmatpush.bf16.msrb.mxu1 %v4394_v33  ;;  %2400 = vmatmul.bf16.vlgmr.msra.gmra.mxu3 %v453_v35  ;;  %v469_v33 = vsel %vm401_vm0, %v464_v27, %v468_v28  ;;  %v4379_v35 = vld [vmem:[%s6075_s2 + $0x100] sm:$0xff] }
  0x31   : > { %2421 = vmatpush.bf16.msrb.mxu2 %v4370_v36  ;;  %2475 = vmatpush.bf16.msrb.mxu3 %v4378_v37  ;;  %v4402_v36 = vld [vmem:[%s6075_s2 + $0x1b8] sm:$0xff]  ;;  %v4387_v37 = vld [vmem:[%s6075_s2 + $0x140] sm:$0xff] }
  0x33   : > { %2530 = vmatpush.bf16.msrb.mxu0 %v4385_v38  ;;  %v4985_v38 = vld [vmem:[%s4769_s30 + $0x20] sm:$0xff] }
  0x34   : > { %2584 = vmatpush.bf16.msrb.mxu1 %v4393_v39  ;;  %v4987_v39 = vpack.c.b16 %v4493_v34, %v4493_v34  ;;  %v4399_v34 = vld [vmem:[%s6075_s2 + $0x1a0] sm:$0xff] }
  0x35   : > { %2422 = vmatpush.bf16.msrb.mxu2 %v4369_v40  ;;  %2476 = vmatpush.bf16.msrb.mxu3 %v4377_v43  ;;  %v4410_v40 = vld [vmem:[%s6075_s2 + $0x1f8] sm:$0xff]  ;;  %v4993_v43 = vshrl.u32 %v4916_v2, 16 }
  0x37   : > { %2531 = vmatpush.bf16.msrb.mxu0 %v4384_v44  ;;  %v4996_v44 = vshll.u32 %v4985_v38, 16 }
  0x38   : > { %2585 = vmatpush.bf16.msrb.mxu1 %v4392_v45  ;;  %v4999_v45 = vshrl.u32 %v4925_v5, 16 }
  0x39   : > { %2423 = vmatpush.bf16.msrb.mxu2 %v4368_v50  ;;  %2477 = vmatpush.bf16.msrb.mxu3 %v4376_v51  ;;  %v474_v50 = vshll.u32 %v4987_v39, 16  ;;  %v432_v51 = vor.u32 %v4993_v43, %v428_v26 }
  0x3b   : > { %2532 = vmatpush.bf16.msrb.mxu0 %v4383_v52  ;;  %v436_v52 = vrot.slane %v4996_v44, 1  ;;  %v476_v54 = vrot.slane %v474_v50, 1  ;;  %v591_v50 = vrot.slane %v4916_v2, 2 }
  0x3c   : > { %2586 = vmatpush.bf16.msrb.mxu1 %v4391_v53  ;;  %v472_v53 = vor.u32 %v4999_v45, %v468_v28  ;;  %v493_v28 = vrot.slane %v4916_v2, 1 }
  0x3d   : > { %2424 = vmatpush.bf16.msrb.mxu2 %v4367_v58  ;;  %2478 = vmatpush.bf16.msrb.mxu3 %v4375_v59  ;;  %v437_v55 = vsel %vm401_vm0, %v432_v51, %v436_v52  ;;  %v4426_v58 = vld [vmem:[%s6075_s2 + $0x278] sm:$0xff]  ;;  %v4401_v59 = vld [vmem:[%s6075_s2 + $0x1b0] sm:$0xff] }
  0x3e   : > { %2326 = vmatmul.bf16.gmra.mxu0 %v4787_v13  ;;  %2351 = vmatmul.bf16.gmra.mxu2 %v4794_v16  ;;  %v477_v56 = vsel %vm401_vm0, %v472_v53, %v476_v54  ;;  %v4407_v54 = vld [vmem:[%s6075_s2 + $0x1e0] sm:$0xff] }
  0x3f   : > { %2533 = vmatpush.bf16.msrb.mxu0 %v4382_v60  ;;  %2380 = vmatmul.bf16.gmra.mxu1 %v421_v62  ;;  %v4409_v60 = vld [vmem:[%s6075_s2 + $0x1f0] sm:$0xff]  ;;  %v488_v62 = vrot.slane %v4778_v10, 1 }
  0x40   : > { %2587 = vmatpush.bf16.msrb.mxu1 %v4390_v61  ;;  %2405 = vmatmul.bf16.gmra.mxu3 %v461_v63  ;;  %v5022_v61 = vshrl.u32 %v4985_v38, 16  ;;  %v489_v63 = vrot.slane %v4787_v13, 1  ;;  %v4417_v10 = vld [vmem:[%s6075_s2 + $0x230] sm:$0xff] }
  0x41   : > { %2425 = vmatpush.bf16.msrb.mxu2 %v4366_v0  ;;  %2479 = vmatpush.bf16.msrb.mxu3 %v4374_v1  ;;  %v491_v1 = vrot.slane %v4852_v41, 1 }
  0x42   : > { %v440_v0 = vor.u32 %v5022_v61, %v436_v52 }
  0x43   : > { %2534 = vmatpush.bf16.msrb.mxu0 %v4381_v3  ;;  %v490_v3 = vsel %vm487_vm1, %v488_v62, %v489_v63  ;;  %v593_v62 = vrot.slane %v4985_v38, 2 }
  0x44   : > { %2588 = vmatpush.bf16.msrb.mxu1 %v4389_v4  ;;  %v445_v4 = vsel %vm401_vm0, %v440_v0, %v444_v23  ;;  %v4408_v23 = vld [vmem:[%s6075_s2 + $0x1e8] sm:$0xff] }
  0x45   : > { %2426 = vmatpush.bf16.msrb.mxu2 %v4365_v6  ;;  %2480 = vmatpush.bf16.msrb.mxu3 %v4373_v7  ;;  %v492_v6 = vsel %vm487_vm1, %v489_v63, %v491_v1  ;;  %v4425_v7 = vld [vmem:[%s6075_s2 + $0x270] sm:$0xff] }
  0x47   : > { %2535 = vmatpush.bf16.msrb.mxu0 %v4380_v8  ;;  %v4400_v8 = vld [vmem:[%s6075_s2 + $0x1a8] sm:$0xff] }
  0x48   : > { %2589 = vmatpush.bf16.msrb.mxu1 %v4388_v9  ;;  %v529_v9 = vrot.slane %v414_v46, 1  ;;  %v494_v46 = vsel %vm487_vm1, %v491_v1, %v493_v28  ;;  %v5093_v1 = vsel %vm587_vm3, %v591_v50, %v593_v62 }
  0x49   : > { %2427 = vmatpush.bf16.msrb.mxu2 %v4364_v19  ;;  %2481 = vmatpush.bf16.msrb.mxu3 %v4372_v21  ;;  %v530_v19 = vrot.slane %v410_v20, 2  ;;  %v532_v21 = vrot.slane %v4940_v12, 1 }
  0x4b   : > { %2536 = vmatpush.bf16.msrb.mxu0 %v4379_v35  ;;  %v531_v26 = vor.u32 %v530_v19, %v529_v9  ;;  %v534_v27 = vor.u32 %v533_v22, %v532_v21  ;;  %v536_v35 = vrot.slane %v4993_v43, 1  ;;  %v499_v9 = vrot.slane %v4794_v16, 1 }
  0x4c   : > { %2590 = vmatpush.bf16.msrb.mxu1 %v4387_v37  ;;  %v595_v19 = vrot.slane %v4781_v11, 2 }
  0x4d   : > { %2428 = vmatpush.bf16.msrb.mxu2 %v4363_v29  ;;  %2482 = vmatpush.bf16.msrb.mxu3 %v4371_v30  ;;  %v588_v29 = vrot.slane %v4787_v13, 2  ;;  %v589_v30 = vrot.slane %v4852_v41, 2  ;;  %v4424_v13 = vld [vmem:[%s6075_s2 + $0x268] sm:$0xff] }
  0x4e   : > { %2331 = vmatmul.bf16.gmra.mxu0 %v4852_v41  ;;  %2356 = vmatmul.bf16.gmra.mxu2 %v4855_v42 }
  0x4f   : > { %2385 = vmatmul.bf16.gmra.mxu1 %v429_v32  ;;  %2745 = vmatpush.bf16.msra.mxu0 %v4418_v57  ;;  %v535_v32 = vsel %vm528_vm2, %v531_v26, %v534_v27  ;;  %v590_v20 = vsel %vm587_vm3, %v588_v29, %v589_v30  ;;  %v5074_v53 = vsel %vm587_vm3, %v589_v30, %v591_v50  ;;  %v4415_v57 = vld [vmem:[%s6075_s2 + $0x220] sm:$0xff]  ;;  %v4405_v30 = vld [vmem:[%s6075_s2 + $0x1d0] sm:$0xff]  ;;  %v501_v50 = vrot.slane %v4855_v42, 1 }
  0x50   : > { %2410 = vmatmul.bf16.gmra.mxu3 %v469_v33  ;;  %2799 = vmatpush.bf16.msra.mxu1 %v4426_v58  ;;  %v4416_v33 = vld [vmem:[%s6075_s2 + $0x228] sm:$0xff]  ;;  %v4423_v58 = vld [vmem:[%s6075_s2 + $0x260] sm:$0xff] }
  0x51   : > { %2637 = vmatpush.bf16.msra.mxu2 %v4402_v36  ;;  %2691 = vmatpush.bf16.msra.mxu3 %v4410_v40  ;;  %v537_v36 = vrot.slane %v4943_v14, 2  ;;  %v495_v40 = vrot.slane %v4985_v38, 1 }
  0x53   : > { %2746 = vmatpush.bf16.msra.mxu0 %v4417_v10  ;;  %v538_v37 = vor.u32 %v537_v36, %v536_v35  ;;  %v496_v52 = vsel %vm487_vm1, %v493_v28, %v495_v40  ;;  %v545_v10 = vrot.slane %v4797_v17, 2  ;;  %v5115_v28 = vsel %vm587_vm3, %v593_v62, %v595_v19 }
  0x54   : > { %2800 = vmatpush.bf16.msra.mxu1 %v4425_v7  ;;  %v4414_v7 = vld [vmem:[%s6075_s2 + $0x218] sm:$0xff] }
  0x55   : > { %2638 = vmatpush.bf16.msra.mxu2 %v4401_v59  ;;  %2692 = vmatpush.bf16.msra.mxu3 %v4409_v60  ;;  %v539_v51 = vsel %vm528_vm2, %v534_v27, %v538_v37  ;;  %v497_v60 = vrot.slane %v4781_v11, 1  ;;  %v4397_v11 = vld [vmem:[%s6075_s2 + $0x190] sm:$0xff] }
  0x57   : > { %2747 = vmatpush.bf16.msra.mxu0 %v4416_v33  ;;  %v498_v0 = vsel %vm487_vm1, %v495_v40, %v497_v60  ;;  %v500_v27 = vsel %vm487_vm1, %v497_v60, %v499_v9  ;;  %v502_v60 = vsel %vm487_vm1, %v499_v9, %v501_v50 }
  0x58   : > { %2801 = vmatpush.bf16.msra.mxu1 %v4424_v13  ;;  %v548_v13 = vrot.slane %v4871_v48, 1 }
  0x59   : > { %2639 = vmatpush.bf16.msra.mxu2 %v4400_v8  ;;  %2693 = vmatpush.bf16.msra.mxu3 %v4408_v23  ;;  %v4422_v8 = vld [vmem:[%s6075_s2 + $0x258] sm:$0xff] }
  0x5b   : > { %2748 = vmatpush.bf16.msra.mxu0 %v4415_v57 }
  0x5c   : > { %2802 = vmatpush.bf16.msra.mxu1 %v4423_v58  ;;  %v4421_v58 = vld [vmem:[%s6075_s2 + $0x250] sm:$0xff] }
  0x5d   : > { %2640 = vmatpush.bf16.msra.mxu2 %v4399_v34  ;;  %2694 = vmatpush.bf16.msra.mxu3 %v4407_v54  ;;  %v549_v34 = vrot.slane %v4812_v25, 2 }
  0x5e   : > { %2336 = vmatmul.bf16.gmra.mxu0 %v4916_v2  ;;  %2361 = vmatmul.bf16.gmra.mxu2 %v4925_v5 }
  0x5f   : > { %2390 = vmatmul.bf16.gmra.mxu1 %v437_v55  ;;  %v540_v55 = vrot.slane %v5022_v61, 1  ;;  %2749 = vmatpush.bf16.msra.mxu0 %v4414_v7  ;;  %v550_v40 = vor.u32 %v549_v34, %v548_v13  ;;  %v553_v7 = vrot.slane %v4874_v49, 2 }
  0x60   : > { %2415 = vmatmul.bf16.gmra.mxu3 %v477_v56  ;;  %v541_v56 = vrot.slane %v4996_v44, 2  ;;  %2803 = vmatpush.bf16.msra.mxu1 %v4422_v8  ;;  %v4404_v8 = vld [vmem:[%s6075_s2 + $0x1c8] sm:$0xff] }
  0x62   : > { %v542_v59 = vor.u32 %v541_v56, %v540_v55 }
  0x64   : > { %v543_v63 = vsel %vm528_vm2, %v538_v37, %v542_v59  ;;  %v4413_v37 = vld [vmem:[%s6075_s2 + $0x210] sm:$0xff]  ;;  %2804 = vmatpush.bf16.msra.mxu1 %v4421_v58 }
  0x65   : > { %2750 = vmatpush.bf16.msra.mxu0 %v4413_v37 }
  0x6e   : > { %2341 = vmatmul.bf16.gmra.mxu0 %v4985_v38  ;;  %2429 = vmatmul.bf16.vlgmr.msrb.gmra.mxu2 %v490_v3  ;;  %v4398_v3 = vld [vmem:[%s6075_s2 + $0x198] sm:$0xff] }
  0x6f   : > { %2395 = vmatmul.bf16.gmra.mxu1 %v445_v4  ;;  %v4406_v4 = vld [vmem:[%s6075_s2 + $0x1d8] sm:$0xff]  ;;  %2641 = vmatpush.bf16.msra.mxu2 %v4398_v3 }
  0x70   : > { %2483 = vmatmul.bf16.vlgmr.msrb.gmra.mxu3 %v492_v6 }
  0x71   : > { %2695 = vmatpush.bf16.msra.mxu3 %v4406_v4 }
  0x73   : > { %2642 = vmatpush.bf16.msra.mxu2 %v4397_v11 }
  0x75   : > { %2696 = vmatpush.bf16.msra.mxu3 %v4405_v30 }
  0x79   : > { %2697 = vmatpush.bf16.msra.mxu3 %v4404_v8 }
  0x7e   : > { %2434 = vmatmul.bf16.gmra.mxu2 %v492_v6  ;;  %2537 = vmatmul.bf16.vlgmr.msrb.gmra.mxu0 %v535_v32  ;;  %v544_v6 = vrot.slane %v4809_v24, 1 }
  0x7f   : > { %2591 = vmatmul.bf16.vlgmr.msrb.gmra.mxu1 %v590_v20 }
  0x80   : > { %2488 = vmatmul.bf16.gmra.mxu3 %v494_v46  ;;  %v546_v23 = vor.u32 %v545_v10, %v544_v6  ;;  %v552_v10 = vrot.slane %v4946_v15, 1 }
  0x82   : > { %v547_v22 = vsel %vm528_vm2, %v542_v59, %v546_v23  ;;  %v551_v57 = vsel %vm528_vm2, %v546_v23, %v550_v40 }
  0x8e   : > { %2439 = vmatmul.bf16.gmra.mxu2 %v494_v46  ;;  %2542 = vmatmul.bf16.gmra.mxu0 %v539_v51  ;;  %v597_v51 = vrot.slane %v4794_v16, 2  ;;  %v4396_v16 = vld [vmem:[%s6075_s2 + $0x188] sm:$0xff] }
  0x8f   : > { %2596 = vmatmul.bf16.gmra.mxu1 %v5074_v53  ;;  %2643 = vmatpush.bf16.msra.mxu2 %v4396_v16  ;;  %v522_v16 = vrot.slane %v4968_v31, 1 }
  0x90   : > { %2493 = vmatmul.bf16.gmra.mxu3 %v496_v52  ;;  %v5145_v62 = vsel %vm587_vm3, %v595_v19, %v597_v51  ;;  %v554_v19 = vor.u32 %v553_v7, %v552_v10 }
  0x9e   : > { %2444 = vmatmul.bf16.gmra.mxu2 %v496_v52  ;;  %2547 = vmatmul.bf16.gmra.mxu0 %v543_v63 }
  0x9f   : > { %2601 = vmatmul.bf16.gmra.mxu1 %v5093_v1 }
  0xa0   : > { %2498 = vmatmul.bf16.gmra.mxu3 %v498_v0 }
  0xab   : > { %v2322_v21 = vpop.f32.mrf.mxu0 }
  0xac   : > { %v2376_v26 = vpop.f32.mrf.mxu1 }
  0xad   : > { %v5117_v29 = vadd.f32 %v2376_v26, %v2322_v21  ;;  %v5163_v21 = vrot.slane %v4925_v5, 1 }
  0xae   : > { %2449 = vmatmul.bf16.gmra.mxu2 %v498_v0  ;;  %2552 = vmatmul.bf16.gmra.mxu0 %v547_v22  ;;  %v599_v22 = vrot.slane %v4855_v42, 2  ;;  %v4420_v42 = vld [vmem:[%s6075_s2 + $0x248] sm:$0xff] }
  0xaf   : > { %2606 = vmatmul.bf16.gmra.mxu1 %v5115_v28  ;;  %v504_v13 = vsel %vm487_vm1, %v501_v50, %v5163_v21 }
  0xb0   : > { %2503 = vmatmul.bf16.gmra.mxu3 %v500_v27  ;;  %v5175_v34 = vsel %vm587_vm3, %v597_v51, %v599_v22  ;;  %2805 = vmatpush.bf16.msra.mxu1 %v4420_v42  ;;  %v556_v51 = vrot.slane %v4999_v45, 1 }
  0xb1   : > { %v2347_v32 = vpop.f32.mrf.mxu2 }
  0xb3   : > { %v2401_v46 = vpop.f32.mrf.mxu3  ;;  %v2324_v33 = vpop.f32.mrf.mxu0 }
  0xb4   : > { %v5126_v20 = vadd.f32 %v2401_v46, %v2347_v32  ;;  %v2378_v35 = vpop.f32.mrf.mxu1  ;;  %v555_v32 = vsel %vm528_vm2, %v550_v40, %v554_v19  ;;  %v4412_v46 = vld [vmem:[%s6075_s2 + $0x208] sm:$0xff] }
  0xb5   : > { %v5130_v36 = vadd.f32 %v2378_v35, %v2324_v33  ;;  %2751 = vmatpush.bf16.msra.mxu0 %v4412_v46  ;;  %v6079_v46 = vshll.u32 %v4968_v31, 16 }
  0xb9   : > { %v2349_v52 = vpop.f32.mrf.mxu2 }
  0xbb   : > { %v2403_v54 = vpop.f32.mrf.mxu3  ;;  %v2327_v56 = vpop.f32.mrf.mxu0 }
  0xbc   : > { %v5137_v55 = vadd.f32 %v2403_v54, %v2349_v52  ;;  %v2381_v59 = vpop.f32.mrf.mxu1  ;;  %v557_v54 = vrot.slane %v4949_v18, 2 }
  0xbd   : > { %v5147_v63 = vadd.f32 %v2381_v59, %v2327_v56  ;;  %v4403_v59 = vld [vmem:[%s6075_s2 + $0x1c0] sm:$0xff] }
  0xbe   : > { %2454 = vmatmul.bf16.gmra.mxu2 %v500_v27  ;;  %2557 = vmatmul.bf16.gmra.mxu0 %v551_v57  ;;  %v4395_v57 = vld [vmem:[%s6075_s2 + $0x180] sm:$0xff] }
  0xbf   : > { %2611 = vmatmul.bf16.gmra.mxu1 %v5145_v62  ;;  %2644 = vmatpush.bf16.msra.mxu2 %v4395_v57 }
  0xc0   : > { %2508 = vmatmul.bf16.gmra.mxu3 %v502_v60 }
  0xc1   : > { %v2352_v0 = vpop.f32.mrf.mxu2  ;;  %2698 = vmatpush.bf16.msra.mxu3 %v4403_v59  ;;  %v4434_v59 = vld [vmem:[%s6075_s2 + $0x2b8] sm:$0xff] }
  0xc3   : > { %v2406_v3 = vpop.f32.mrf.mxu3  ;;  %v2329_v6 = vpop.f32.mrf.mxu0  ;;  %2853 = vmatpush.bf16.msrb.mxu2 %v4434_v59 }
  0xc4   : > { %v5153_v4 = vadd.f32 %v2406_v3, %v2352_v0  ;;  %v2383_v23 = vpop.f32.mrf.mxu1  ;;  %v601_v0 = vrot.slane %v4925_v5, 2  ;;  %v4411_v5 = vld [vmem:[%s6075_s2 + $0x200] sm:$0xff] }
  0xc5   : > { %v5160_v9 = vadd.f32 %v2383_v23, %v2329_v6  ;;  %2752 = vmatpush.bf16.msra.mxu0 %v4411_v5 }
  0xc9   : > { %v2354_v26 = vpop.f32.mrf.mxu2 }
  0xcb   : > { %v2408_v27 = vpop.f32.mrf.mxu3  ;;  %v2332_v30 = vpop.f32.mrf.mxu0 }
  0xcc   : > { %v5166_v11 = vadd.f32 %v2408_v27, %v2354_v26  ;;  %v2386_v33 = vpop.f32.mrf.mxu1  ;;  %v523_v26 = vsel %vm487_vm1, %v5163_v21, %v522_v16  ;;  %v5203_v27 = vsel %vm587_vm3, %v599_v22, %v601_v0  ;;  %v4419_v22 = vld [vmem:[%s6075_s2 + $0x240] sm:$0xff] }
  0xcd   : > { %v5177_v35 = vadd.f32 %v2386_v33, %v2332_v30  ;;  %2806 = vmatpush.bf16.msra.mxu1 %v4419_v22 }
  0xce   : > { %2459 = vmatmul.bf16.gmra.mxu2 %v502_v60  ;;  %2562 = vmatmul.bf16.gmra.mxu0 %v555_v32  ;;  %v558_v60 = vor.u32 %v557_v54, %v556_v51  ;;  %v5208_v32 = vld [vmem:[%s4769_s30 + $0x50] sm:$0xff]   ;;  %v566_v51 = vrot.slane %v6079_v46, 2 }
  0xcf   : > { %2616 = vmatmul.bf16.gmra.mxu1 %v5175_v34  ;;  %v4497_v33 = vunpack.c.l.b16 %v5208_v32 }
  0xd0   : > { %2513 = vmatmul.bf16.gmra.mxu3 %v504_v13  ;;  %v559_v8 = vsel %vm528_vm2, %v554_v19, %v558_v60  ;;  %v6080_v19 = vshrl.u32 %v4968_v31, 16 }
  0xd1   : > { %v2357_v37 = vpop.f32.mrf.mxu2 }
  0xd3   : > { %v2411_v40 = vpop.f32.mrf.mxu3  ;;  %v2334_v50 = vpop.f32.mrf.mxu0 }
  0xd4   : > { %v5183_v52 = vadd.f32 %v2411_v40, %v2357_v37  ;;  %v2388_v56 = vpop.f32.mrf.mxu1 }
  0xd5   : > { %v5190_v58 = vadd.f32 %v2388_v56, %v2334_v50  ;;  %v563_v50 = vrot.slane %v6080_v19, 1  ;;  %v521_v56 = vpack.c.b16 %v4497_v33, %v4497_v33 }
  0xd7   : > { %v573_v59 = vshll.u32 %v521_v56, 16 }
  0xd9   : > { %v2359_v3 = vpop.f32.mrf.mxu2 }
  0xdb   : > { %v2413_v6 = vpop.f32.mrf.mxu3  ;;  %v2337_v7 = vpop.f32.mrf.mxu0 }
  0xdc   : > { %v5197_v10 = vadd.f32 %v2413_v6, %v2359_v3  ;;  %v2391_v23 = vpop.f32.mrf.mxu1  ;;  %v4442_v3 = vld [vmem:[%s6075_s2 + $0x2f8] sm:$0xff]  ;;  %v505_v6 = vrot.slane %v4987_v39, 1 }
  0xdd   : > { %v5205_v30 = vadd.f32 %v2391_v23, %v2337_v7  ;;  %v567_v7 = vor.u32 %v566_v51, %v563_v50  ;;  %v5236_v23 = vrot.slane %v4968_v31, 2  ;;  %2907 = vmatpush.bf16.msrb.mxu3 %v4442_v3 }
  0xde   : > { %2464 = vmatmul.bf16.gmra.mxu2 %v504_v13  ;;  %2567 = vmatmul.bf16.gmra.mxu0 %v559_v8  ;;  %v524_v8 = vrot.slane %v521_v56, 1 }
  0xdf   : > { %2621 = vmatmul.bf16.gmra.mxu1 %v5203_v27  ;;  %v5246_v50 = vsel %vm587_vm3, %v601_v0, %v5236_v23 }
  0xe0   : > { %2518 = vmatmul.bf16.gmra.mxu3 %v523_v26  ;;  %v525_v39 = vsel %vm487_vm1, %v522_v16, %v524_v8 }
  0xe1   : > { %v2362_v13 = vpop.f32.mrf.mxu2 }
  0xe3   : > { %v2416_v42 = vpop.f32.mrf.mxu3  ;;  %v2339_v40 = vpop.f32.mrf.mxu0 }
  0xe4   : > { %v5220_v37 = vadd.f32 %v2416_v42, %v2362_v13  ;;  %v2393_v54 = vpop.f32.mrf.mxu1  ;;  %v506_v13 = vsel %vm487_vm1, %v5163_v21, %v505_v6  ;;  %v568_v42 = vsel %vm528_vm2, %v558_v60, %v567_v7  ;;  %v4450_v21 = vld [vmem:[%s6075_s2 + $0x338] sm:$0xff] }
  0xe5   : > { %v5226_v57 = vadd.f32 %v2393_v54, %v2339_v40  ;;  %v570_v54 = vshrl.u32 %v521_v56, 16  ;;  %v4458_v60 = vld [vmem:[%s6075_s2 + $0x378] sm:$0xff]  ;;  %2961 = vmatpush.bf16.msrb.mxu0 %v4450_v21 }
  0xe6   : > { %3015 = vmatpush.bf16.msrb.mxu1 %v4458_v60 }
  0xe7   : > { %v572_v8 = vrot.slane %v570_v54, 1  ;;  %v4441_v54 = vld [vmem:[%s6075_s2 + $0x2f0] sm:$0xff] }
  0xe8   : > { %2908 = vmatpush.bf16.msrb.mxu3 %v4441_v54 }
  0xe9   : > { %v2364_v26 = vpop.f32.mrf.mxu2 }
  0xeb   : > { %v2418_v5 = vpop.f32.mrf.mxu3  ;;  %v2342_v33 = vpop.f32.mrf.mxu0 }
  0xec   : > { %v5238_v22 = vadd.f32 %v2418_v5, %v2364_v26  ;;  %v2396_v40 = vpop.f32.mrf.mxu1  ;;  %v575_v26 = vrot.slane %v573_v59, 2  ;;  %v629_v5 = vrot.slane %v4940_v12, 2  ;;  %v605_v12 = vrot.slane %v521_v56, 2 }
  0xed   : > { %v5248_v51 = vadd.f32 %v2396_v40, %v2342_v33  ;;  %v632_v40 = vrot.slane %v4993_v43, 2 }
  0xee   : > { %2469 = vmatmul.bf16.gmra.mxu2 %v506_v13  ;;  %2572 = vmatmul.bf16.gmra.mxu0 %v568_v42  ;;  %v630_v42 = vrot.slane %v4868_v47, 3  ;;  %v576_v59 = vor.u32 %v575_v26, %v572_v8  ;;  %v606_v19 = vsel %vm587_vm3, %v5236_v23, %v605_v12  ;;  %v689_v12 = vrot.slane %v4916_v2, 3 }
  0xef   : > { %2626 = vmatmul.bf16.gmra.mxu1 %v5246_v50 }
  0xf0   : > { %2523 = vmatmul.bf16.gmra.mxu3 %v525_v39  ;;  %v633_v39 = vrot.slane %v4943_v14, 3  ;;  %v631_v21 = vor.u32 %v630_v42, %v629_v5 }
  0xf1   : > { %v2430_v16 = vpop.f32.mrf.mxu2 }
  0xf2   : > { %v2431_v0 = vadd.f32 %v2430_v16, %v5117_v29  ;;  %v4433_v29 = vld [vmem:[%s6075_s2 + $0x2b0] sm:$0xff]  ;;  %v634_v60 = vor.u32 %v633_v39, %v632_v40 }
  0xf3   : > { %v2484_v3 = vpop.f32.mrf.mxu3  ;;  %v2344_v6 = vpop.f32.mrf.mxu0  ;;  %2854 = vmatpush.bf16.msrb.mxu2 %v4433_v29  ;;  %v636_v29 = vrot.slane %v5022_v61, 2 }
  0xf4   : > { %v2485_v33 = vadd.f32 %v2484_v3, %v2431_v0  ;;  %v2398_v13 = vpop.f32.mrf.mxu1  ;;  %v577_v0 = vsel %vm528_vm2, %v567_v7, %v576_v59  ;;  %v635_v56 = vsel %vm628_vm4, %v631_v21, %v634_v60  ;;  %v688_v59 = vrot.slane %v4852_v41, 3  ;;  %v5304_v41 = vld [vmem:[%s5299_s29] sm:$0xff] }
  0xf5   : > { %v5262_v46 = vadd.f32 %v2398_v13, %v2344_v6 }
  0xf9   : > { %v2432_v47 = vpop.f32.mrf.mxu2 }
  0xfa   : > { %v2433_v14 = vadd.f32 %v2432_v47, %v5130_v36  ;;  %v4449_v36 = vld [vmem:[%s6075_s2 + $0x330] sm:$0xff] }
  0xfb   : > { %v2486_v43 = vpop.f32.mrf.mxu3  ;;  %v2538_v16 = vpop.f32.mrf.mxu0  ;;  %2962 = vmatpush.bf16.msrb.mxu0 %v4449_v36 }
  0xfc   : > { %v2487_v3 = vadd.f32 %v2486_v43, %v2433_v14  ;;  %v2539_v6 = vadd.f32 %v2538_v16, %v2485_v33  ;;  %v2592_v13 = vpop.f32.mrf.mxu1  ;;  %v690_v43 = vsel %vm687_vm5, %v688_v59, %v689_v12  ;;  %v5329_v59 = vld [vmem:[%s5299_s29 + $0x8] sm:$0xff] }
  0xfe   : > { %v5275_v8 = vadd.f32 %v2592_v13, %v2539_v6  ;;  %2577 = vmatmul.bf16.gmra.mxu0 %v577_v0  ;;  %2645 = vmatmul.bf16.vlgmr.msra.gmra.mxu2 %v5074_v53  ;;  %v637_v53 = vrot.slane %v4996_v44, 3  ;;  %v4440_v6 = vld [vmem:[%s6075_s2 + $0x2e8] sm:$0xff] }
  0xff   : > { %2631 = vmatmul.bf16.gmra.mxu1 %v606_v19  ;;  %v4457_v19 = vld [vmem:[%s6075_s2 + $0x370] sm:$0xff]  ;;  %2909 = vmatpush.bf16.msrb.mxu3 %v4440_v6 }
 0x100   : > { %2699 = vmatmul.bf16.vlgmr.msra.gmra.mxu3 %v635_v56  ;;  %3016 = vmatpush.bf16.msrb.mxu1 %v4457_v19  ;;  %v638_v44 = vor.u32 %v637_v53, %v636_v29 }
 0x101   : > { %v2435_v7 = vpop.f32.mrf.mxu2 }
 0x102   : > { %v2436_v26 = vadd.f32 %v2435_v7, %v5147_v63  ;;  %v4432_v63 = vld [vmem:[%s6075_s2 + $0x2a8] sm:$0xff] }
 0x103   : > { %v2489_v5 = vpop.f32.mrf.mxu3  ;;  %v2540_v33 = vpop.f32.mrf.mxu0  ;;  %2855 = vmatpush.bf16.msrb.mxu2 %v4432_v63 }
 0x104   : > { %v2490_v42 = vadd.f32 %v2489_v5, %v2436_v26  ;;  %v2541_v40 = vadd.f32 %v2540_v33, %v2487_v3  ;;  %v2594_v39 = vpop.f32.mrf.mxu1  ;;  %v639_v3 = vsel %vm628_vm4, %v634_v60, %v638_v44  ;;  %v640_v33 = vrot.slane %v4809_v24, 2 }
 0x106   : > { %v5287_v54 = vadd.f32 %v2594_v39, %v2541_v40  ;;  %v691_v39 = vrot.slane %v4985_v38, 3  ;;  %v4431_v38 = vld [vmem:[%s6075_s2 + $0x2a0] sm:$0xff] }
 0x107   : > { %2856 = vmatpush.bf16.msrb.mxu2 %v4431_v38  ;;  %v648_v38 = vrot.slane %v4946_v15, 2 }
 0x108   : > { %v692_v63 = vsel %vm687_vm5, %v689_v12, %v691_v39 }
 0x109   : > { %v2437_v61 = vpop.f32.mrf.mxu2 }
 0x10a   : > { %v2438_v21 = vadd.f32 %v2437_v61, %v5160_v9 }
 0x10b   : > { %v2491_v47 = vpop.f32.mrf.mxu3  ;;  %v2543_v14 = vpop.f32.mrf.mxu0 }
 0x10c   : > { %v2492_v2 = vadd.f32 %v2491_v47, %v2438_v21  ;;  %v2544_v16 = vadd.f32 %v2543_v14, %v2490_v42  ;;  %v2597_v0 = vpop.f32.mrf.mxu1  ;;  %v641_v42 = vrot.slane %v4797_v17, 3 }
 0x10e   : > { %v5310_v13 = vadd.f32 %v2597_v0, %v2544_v16  ;;  %2650 = vmatmul.bf16.gmra.mxu2 %v5093_v1  ;;  %2753 = vmatmul.bf16.vlgmr.msra.gmra.mxu0 %v690_v43  ;;  %v4448_v1 = vld [vmem:[%s6075_s2 + $0x328] sm:$0xff]  ;;  %v642_v29 = vor.u32 %v641_v42, %v640_v33 }
 0x10f   : > { %2807 = vmatmul.bf16.vlgmr.msra.gmra.mxu1 %v5304_v41  ;;  %2963 = vmatpush.bf16.msrb.mxu0 %v4448_v1  ;;  %v5357_v1 = vld [vmem:[%s5299_s29 + $0x10] sm:$0xff] }
 0x110   : > { %2704 = vmatmul.bf16.gmra.mxu3 %v639_v3  ;;  %v643_v14 = vsel %vm628_vm4, %v638_v44, %v642_v29 }
 0x111   : > { %v2440_v9 = vpop.f32.mrf.mxu2 }
 0x112   : > { %v2441_v56 = vadd.f32 %v2440_v9, %v5177_v35  ;;  %v4456_v35 = vld [vmem:[%s6075_s2 + $0x368] sm:$0xff]  ;;  %v645_v9 = vrot.slane %v4812_v25, 3 }
 0x113   : > { %v2494_v36 = vpop.f32.mrf.mxu3  ;;  %v2545_v7 = vpop.f32.mrf.mxu0  ;;  %3017 = vmatpush.bf16.msrb.mxu1 %v4456_v35 }
 0x114   : > { %v2495_v26 = vadd.f32 %v2494_v36, %v2441_v56  ;;  %v2546_v60 = vadd.f32 %v2545_v7, %v2492_v2  ;;  %v2599_v5 = vpop.f32.mrf.mxu1  ;;  %v4447_v36 = vld [vmem:[%s6075_s2 + $0x320] sm:$0xff]  ;;  %v4618_v7 = vld [vmem:[%s4769_s30 + $0x28] sm:$0xff] }
 0x115   : > { %2964 = vmatpush.bf16.msrb.mxu0 %v4447_v36 }
 0x116   : > { %v5320_v40 = vadd.f32 %v2599_v5, %v2546_v60 }
 0x119   : > { %v2442_v53 = vpop.f32.mrf.mxu2 }
 0x11a   : > { %v2443_v24 = vadd.f32 %v2442_v53, %v5190_v58  ;;  %v4439_v58 = vld [vmem:[%s6075_s2 + $0x2e0] sm:$0xff] }
 0x11b   : > { %v2496_v19 = vpop.f32.mrf.mxu3  ;;  %v2548_v17 = vpop.f32.mrf.mxu0  ;;  %2910 = vmatpush.bf16.msrb.mxu3 %v4439_v58  ;;  %v649_v58 = vrot.slane %v4874_v49, 3 }
 0x11c   : > { %v2497_v61 = vadd.f32 %v2496_v19, %v2443_v24  ;;  %v2549_v21 = vadd.f32 %v2548_v17, %v2495_v26  ;;  %v2602_v47 = vpop.f32.mrf.mxu1  ;;  %v693_v26 = vrot.slane %v4618_v7, 3 }
 0x11e   : > { %v5335_v43 = vadd.f32 %v2602_v47, %v2549_v21  ;;  %2655 = vmatmul.bf16.gmra.mxu2 %v5115_v28  ;;  %2758 = vmatmul.bf16.gmra.mxu0 %v692_v63  ;;  %v644_v28 = vrot.slane %v4871_v48, 2  ;;  %v694_v42 = vsel %vm687_vm5, %v691_v39, %v693_v26  ;;  %v4438_v39 = vld [vmem:[%s6075_s2 + $0x2d8] sm:$0xff] }
 0x11f   : > { %2812 = vmatmul.bf16.gmra.mxu1 %v5329_v59  ;;  %2911 = vmatpush.bf16.msrb.mxu3 %v4438_v39  ;;  %v4445_v39 = vld [vmem:[%s6075_s2 + $0x310] sm:$0xff] }
 0x120   : > { %2709 = vmatmul.bf16.gmra.mxu3 %v643_v14  ;;  %v646_v60 = vor.u32 %v645_v9, %v644_v28  ;;  %v5385_v9 = vld [vmem:[%s5299_s29 + $0x18] sm:$0xff] }
 0x121   : > { %v2445_v12 = vpop.f32.mrf.mxu2 }
 0x122   : > { %v2446_v44 = vadd.f32 %v2445_v12, %v5205_v30  ;;  %v4455_v30 = vld [vmem:[%s6075_s2 + $0x360] sm:$0xff]  ;;  %v647_v19 = vsel %vm628_vm4, %v642_v29, %v646_v60 }
 0x123   : > { %v2499_v2 = vpop.f32.mrf.mxu3  ;;  %v2550_v16 = vpop.f32.mrf.mxu0  ;;  %3018 = vmatpush.bf16.msrb.mxu1 %v4455_v30 }
 0x124   : > { %v2500_v0 = vadd.f32 %v2499_v2, %v2446_v44  ;;  %v2551_v3 = vadd.f32 %v2550_v16, %v2497_v61  ;;  %v2604_v6 = vpop.f32.mrf.mxu1  ;;  %v4446_v44 = vld [vmem:[%s6075_s2 + $0x318] sm:$0xff]  ;;  %v4619_v2 = vld [vmem:[%s4769_s30 + $0x30] sm:$0xff] }
 0x125   : > { %v695_v16 = vrot.slane %v4619_v2, 3  ;;  %2965 = vmatpush.bf16.msrb.mxu0 %v4446_v44 }
 0x126   : > { %v5345_v56 = vadd.f32 %v2604_v6, %v2551_v3 }
 0x127   : > { %v696_v28 = vsel %vm687_vm5, %v693_v26, %v695_v16  ;;  %v4437_v26 = vld [vmem:[%s6075_s2 + $0x2d0] sm:$0xff] }
 0x128   : > { %2912 = vmatpush.bf16.msrb.mxu3 %v4437_v26 }
 0x129   : > { %v2447_v5 = vpop.f32.mrf.mxu2  ;;  %2966 = vmatpush.bf16.msrb.mxu0 %v4445_v39 }
 0x12a   : > { %v2448_v48 = vadd.f32 %v2447_v5, %v5226_v57  ;;  %v4430_v57 = vld [vmem:[%s6075_s2 + $0x298] sm:$0xff] }
 0x12b   : > { %v2501_v33 = vpop.f32.mrf.mxu3  ;;  %v2553_v25 = vpop.f32.mrf.mxu0  ;;  %2857 = vmatpush.bf16.msrb.mxu2 %v4430_v57 }
 0x12c   : > { %v2502_v35 = vadd.f32 %v2501_v33, %v2448_v48  ;;  %v2554_v53 = vadd.f32 %v2553_v25, %v2500_v0  ;;  %v2607_v24 = vpop.f32.mrf.mxu1  ;;  %v650_v0 = vor.u32 %v649_v58, %v648_v38 }
 0x12e   : > { %v5360_v17 = vadd.f32 %v2607_v24, %v2554_v53  ;;  %2660 = vmatmul.bf16.gmra.mxu2 %v5145_v62  ;;  %2763 = vmatmul.bf16.gmra.mxu0 %v694_v42  ;;  %v651_v5 = vsel %vm628_vm4, %v646_v60, %v650_v0  ;;  %v652_v24 = vrot.slane %v4999_v45, 2  ;;  %v5410_v45 = vld [vmem:[%s5299_s29 + $0x20] sm:$0xff] }
 0x12f   : > { %2817 = vmatmul.bf16.gmra.mxu1 %v5357_v1 }
 0x130   : > { %2714 = vmatmul.bf16.gmra.mxu3 %v647_v19  ;;  %v653_v19 = vrot.slane %v4949_v18, 3 }
 0x131   : > { %v2450_v63 = vpop.f32.mrf.mxu2 }
 0x132   : > { %v2451_v29 = vadd.f32 %v2450_v63, %v5248_v51  ;;  %v4454_v51 = vld [vmem:[%s6075_s2 + $0x358] sm:$0xff] }
 0x133   : > { %v2504_v61 = vpop.f32.mrf.mxu3  ;;  %v2555_v62 = vpop.f32.mrf.mxu0  ;;  %3019 = vmatpush.bf16.msrb.mxu1 %v4454_v51  ;;  %v4620_v63 = vld [vmem:[%s4769_s30 + $0x38] sm:$0xff]  ;;  %v4453_v51 = vld [vmem:[%s6075_s2 + $0x350] sm:$0xff] }
 0x134   : > { %v2505_v21 = vadd.f32 %v2504_v61, %v2451_v29  ;;  %v2556_v47 = vadd.f32 %v2555_v62, %v2502_v35  ;;  %v2609_v14 = vpop.f32.mrf.mxu1  ;;  %v697_v29 = vrot.slane %v4620_v63, 3  ;;  %v654_v61 = vor.u32 %v653_v19, %v652_v24  ;;  %v4444_v63 = vld [vmem:[%s6075_s2 + $0x308] sm:$0xff] }
 0x135   : > { %2967 = vmatpush.bf16.msrb.mxu0 %v4444_v63 }
 0x136   : > { %v5373_v12 = vadd.f32 %v2609_v14, %v2556_v47  ;;  %v698_v14 = vsel %vm687_vm5, %v695_v16, %v697_v29  ;;  %v655_v44 = vsel %vm628_vm4, %v650_v0, %v654_v61 }
 0x137   : > { %3020 = vmatpush.bf16.msrb.mxu1 %v4453_v51  ;;  %v4427_v51 = vld [vmem:[%s6075_s2 + $0x280] sm:$0xff] }
 0x139   : > { %v2452_v3 = vpop.f32.mrf.mxu2 }
 0x13a   : > { %v2453_v15 = vadd.f32 %v2452_v3, %v5262_v46  ;;  %v4429_v46 = vld [vmem:[%s6075_s2 + $0x290] sm:$0xff] }
 0x13b   : > { %v2506_v6 = vpop.f32.mrf.mxu3  ;;  %v2558_v49 = vpop.f32.mrf.mxu0  ;;  %2858 = vmatpush.bf16.msrb.mxu2 %v4429_v46 }
 0x13c   : > { %v2507_v36 = vadd.f32 %v2506_v6, %v2453_v15  ;;  %v2559_v30 = vadd.f32 %v2558_v49, %v2505_v21  ;;  %v2612_v7 = vpop.f32.mrf.mxu1 }
 0x13e   : > { %v5388_v48 = vadd.f32 %v2612_v7, %v2559_v30  ;;  %2665 = vmatmul.bf16.gmra.mxu2 %v5175_v34  ;;  %2768 = vmatmul.bf16.gmra.mxu0 %v696_v28  ;;  %v6084_v28 = vshrl.u32 %v4968_v31, 16  ;;  %v6085_v30 = vshll.u32 %v4968_v31, 16 }
 0x13f   : > { %2822 = vmatmul.bf16.gmra.mxu1 %v5385_v9 }
 0x140   : > { %2719 = vmatmul.bf16.gmra.mxu3 %v651_v5  ;;  %v657_v7 = vrot.slane %v6085_v30, 3  ;;  %v4436_v5 = vld [vmem:[%s6075_s2 + $0x2c8] sm:$0xff] }
 0x141   : > { %v2455_v33 = vpop.f32.mrf.mxu2  ;;  %2913 = vmatpush.bf16.msrb.mxu3 %v4436_v5 }
 0x142   : > { %v2456_v60 = vadd.f32 %v2455_v33, %v5126_v20 }
 0x143   : > { %v2509_v25 = vpop.f32.mrf.mxu3  ;;  %v2560_v34 = vpop.f32.mrf.mxu0 }
 0x144   : > { %v2510_v42 = vadd.f32 %v2509_v25, %v2456_v60  ;;  %v2561_v35 = vadd.f32 %v2560_v34, %v2507_v36  ;;  %v2614_v53 = vpop.f32.mrf.mxu1  ;;  %v656_v36 = vrot.slane %v6084_v28, 2 }
 0x146   : > { %v5401_v57 = vadd.f32 %v2614_v53, %v2561_v35  ;;  %v658_v33 = vor.u32 %v657_v7, %v656_v36  ;;  %v5437_v53 = vld [vmem:[%s5299_s29 + $0x28] sm:$0xff] }
 0x148   : > { %v659_v39 = vsel %vm628_vm4, %v654_v61, %v658_v33  ;;  %v664_v61 = vshll.u32 %v5208_v32, 16 }
 0x149   : > { %v2457_v20 = vpop.f32.mrf.mxu2 }
 0x14a   : > { %v2458_v62 = vadd.f32 %v2457_v20, %v5137_v55  ;;  %v4428_v55 = vld [vmem:[%s6075_s2 + $0x288] sm:$0xff] }
 0x14b   : > { %v2511_v21 = vpop.f32.mrf.mxu3  ;;  %v2563_v47 = vpop.f32.mrf.mxu0  ;;  %2859 = vmatpush.bf16.msrb.mxu2 %v4428_v55  ;;  %v320_v55 = vld [vmem:[%s4769_s30 + $0x58] sm:$0xf] }
 0x14c   : > { %v2512_v18 = vadd.f32 %v2511_v21, %v2458_v62  ;;  %v2564_v38 = vadd.f32 %v2563_v47, %v2510_v42  ;;  %v2617_v58 = vpop.f32.mrf.mxu1 }
 0x14e   : > { %v5416_v2 = vadd.f32 %v2617_v58, %v2564_v38  ;;  %2670 = vmatmul.bf16.gmra.mxu2 %v5203_v27  ;;  %2773 = vmatmul.bf16.gmra.mxu0 %v698_v14 }
 0x14f   : > { %2827 = vmatmul.bf16.gmra.mxu1 %v5410_v45  ;;  %2860 = vmatpush.bf16.msrb.mxu2 %v4427_v51 }
 0x150   : > { %2724 = vmatmul.bf16.gmra.mxu3 %v655_v44  ;;  %v666_v44 = vrot.slane %v664_v61, 3 }
 0x151   : > { %v2460_v16 = vpop.f32.mrf.mxu2 }
 0x152   : > { %v2461_v0 = vadd.f32 %v2460_v16, %v5153_v4  ;;  %v4621_v4 = vld [vmem:[%s4769_s30 + $0x40] sm:$0xff] }
 0x153   : > { %v2514_v3 = vpop.f32.mrf.mxu3  ;;  %v2565_v15 = vpop.f32.mrf.mxu0  ;;  %v699_v26 = vrot.slane %v4621_v4, 3  ;;  %v5469_v4 = vld [vmem:[%s5299_s29 + $0x30] sm:$0xff] }
 0x154   : > { %v2515_v6 = vadd.f32 %v2514_v3, %v2461_v0  ;;  %v2566_v49 = vadd.f32 %v2565_v15, %v2512_v18  ;;  %v2619_v27 = vpop.f32.mrf.mxu1  ;;  %v622_v0 = vrot.slane %v5208_v32, 2  ;;  %v4622_v3 = vld [vmem:[%s4769_s30 + $0x48] sm:$0xff]  }
 0x155   : > { %v700_v35 = vsel %vm687_vm5, %v697_v29, %v699_v26  ;;  %v661_v29 = vshrl.u32 %v5208_v32, 16  ;;  %v701_v15 = vrot.slane %v4622_v3, 3 }
 0x156   : > { %v5431_v46 = vadd.f32 %v2619_v27, %v2566_v49  ;;  %v619_v49 = vunpack.c.l.b16 %v320_v55  ;;  %v623_v7 = vsel %vm587_vm3, %v5236_v23, %v622_v0  ;;  %v4451_v23 = vld [vmem:[%s6075_s2 + $0x340] sm:$0xff] }
 0x157   : > { %v663_v58 = vrot.slane %v661_v29, 2  ;;  %v702_v5 = vsel %vm687_vm5, %v699_v26, %v701_v15 }
 0x159   : > { %v2462_v60 = vpop.f32.mrf.mxu2 }
 0x15a   : > { %v2463_v25 = vadd.f32 %v2462_v60, %v5166_v11  ;;  %v4452_v11 = vld [vmem:[%s6075_s2 + $0x348] sm:$0xff] }
 0x15b   : > { %v2516_v34 = vpop.f32.mrf.mxu3  ;;  %v2568_v42 = vpop.f32.mrf.mxu0  ;;  %3021 = vmatpush.bf16.msrb.mxu1 %v4452_v11 }
 0x15c   : > { %v2517_v31 = vadd.f32 %v2516_v34, %v2463_v25  ;;  %v2569_v24 = vadd.f32 %v2568_v42, %v2515_v6  ;;  %v2622_v19 = vpop.f32.mrf.mxu1  ;;  %v667_v6 = vor.u32 %v666_v44, %v663_v58 }
 0x15e   : > { %v5443_v20 = vadd.f32 %v2622_v19, %v2569_v24  ;;  %2675 = vmatmul.bf16.gmra.mxu2 %v5246_v50  ;;  %2778 = vmatmul.bf16.gmra.mxu0 %v700_v35  ;;  %v668_v42 = vsel %vm628_vm4, %v658_v33, %v667_v6  ;;  %v5472_v35 = vpack.c.b16 %v619_v49, %v619_v49  ;;  %v5500_v49 = vld [vmem:[%s5299_s29 + $0x38] sm:$0xff] }
 0x15f   : > { %2832 = vmatmul.bf16.gmra.mxu1 %v5437_v53 }
 0x160   : > { %2729 = vmatmul.bf16.gmra.mxu3 %v659_v39  ;;  %v670_v26 = vshrl.u32 %v5472_v35, 16  ;;  %v673_v33 = vshll.u32 %v5472_v35, 16  ;;  %3022 = vmatpush.bf16.msrb.mxu1 %v4451_v23 }
 0x161   : > { %v2465_v62 = vpop.f32.mrf.mxu2 }
 0x162   : > { %v2466_v21 = vadd.f32 %v2465_v62, %v5183_v52  ;;  %v4435_v52 = vld [vmem:[%s6075_s2 + $0x2c0] sm:$0xff]  ;;  %v672_v62 = vrot.slane %v670_v26, 2 }
 0x163   : > { %v2519_v50 = vpop.f32.mrf.mxu3  ;;  %v2570_v47 = vpop.f32.mrf.mxu0  ;;  %2914 = vmatpush.bf16.msrb.mxu3 %v4435_v52 }
 0x164   : > { %v2520_v14 = vadd.f32 %v2519_v50, %v2466_v21  ;;  %v2571_v18 = vadd.f32 %v2570_v47, %v2517_v31  ;;  %v2624_v38 = vpop.f32.mrf.mxu1  ;;  %v675_v21 = vrot.slane %v673_v33, 3  ;;  %v4466_v47 = vld [vmem:[%s6075_s2 + $0x3b8] sm:$0xff] }
 0x165   : > { %3069 = vmatpush.bf16.msra.mxu2 %v4466_v47 }
 0x166   : > { %v5457_v16 = vadd.f32 %v2624_v38, %v2571_v18  ;;  %v703_v18 = vrot.slane %v5208_v32, 3  ;;  %v676_v38 = vor.u32 %v675_v21, %v672_v62 }
 0x168   : > { %v704_v3 = vsel %vm687_vm5, %v701_v15, %v703_v18  ;;  %v4490_v15 = vld [vmem:[%s6075_s2 + $0x478] sm:$0xff] }
 0x169   : > { %v2467_v27 = vpop.f32.mrf.mxu2  ;;  %3231 = vmatpush.bf16.msra.mxu1 %v4490_v15 }
 0x16a   : > { %v2468_v28 = vadd.f32 %v2467_v27, %v5197_v10  ;;  %v4443_v10 = vld [vmem:[%s6075_s2 + $0x300] sm:$0xff] }
 0x16b   : > { %v2521_v36 = vpop.f32.mrf.mxu3  ;;  %v2573_v30 = vpop.f32.mrf.mxu0  ;;  %2968 = vmatpush.bf16.msrb.mxu0 %v4443_v10 }
 0x16c   : > { %v2522_v60 = vadd.f32 %v2521_v36, %v2468_v28  ;;  %v2574_v25 = vadd.f32 %v2573_v30, %v2520_v14  ;;  %v2627_v34 = vpop.f32.mrf.mxu1  ;;  %v4474_v14 = vld [vmem:[%s6075_s2 + $0x3f8] sm:$0xff]  ;;  %v677_v30 = vsel %vm628_vm4, %v667_v6, %v676_v38 }
 0x16d   : > { %3123 = vmatpush.bf16.msra.mxu3 %v4474_v14 }
 0x16e   : > { %v5474_v31 = vadd.f32 %v2627_v34, %v2574_v25  ;;  %2680 = vmatmul.bf16.gmra.mxu2 %v623_v7  ;;  %2783 = vmatmul.bf16.gmra.mxu0 %v702_v5  ;;  %v774_v25 = vshrl.u32 %v5304_v41, 16 }
 0x16f   : > { %2837 = vmatmul.bf16.gmra.mxu1 %v5469_v4 }
 0x170   : > { %2734 = vmatmul.bf16.gmra.mxu3 %v668_v42  ;;  %v781_v42 = vshll.u32 %v5329_v59, 16 }
 0x171   : > { %v2470_v24 = vpop.f32.mrf.mxu2 }
 0x172   : > { %v2471_v19 = vadd.f32 %v2470_v24, %v5220_v37  ;;  %v624_v37 = vrot.slane %v5472_v35, 2  ;;  %v4465_v24 = vld [vmem:[%s6075_s2 + $0x3b0] sm:$0xff] }
 0x173   : > { %v2524_v39 = vpop.f32.mrf.mxu3  ;;  %v2575_v63 = vpop.f32.mrf.mxu0  ;;  %3070 = vmatpush.bf16.msra.mxu2 %v4465_v24 }
 0x174   : > { %v2525_v11 = vadd.f32 %v2524_v39, %v2471_v19  ;;  %v2576_v29 = vadd.f32 %v2575_v63, %v2522_v60  ;;  %v2629_v61 = vpop.f32.mrf.mxu1  ;;  %v625_v52 = vsel %vm587_vm3, %v622_v0, %v624_v37  ;;  %v4482_v0 = vld [vmem:[%s6075_s2 + $0x438] sm:$0xff]  ;;  %v705_v19 = vrot.slane %v5472_v35, 3  ;;  %v5530_v37 = vld [vmem:[%s5299_s29 + $0x40] sm:$0xff] }
 0x175   : > { %3177 = vmatpush.bf16.msra.mxu0 %v4482_v0  ;;  %v783_v63 = vrot.slane %v781_v42, 1 }
 0x176   : > { %v5486_v50 = vadd.f32 %v2629_v61, %v2576_v29  ;;  %v859_v29 = vrot.slane %v5329_v59, 1  ;;  %v706_v14 = vsel %vm687_vm5, %v703_v18, %v705_v19  ;;  %v4481_v18 = vld [vmem:[%s6075_s2 + $0x430] sm:$0xff] }
 0x179   : > { %v2472_v58 = vpop.f32.mrf.mxu2  ;;  %3178 = vmatpush.bf16.msra.mxu0 %v4481_v18 }
 0x17a   : > { %v2473_v44 = vadd.f32 %v2472_v58, %v5238_v22  ;;  %v776_v22 = vshll.u32 %v5304_v41, 16 }
 0x17b   : > { %v2526_v51 = vpop.f32.mrf.mxu3  ;;  %v2578_v55 = vpop.f32.mrf.mxu0 }
 0x17c   : > { %v2527_v27 = vadd.f32 %v2526_v51, %v2473_v44  ;;  %v2579_v28 = vadd.f32 %v2578_v55, %v2525_v11  ;;  %v2632_v36 = vpop.f32.mrf.mxu1  ;;  %v778_v34 = vrot.slane %v776_v22, 1  ;;  %v858_v11 = vrot.slane %v5304_v41, 1 }
 0x17d   : > { %v5542_v55 = vshll.u32 %v5357_v1, 16  ;;  %v899_v22 = vrot.slane %v781_v42, 2  ;;  %v861_v42 = vrot.slane %v5357_v1, 1 }
 0x17e   : > { %v5503_v32 = vadd.f32 %v2632_v36, %v2579_v28  ;;  %2685 = vmatmul.bf16.gmra.mxu2 %v625_v52  ;;  %2788 = vmatmul.bf16.gmra.mxu0 %v704_v3  ;;  %v779_v39 = vor.u32 %v778_v34, %v774_v25  ;;  %v860_v41 = vsel %vm487_vm1, %v858_v11, %v859_v29  ;;  %v5545_v52 = vshrl.u32 %v5357_v1, 16  ;;  %v4472_v1 = vld [vmem:[%s6075_s2 + $0x3e8] sm:$0xff] }
 0x17f   : > { %2842 = vmatmul.bf16.gmra.mxu1 %v5500_v49  ;;  %v791_v34 = vrot.slane %v5542_v55, 1  ;;  %v862_v11 = vsel %vm487_vm1, %v859_v29, %v861_v42  ;;  %v5573_v29 = vshrl.u32 %v5385_v9, 16 }
 0x180   : > { %2739 = vmatmul.bf16.gmra.mxu3 %v677_v30  ;;  %v784_v38 = vsel %vm401_vm0, %v779_v39, %v783_v63 }
 0x181   : > { %v2646_v7 = vpop.f32.mrf.mxu2  ;;  %v905_v18 = vrot.slane %v5573_v29, 1 }
 0x182   : > { %v2647_v6 = vadd.f32 %v2646_v7, %v5275_v8  ;;  %v4473_v8 = vld [vmem:[%s6075_s2 + $0x3f0] sm:$0xff]  ;;  %v901_v7 = vrot.slane %v5545_v52, 1 }
 0x183   : > { %v2700_v5 = vpop.f32.mrf.mxu3  ;;  %v2580_v60 = vpop.f32.mrf.mxu0  ;;  %3124 = vmatpush.bf16.msra.mxu3 %v4473_v8 }
 0x184   : > { %v2701_v10 = vadd.f32 %v2700_v5, %v2647_v6  ;;  %v2581_v23 = vadd.f32 %v2580_v60, %v2527_v27  ;;  %v2634_v26 = vpop.f32.mrf.mxu1  ;;  %v902_v6 = vrot.slane %v5542_v55, 2  ;;  %v4489_v5 = vld [vmem:[%s6075_s2 + $0x470] sm:$0xff] }
 0x185   : > { %3232 = vmatpush.bf16.msra.mxu1 %v4489_v5 }
 0x186   : > { %v5516_v33 = vadd.f32 %v2634_v26, %v2581_v23  ;;  %v903_v23 = vor.u32 %v902_v6, %v901_v7 }
 0x187   : > { %3125 = vmatpush.bf16.msra.mxu3 %v4472_v1 }
 0x189   : > { %v2648_v61 = vpop.f32.mrf.mxu2 }
 0x18a   : > { %v2649_v62 = vadd.f32 %v2648_v61, %v5287_v54  ;;  %v785_v54 = vshrl.u32 %v5329_v59, 16 }
 0x18b   : > { %v2702_v21 = vpop.f32.mrf.mxu3  ;;  %v2754_v47 = vpop.f32.mrf.mxu0 }
 0x18c   : > { %v2703_v35 = vadd.f32 %v2702_v21, %v2649_v62  ;;  %v2755_v58 = vadd.f32 %v2754_v47, %v2701_v10  ;;  %v2808_v44 = vpop.f32.mrf.mxu1  ;;  %v898_v30 = vrot.slane %v785_v54, 1  ;;  %v787_v25 = vor.u32 %v785_v54, %v783_v63 }
 0x18e   : > { %v5534_v51 = vadd.f32 %v2808_v44, %v2755_v58  ;;  %2793 = vmatmul.bf16.gmra.mxu0 %v706_v14  ;;  %2861 = vmatmul.bf16.vlgmr.msrb.gmra.mxu2 %v784_v38  ;;  %v900_v10 = vor.u32 %v899_v22, %v898_v30  ;;  %v792_v39 = vsel %vm401_vm0, %v787_v25, %v791_v34  ;;  %v863_v22 = vrot.slane %v5385_v9, 1 }
 0x18f   : > { %2847 = vmatmul.bf16.gmra.mxu1 %v5530_v37 }
 0x190   : > { %2915 = vmatmul.bf16.vlgmr.msrb.gmra.mxu3 %v860_v41  ;;  %v904_v63 = vsel %vm528_vm2, %v900_v10, %v903_v23 }
 0x191   : > { %v2651_v3 = vpop.f32.mrf.mxu2 }
 0x192   : > { %v2652_v27 = vadd.f32 %v2651_v3, %v5310_v13  ;;  %v4464_v13 = vld [vmem:[%s6075_s2 + $0x3a8] sm:$0xff] }
 0x193   : > { %v2705_v28 = vpop.f32.mrf.mxu3  ;;  %v2756_v36 = vpop.f32.mrf.mxu0  ;;  %3071 = vmatpush.bf16.msra.mxu2 %v4464_v13  ;;  %v864_v13 = vsel %vm487_vm1, %v861_v42, %v863_v22  ;;  %v5605_v42 = vshll.u32 %v5410_v45, 16 }
 0x194   : > { %v2706_v0 = vadd.f32 %v2705_v28, %v2652_v27  ;;  %v2757_v59 = vadd.f32 %v2756_v36, %v2703_v35  ;;  %v2810_v15 = vpop.f32.mrf.mxu1  ;;  %v4480_v27 = vld [vmem:[%s6075_s2 + $0x428] sm:$0xff]  ;;  %v795_v36 = vor.u32 %v5545_v52, %v791_v34 }
 0x195   : > { %3179 = vmatpush.bf16.msra.mxu0 %v4480_v27  ;;  %v910_v1 = vrot.slane %v5605_v42, 2 }
 0x196   : > { %v5553_v60 = vadd.f32 %v2810_v15, %v2757_v59 }
 0x199   : > { %v2653_v26 = vpop.f32.mrf.mxu2 }
 0x19a   : > { %v2654_v24 = vadd.f32 %v2653_v26, %v5320_v40  ;;  %v5570_v40 = vshll.u32 %v5385_v9, 16  ;;  %v4463_v9 = vld [vmem:[%s6075_s2 + $0x3a0] sm:$0xff] }
 0x19b   : > { %v2707_v8 = vpop.f32.mrf.mxu3  ;;  %v2759_v19 = vpop.f32.mrf.mxu0  ;;  %3072 = vmatpush.bf16.msra.mxu2 %v4463_v9 }
 0x19c   : > { %v2708_v61 = vadd.f32 %v2707_v8, %v2654_v24  ;;  %v2760_v62 = vadd.f32 %v2759_v19, %v2706_v0  ;;  %v2813_v21 = vpop.f32.mrf.mxu1  ;;  %v906_v3 = vrot.slane %v5570_v40, 2  ;;  %v799_v30 = vrot.slane %v5570_v40, 1 }
 0x19e   : > { %v5567_v47 = vadd.f32 %v2813_v21, %v2760_v62  ;;  %2866 = vmatmul.bf16.gmra.mxu2 %v792_v39  ;;  %2969 = vmatmul.bf16.vlgmr.msrb.gmra.mxu0 %v862_v11  ;;  %v907_v0 = vor.u32 %v906_v3, %v905_v18  ;;  %v5591_v5 = vsel %vm401_vm0, %v795_v36, %v799_v30 }
 0x19f   : > { %3023 = vmatmul.bf16.vlgmr.msrb.gmra.mxu1 %v904_v63 }
 0x1a0   : > { %2920 = vmatmul.bf16.gmra.mxu3 %v862_v11  ;;  %v908_v34 = vsel %vm528_vm2, %v903_v23, %v907_v0  ;;  %v5608_v23 = vshrl.u32 %v5410_v45, 16 }
 0x1a1   : > { %v2656_v14 = vpop.f32.mrf.mxu2 }
 0x1a2   : > { %v2657_v38 = vadd.f32 %v2656_v14, %v5335_v43  ;;  %v4488_v43 = vld [vmem:[%s6075_s2 + $0x468] sm:$0xff]  ;;  %v909_v63 = vrot.slane %v5608_v23, 1 }
 0x1a3   : > { %v2710_v35 = vpop.f32.mrf.mxu3  ;;  %v2761_v58 = vpop.f32.mrf.mxu0  ;;  %3233 = vmatpush.bf16.msra.mxu1 %v4488_v43 }
 0x1a4   : > { %v2711_v44 = vadd.f32 %v2710_v35, %v2657_v38  ;;  %v2762_v41 = vadd.f32 %v2761_v58, %v2708_v61  ;;  %v2815_v54 = vpop.f32.mrf.mxu1  ;;  %v4479_v38 = vld [vmem:[%s6075_s2 + $0x420] sm:$0xff]  ;;  %v807_v58 = vrot.slane %v5605_v42, 1 }
 0x1a5   : > { %v4487_v35 = vld [vmem:[%s6075_s2 + $0x460] sm:$0xff]  ;;  %3180 = vmatpush.bf16.msra.mxu0 %v4479_v38 }
 0x1a6   : > { %v5581_v28 = vadd.f32 %v2815_v54, %v2762_v41  ;;  %v911_v41 = vor.u32 %v910_v1, %v909_v63 }
 0x1a7   : > { %3234 = vmatpush.bf16.msra.mxu1 %v4487_v35 }
 0x1a9   : > { %v2658_v59 = vpop.f32.mrf.mxu2 }
 0x1aa   : > { %v2659_v15 = vadd.f32 %v2658_v59, %v5345_v56  ;;  %v4471_v56 = vld [vmem:[%s6075_s2 + $0x3e0] sm:$0xff] }
 0x1ab   : > { %v2712_v7 = vpop.f32.mrf.mxu3  ;;  %v2764_v6 = vpop.f32.mrf.mxu0  ;;  %3126 = vmatpush.bf16.msra.mxu3 %v4471_v56 }
 0x1ac   : > { %v2713_v25 = vadd.f32 %v2712_v7, %v2659_v15  ;;  %v2765_v10 = vadd.f32 %v2764_v6, %v2711_v44  ;;  %v2818_v26 = vpop.f32.mrf.mxu1  ;;  %v865_v44 = vrot.slane %v5410_v45, 1  ;;  %v912_v7 = vsel %vm528_vm2, %v907_v0, %v911_v41  ;;  %v4470_v45 = vld [vmem:[%s6075_s2 + $0x3d8] sm:$0xff] }
 0x1ad   : > { %v5643_v0 = vshrl.u32 %v5437_v53, 16 }
 0x1ae   : > { %v5598_v24 = vadd.f32 %v2818_v26, %v2765_v10  ;;  %2871 = vmatmul.bf16.gmra.mxu2 %v5591_v5  ;;  %2974 = vmatmul.bf16.gmra.mxu0 %v864_v13  ;;  %v866_v36 = vsel %vm487_vm1, %v863_v22, %v865_v44  ;;  %v5640_v22 = vshll.u32 %v5437_v53, 16 }
 0x1af   : > { %3028 = vmatmul.bf16.gmra.mxu1 %v908_v34  ;;  %3127 = vmatpush.bf16.msra.mxu3 %v4470_v45 }
 0x1b0   : > { %2925 = vmatmul.bf16.gmra.mxu3 %v864_v13 }
 0x1b1   : > { %v2661_v8 = vpop.f32.mrf.mxu2 }
 0x1b2   : > { %v2662_v19 = vadd.f32 %v2661_v8, %v5360_v17  ;;  %v803_v17 = vor.u32 %v5573_v29, %v799_v30  ;;  %v913_v8 = vrot.slane %v5643_v0, 1 }
 0x1b3   : > { %v2715_v39 = vpop.f32.mrf.mxu3  ;;  %v2766_v11 = vpop.f32.mrf.mxu0 }
 0x1b4   : > { %v2716_v61 = vadd.f32 %v2715_v39, %v2662_v19  ;;  %v2767_v62 = vadd.f32 %v2766_v11, %v2713_v25  ;;  %v2820_v21 = vpop.f32.mrf.mxu1  ;;  %v5626_v43 = vsel %vm401_vm0, %v803_v17, %v807_v58  ;;  %v914_v19 = vrot.slane %v5640_v22, 2  ;;  %v4478_v11 = vld [vmem:[%s6075_s2 + $0x418] sm:$0xff] }
 0x1b5   : > { %3181 = vmatpush.bf16.msra.mxu0 %v4478_v11 }
 0x1b6   : > { %v5613_v14 = vadd.f32 %v2820_v21, %v2767_v62  ;;  %v815_v62 = vrot.slane %v5640_v22, 1  ;;  %v867_v21 = vrot.slane %v5437_v53, 1  ;;  %v915_v63 = vor.u32 %v914_v19, %v913_v8  ;;  %v4469_v53 = vld [vmem:[%s6075_s2 + $0x3d0] sm:$0xff] }
 0x1b7   : > { %3128 = vmatpush.bf16.msra.mxu3 %v4469_v53 }
 0x1b9   : > { %v2663_v54 = vpop.f32.mrf.mxu2 }
 0x1ba   : > { %v2664_v18 = vadd.f32 %v2663_v54, %v5373_v12  ;;  %v4462_v12 = vld [vmem:[%s6075_s2 + $0x398] sm:$0xff] }
 0x1bb   : > { %v2717_v3 = vpop.f32.mrf.mxu3  ;;  %v2769_v27 = vpop.f32.mrf.mxu0  ;;  %3073 = vmatpush.bf16.msra.mxu2 %v4462_v12 }
 0x1bc   : > { %v2718_v59 = vadd.f32 %v2717_v3, %v2664_v18  ;;  %v2770_v15 = vadd.f32 %v2769_v27, %v2716_v61  ;;  %v2823_v30 = vpop.f32.mrf.mxu1  ;;  %v4486_v61 = vld [vmem:[%s6075_s2 + $0x458] sm:$0xff]  ;;  %v868_v18 = vsel %vm487_vm1, %v865_v44, %v867_v21  ;;  %v5675_v44 = vshll.u32 %v5469_v4, 16 }
 0x1bd   : > { %3235 = vmatpush.bf16.msra.mxu1 %v4486_v61 }
 0x1be   : > { %v5630_v6 = vadd.f32 %v2823_v30, %v2770_v15  ;;  %2876 = vmatmul.bf16.gmra.mxu2 %v5626_v43  ;;  %2979 = vmatmul.bf16.gmra.mxu0 %v866_v36  ;;  %v823_v8 = vrot.slane %v5675_v44, 1 }
 0x1bf   : > { %3033 = vmatmul.bf16.gmra.mxu1 %v912_v7 }
 0x1c0   : > { %2930 = vmatmul.bf16.gmra.mxu3 %v866_v36  ;;  %v916_v36 = vsel %vm528_vm2, %v911_v41, %v915_v63  ;;  %v5678_v41 = vshrl.u32 %v5469_v4, 16 }
 0x1c1   : > { %v2666_v13 = vpop.f32.mrf.mxu2 }
 0x1c2   : > { %v2667_v25 = vadd.f32 %v2666_v13, %v5388_v48  ;;  %v811_v48 = vor.u32 %v5608_v23, %v807_v58 }
 0x1c3   : > { %v2720_v10 = vpop.f32.mrf.mxu3  ;;  %v2771_v26 = vpop.f32.mrf.mxu0 }
 0x1c4   : > { %v2721_v34 = vadd.f32 %v2720_v10, %v2667_v25  ;;  %v2772_v9 = vadd.f32 %v2771_v26, %v2718_v59  ;;  %v2825_v56 = vpop.f32.mrf.mxu1  ;;  %v5661_v54 = vsel %vm401_vm0, %v811_v48, %v815_v62  ;;  %v917_v10 = vrot.slane %v5678_v41, 1 }
 0x1c5   : > { %v918_v26 = vrot.slane %v5675_v44, 2 }
 0x1c6   : > { %v5648_v39 = vadd.f32 %v2825_v56, %v2772_v9  ;;  %v4477_v9 = vld [vmem:[%s6075_s2 + $0x410] sm:$0xff]  ;;  %v819_v56 = vor.u32 %v5643_v0, %v815_v62 }
 0x1c7   : > { %v919_v19 = vor.u32 %v918_v26, %v917_v10  ;;  %3182 = vmatpush.bf16.msra.mxu0 %v4477_v9  ;;  %v827_v10 = vor.u32 %v5678_v41, %v823_v8  ;;  %v871_v26 = vrot.slane %v5500_v49, 1 }
 0x1c9   : > { %v2668_v1 = vpop.f32.mrf.mxu2  ;;  %v920_v62 = vsel %vm528_vm2, %v915_v63, %v919_v19  ;;  %v5710_v63 = vshrl.u32 %v5500_v49, 16 }
 0x1ca   : > { %v2669_v38 = vadd.f32 %v2668_v1, %v5401_v57  ;;  %v4461_v57 = vld [vmem:[%s6075_s2 + $0x390] sm:$0xff] }
 0x1cb   : > { %v2722_v35 = vpop.f32.mrf.mxu3  ;;  %v2774_v17 = vpop.f32.mrf.mxu0  ;;  %3074 = vmatpush.bf16.msra.mxu2 %v4461_v57 }
 0x1cc   : > { %v2723_v3 = vadd.f32 %v2722_v35, %v2669_v38  ;;  %v2775_v27 = vadd.f32 %v2774_v17, %v2721_v34  ;;  %v2828_v58 = vpop.f32.mrf.mxu1  ;;  %v5693_v38 = vsel %vm401_vm0, %v819_v56, %v823_v8 }
 0x1ce   : > { %v5665_v59 = vadd.f32 %v2828_v58, %v2775_v27  ;;  %2881 = vmatmul.bf16.gmra.mxu2 %v5661_v54  ;;  %2984 = vmatmul.bf16.gmra.mxu0 %v868_v18 }
 0x1cf   : > { %3038 = vmatmul.bf16.gmra.mxu1 %v916_v36 }
 0x1d0   : > { %2935 = vmatmul.bf16.gmra.mxu3 %v868_v18 }
 0x1d1   : > { %v2671_v15 = vpop.f32.mrf.mxu2 }
 0x1d2   : > { %v2672_v30 = vadd.f32 %v2671_v15, %v5416_v2  ;;  %v869_v2 = vrot.slane %v5469_v4, 1  ;;  %v4485_v4 = vld [vmem:[%s6075_s2 + $0x450] sm:$0xff] }
 0x1d3   : > { %v2725_v7 = vpop.f32.mrf.mxu3  ;;  %v2776_v12 = vpop.f32.mrf.mxu0  ;;  %3236 = vmatpush.bf16.msra.mxu1 %v4485_v4 }
 0x1d4   : > { %v2726_v45 = vadd.f32 %v2725_v7, %v2672_v30  ;;  %v2777_v13 = vadd.f32 %v2776_v12, %v2723_v3  ;;  %v2830_v25 = vpop.f32.mrf.mxu1  ;;  %v870_v35 = vsel %vm487_vm1, %v867_v21, %v869_v2  ;;  %v5707_v21 = vshll.u32 %v5500_v49, 16  ;;  %v4476_v49 = vld [vmem:[%s6075_s2 + $0x408] sm:$0xff] }
 0x1d5   : > { %v921_v12 = vrot.slane %v5710_v63, 1  ;;  %3183 = vmatpush.bf16.msra.mxu0 %v4476_v49 }
 0x1d6   : > { %v5683_v34 = vadd.f32 %v2830_v25, %v2777_v13  ;;  %v4468_v13 = vld [vmem:[%s6075_s2 + $0x3c8] sm:$0xff] }
 0x1d7   : > { %3129 = vmatpush.bf16.msra.mxu3 %v4468_v13 }
 0x1d9   : > { %v2673_v11 = vpop.f32.mrf.mxu2 }
 0x1da   : > { %v2674_v61 = vadd.f32 %v2673_v11, %v5431_v46  ;;  %v4460_v46 = vld [vmem:[%s6075_s2 + $0x388] sm:$0xff] }
 0x1db   : > { %v2727_v48 = vpop.f32.mrf.mxu3  ;;  %v2779_v1 = vpop.f32.mrf.mxu0  ;;  %3075 = vmatpush.bf16.msra.mxu2 %v4460_v46 }
 0x1dc   : > { %v2728_v17 = vadd.f32 %v2727_v48, %v2674_v61  ;;  %v2780_v18 = vadd.f32 %v2779_v1, %v2726_v45  ;;  %v2833_v3 = vpop.f32.mrf.mxu1  ;;  %v922_v45 = vrot.slane %v5707_v21, 2 }
 0x1de   : > { %v5700_v27 = vadd.f32 %v2833_v3, %v2780_v18  ;;  %2886 = vmatmul.bf16.gmra.mxu2 %v5693_v38  ;;  %2989 = vmatmul.bf16.gmra.mxu0 %v870_v35  ;;  %v923_v9 = vor.u32 %v922_v45, %v921_v12  ;;  %v4459_v12 = vld [vmem:[%s6075_s2 + $0x380] sm:$0xff] }
 0x1df   : > { %3043 = vmatmul.bf16.gmra.mxu1 %v920_v62  ;;  %3076 = vmatpush.bf16.msra.mxu2 %v4459_v12  ;;  %v1034_v12 = vshll.u32 %v5626_v43, 16 }
 0x1e0   : > { %2940 = vmatmul.bf16.gmra.mxu3 %v870_v35  ;;  %v872_v35 = vsel %vm487_vm1, %v869_v2, %v871_v26  ;;  %v924_v8 = vsel %vm528_vm2, %v919_v19, %v923_v9  ;;  %v5739_v2 = vshll.u32 %v5530_v37, 16  ;;  %v5742_v19 = vshrl.u32 %v5530_v37, 16 }
 0x1e1   : > { %v2676_v58 = vpop.f32.mrf.mxu2 }
 0x1e2   : > { %v2677_v36 = vadd.f32 %v2676_v58, %v5443_v20  ;;  %v831_v20 = vrot.slane %v5707_v21, 1 }
 0x1e3   : > { %v2730_v57 = vpop.f32.mrf.mxu3  ;;  %v2781_v53 = vpop.f32.mrf.mxu0 }
 0x1e4   : > { %v2731_v15 = vadd.f32 %v2730_v57, %v2677_v36  ;;  %v2782_v30 = vadd.f32 %v2781_v53, %v2728_v17  ;;  %v2835_v7 = vpop.f32.mrf.mxu1  ;;  %v5725_v1 = vsel %vm401_vm0, %v827_v10, %v831_v20  ;;  %v835_v13 = vor.u32 %v5710_v63, %v831_v20 }
 0x1e5   : > { %v839_v10 = vrot.slane %v5739_v2, 1 }
 0x1e6   : > { %v5718_v25 = vadd.f32 %v2835_v7, %v2782_v30  ;;  %v925_v30 = vrot.slane %v5742_v19, 1  ;;  %v926_v7 = vrot.slane %v5739_v2, 2 }
 0x1e9   : > { %v2678_v56 = vpop.f32.mrf.mxu2 }
 0x1ea   : > { %v2679_v11 = vadd.f32 %v2678_v56, %v5457_v16  ;;  %v4484_v16 = vld [vmem:[%s6075_s2 + $0x448] sm:$0xff]  ;;  %v873_v56 = vrot.slane %v5530_v37, 1 }
 0x1eb   : > { %v2732_v61 = vpop.f32.mrf.mxu3  ;;  %v2784_v48 = vpop.f32.mrf.mxu0  ;;  %3237 = vmatpush.bf16.msra.mxu1 %v4484_v16 }
 0x1ec   : > { %v2733_v17 = vadd.f32 %v2732_v61, %v2679_v11  ;;  %v2785_v18 = vadd.f32 %v2784_v48, %v2731_v15  ;;  %v2838_v3 = vpop.f32.mrf.mxu1  ;;  %v5758_v11 = vor.u32 %v926_v7, %v925_v30  ;;  %v5761_v61 = vld [vmem:[%s5299_s29 + $0x48] sm:$0xff]   ;;  %v1026_v30 = vshll.u32 %v5591_v5, 16 }
 0x1ed   : > { %v4501_v20 = vunpack.c.l.b16 %v5761_v61  ;;  %v1031_v7 = vshrl.u32 %v5626_v43, 16 }
 0x1ee   : > { %v5732_v62 = vadd.f32 %v2838_v3, %v2785_v18  ;;  %2891 = vmatmul.bf16.gmra.mxu2 %v5725_v1  ;;  %2994 = vmatmul.bf16.gmra.mxu0 %v872_v35  ;;  %v5765_v3 = vsel %vm401_vm0, %v835_v13, %v839_v10 }
 0x1ef   : > { %3048 = vmatmul.bf16.gmra.mxu1 %v924_v8  ;;  %v874_v8 = vsel %vm487_vm1, %v871_v26, %v873_v56  ;;  %v772_v26 = vpack.c.b16 %v4501_v20, %v4501_v20 }
 0x1f0   : > { %2945 = vmatmul.bf16.gmra.mxu3 %v872_v35 }
 0x1f1   : > { %v2681_v4 = vpop.f32.mrf.mxu2 }
 0x1f2   : > { %v2682_v46 = vadd.f32 %v2681_v4, %v5474_v31  ;;  %v4467_v31 = vld [vmem:[%s6075_s2 + $0x3c0] sm:$0xff] }
 0x1f3   : > { %v2735_v58 = vpop.f32.mrf.mxu3  ;;  %v2786_v36 = vpop.f32.mrf.mxu0  ;;  %3130 = vmatpush.bf16.msra.mxu3 %v4467_v31 }
 0x1f4   : > { %v2736_v57 = vadd.f32 %v2735_v58, %v2682_v46  ;;  %v2787_v53 = vadd.f32 %v2786_v36, %v2733_v17  ;;  %v2840_v15 = vpop.f32.mrf.mxu1  ;;  %v928_v46 = vsel %vm528_vm2, %v923_v9, %v5758_v11  ;;  %v4483_v36 = vld [vmem:[%s6075_s2 + $0x440] sm:$0xff]  ;;  %v5784_v9 = vshll.u32 %v5761_v61, 16 }
 0x1f5   : > { %3238 = vmatpush.bf16.msra.mxu1 %v4483_v36  ;;  %v1036_v36 = vrot.slane %v1034_v12, 3 }
 0x1f6   : > { %v5750_v45 = vadd.f32 %v2840_v15, %v2787_v53  ;;  %v1023_v53 = vshrl.u32 %v5591_v5, 16  ;;  %v1028_v5 = vrot.slane %v1026_v30, 3 }
 0x1f8   : > { %6086 = vst [vmem:[#allocation2_spill] sm:$0xff] %v5750_v45 }
 0x1f9   : > { %v2683_v48 = vpop.f32.mrf.mxu2 }
 0x1fa   : > { %v2684_v35 = vadd.f32 %v2683_v48, %v5486_v50  ;;  %v4475_v50 = vld [vmem:[%s6075_s2 + $0x400] sm:$0xff] }
 0x1fb   : > { %v2737_v17 = vpop.f32.mrf.mxu3  ;;  %v2789_v18 = vpop.f32.mrf.mxu0  ;;  %3184 = vmatpush.bf16.msra.mxu0 %v4475_v50  ;;  %v1033_v50 = vrot.slane %v1031_v7, 2 }
 0x1fc   : > { %v2738_v49 = vadd.f32 %v2737_v17, %v2684_v35  ;;  %v2790_v16 = vadd.f32 %v2789_v18, %v2736_v57  ;;  %v2843_v4 = vpop.f32.mrf.mxu1  ;;  %v5781_v57 = vshrl.u32 %v5761_v61, 16  ;;  %v845_v35 = vshll.u32 %v772_v26, 16 }
 0x1fe   : > { %v5771_v58 = vadd.f32 %v2843_v4, %v2790_v16  ;;  %2896 = vmatmul.bf16.gmra.mxu2 %v5765_v3  ;;  %2999 = vmatmul.bf16.gmra.mxu0 %v874_v8  ;;  %6088 = vst [vmem:[#allocation4_spill] sm:$0xff] %v5781_v57  ;;  %v932_v20 = vrot.slane %v5781_v57, 1  ;;  %v935_v16 = vrot.slane %v5784_v9, 2  ;;  %v1025_v4 = vrot.slane %v1023_v53, 2 }
 0x1ff   : > { %3053 = vmatmul.bf16.gmra.mxu1 %v928_v46  ;;  %v5794_v46 = vld [vmem:[%s5299_s29 + $0x50] sm:$0xff]   ;;  %v847_v43 = vrot.slane %v845_v35, 1  ;;  %v1037_v53 = vor.u32 %v1036_v36, %v1033_v50 }
 0x200   : > { %6087 = vst [vmem:[#allocation3_spill] sm:$0xff] %v5771_v58  ;;  %2950 = vmatmul.bf16.gmra.mxu3 %v874_v8  ;;  %v1029_v45 = vor.u32 %v1028_v5, %v1025_v4 }
 0x201   : > { %v2686_v15 = vpop.f32.mrf.mxu2 }
 0x202   : > { %v2687_v31 = vadd.f32 %v2686_v15, %v5503_v32  ;;  %v5799_v32 = vor.u32 %v5742_v19, %v839_v10  ;;  %v875_v15 = vrot.slane %v772_v26, 1 }
 0x203   : > { %v2740_v13 = vpop.f32.mrf.mxu3  ;;  %v2791_v48 = vpop.f32.mrf.mxu0 }
 0x204   : > { %v2741_v17 = vadd.f32 %v2740_v13, %v2687_v31  ;;  %v2792_v18 = vadd.f32 %v2791_v48, %v2738_v49  ;;  %v2845_v8 = vpop.f32.mrf.mxu1  ;;  %v892_v49 = vrot.slane %v5761_v61, 1  ;;  %v936_v31 = vor.u32 %v935_v16, %v932_v20 }
 0x205   : > { %v4505_v13 = vunpack.c.l.b16 %v5794_v46  ;;  %v848_v12 = vsel %vm401_vm0, %v5799_v32, %v847_v43  ;;  %v876_v10 = vsel %vm487_vm1, %v873_v56, %v875_v15 }
 0x206   : > { %v5796_v58 = vadd.f32 %v2845_v8, %v2792_v18  ;;  %v893_v35 = vsel %vm487_vm1, %v873_v56, %v892_v49  ;;  %v937_v20 = vsel %vm528_vm2, %v5758_v11, %v936_v31 }
 0x207   : > { %v5810_v16 = vpack.c.b16 %v4505_v13, %v4505_v13 }
 0x209   : > { %v2688_v48 = vpop.f32.mrf.mxu2  ;;  %6089 = vst [vmem:[#allocation5_spill] sm:$0xff] %v5810_v16  ;;  %v939_v56 = vshrl.u32 %v5810_v16, 16 }
 0x20a   : > { %v2689_v57 = vadd.f32 %v2688_v48, %v5516_v33  ;;  %v5815_v33 = vsel %vm628_vm4, %v1029_v45, %v1037_v53  ;;  %v1044_v48 = vshrl.u32 %v5661_v54, 16 }
 0x20b   : > { %v2742_v30 = vpop.f32.mrf.mxu3  ;;  %v2794_v7 = vpop.f32.mrf.mxu0  ;;  %v941_v13 = vrot.slane %v939_v56, 1 }
 0x20c   : > { %v2743_v26 = vadd.f32 %v2742_v30, %v2689_v57  ;;  %v2795_v18 = vadd.f32 %v2794_v7, %v2741_v17  ;;  %v2848_v8 = vpop.f32.mrf.mxu1  ;;  %v942_v57 = vshll.u32 %v5810_v16, 16  ;;  %v1047_v30 = vshll.u32 %v5661_v54, 16 }
 0x20e   : > { %v5812_v4 = vadd.f32 %v2848_v8, %v2795_v18  ;;  %2901 = vmatmul.bf16.gmra.mxu2 %v848_v12  ;;  %3004 = vmatmul.bf16.gmra.mxu0 %v893_v35  ;;  %v944_v45 = vrot.slane %v942_v57, 2  ;;  %v894_v12 = vrot.slane %v5810_v16, 1  ;;  %v4624_v18 = vld [vmem:[%s5299_s29 + $0x10] sm:$0xff] }
 0x20f   : > { %3058 = vmatmul.bf16.gmra.mxu1 %v937_v20  ;;  %v4625_v20 = vld [vmem:[%s5299_s29 + $0x18] sm:$0xff] }
 0x210   : > { %2955 = vmatmul.bf16.gmra.mxu3 %v876_v10  ;;  %v4623_v10 = vld [vmem:[%s5299_s29 + $0x8] sm:$0xff]  ;;  %v945_v8 = vor.u32 %v944_v45, %v941_v13  ;;  %v895_v54 = vsel %vm487_vm1, %v892_v49, %v894_v12  ;;  %v1016_v12 = vrot.slane %v5542_v55, 3 }
 0x211   : > { %v2862_v17 = vpop.f32.mrf.mxu2  ;;  %v956_v35 = vrot.slane %v4623_v10, 2 }
 0x212   : > { %v2863_v11 = vadd.f32 %v2862_v17, %v5534_v51  ;;  %v957_v51 = vrot.slane %v4624_v18, 2  ;;  %v959_v17 = vrot.slane %v4625_v20, 2  ;;  %v946_v10 = vsel %vm528_vm2, %v936_v31, %v945_v8 }
 0x213   : > { %v2916_v5 = vpop.f32.mrf.mxu3  ;;  %v2796_v50 = vpop.f32.mrf.mxu0  ;;  %v1015_v31 = vrot.slane %v5545_v52, 2  ;;  %v1060_v20 = vshll.u32 %v5693_v38, 16 }
 0x214   : > { %v2917_v36 = vadd.f32 %v2916_v5, %v2863_v11  ;;  %v2797_v43 = vadd.f32 %v2796_v50, %v2743_v26  ;;  %v2850_v15 = vpop.f32.mrf.mxu1  ;;  %v1046_v11 = vrot.slane %v1044_v48, 2  ;;  %v1049_v26 = vrot.slane %v1047_v30, 3 }
 0x215   : > { %v960_v13 = vsel %vm587_vm3, %v957_v51, %v959_v17 }
 0x216   : > { %v5822_v7 = vadd.f32 %v2850_v15, %v2797_v43  ;;  %v958_v43 = vsel %vm587_vm3, %v956_v35, %v957_v51  ;;  %v1050_v45 = vor.u32 %v1049_v26, %v1046_v11 }
 0x218   : > { %6090 = vst [vmem:[#allocation6_spill] sm:$0xff] %v5822_v7 }
 0x219   : > { %v2864_v5 = vpop.f32.mrf.mxu2 }
 0x21a   : > { %v2865_v56 = vadd.f32 %v2864_v5, %v5553_v60  ;;  %v5836_v60 = vsel %vm628_vm4, %v1037_v53, %v1050_v45  ;;  %v1057_v53 = vshrl.u32 %v5693_v38, 16  ;;  %v4626_v5 = vld [vmem:[%s5299_s29 + $0x20] sm:$0xff] }
 0x21b   : > { %v2918_v57 = vpop.f32.mrf.mxu3  ;;  %v2970_v50 = vpop.f32.mrf.mxu0 }
 0x21c   : > { %v2919_v15 = vadd.f32 %v2918_v57, %v2865_v56  ;;  %v2971_v7 = vadd.f32 %v2970_v50, %v2917_v36  ;;  %v3024_v16 = vpop.f32.mrf.mxu1  ;;  %v961_v56 = vrot.slane %v4626_v5, 2  ;;  %v1059_v52 = vrot.slane %v1057_v53, 2  ;;  %v4627_v53 = vld [vmem:[%s5299_s29 + $0x28] sm:$0xff] }
 0x21d   : > { %v1062_v57 = vrot.slane %v1060_v20, 3  ;;  %v963_v20 = vrot.slane %v4627_v53, 2 }
 0x21e   : > { %v5833_v18 = vadd.f32 %v3024_v16, %v2971_v7  ;;  %3009 = vmatmul.bf16.gmra.mxu0 %v895_v54  ;;  %3077 = vmatmul.bf16.vlgmr.msra.gmra.mxu2 %v958_v43  ;;  %v1018_v16 = vrot.slane %v5573_v29, 2  ;;  %v1019_v7 = vrot.slane %v5570_v40, 3  ;;  %v962_v38 = vsel %vm587_vm3, %v959_v17, %v961_v56 }
 0x21f   : > { %3063 = vmatmul.bf16.gmra.mxu1 %v946_v10  ;;  %v1040_v17 = vrot.slane %v5605_v42, 3 }
 0x220   : > { %3131 = vmatmul.bf16.vlgmr.msra.gmra.mxu3 %v960_v13  ;;  %v1020_v26 = vor.u32 %v1019_v7, %v1018_v16  ;;  %v1039_v16 = vrot.slane %v5608_v23, 2 }
 0x221   : > { %v2867_v49 = vpop.f32.mrf.mxu2 }
 0x222   : > { %v2868_v48 = vadd.f32 %v2867_v49, %v5567_v47  ;;  %v1017_v47 = vor.u32 %v1016_v12, %v1015_v31  ;;  %v1063_v49 = vor.u32 %v1062_v57, %v1059_v52 }
 0x223   : > { %v2921_v36 = vpop.f32.mrf.mxu3  ;;  %v2972_v30 = vpop.f32.mrf.mxu0 }
 0x224   : > { %v2922_v35 = vadd.f32 %v2921_v36, %v2868_v48  ;;  %v2973_v51 = vadd.f32 %v2972_v30, %v2919_v15  ;;  %v3026_v8 = vpop.f32.mrf.mxu1  ;;  %v1021_v54 = vsel %vm628_vm4, %v1017_v47, %v1020_v26 }
 0x226   : > { %v5845_v11 = vadd.f32 %v3026_v8, %v2973_v51  ;;  %v1070_v51 = vshrl.u32 %v5725_v1, 16  ;;  %v1073_v8 = vshll.u32 %v5725_v1, 16 }
 0x228   : > { %v1072_v47 = vrot.slane %v1070_v51, 2 }
 0x229   : > { %v2869_v55 = vpop.f32.mrf.mxu2 }
 0x22a   : > { %v2870_v29 = vadd.f32 %v2869_v55, %v5581_v28  ;;  %v5855_v28 = vsel %vm628_vm4, %v1050_v45, %v1063_v49  ;;  %v1041_v45 = vor.u32 %v1040_v17, %v1039_v16  ;;  %v1086_v16 = vshll.u32 %v5765_v3, 16 }
 0x22b   : > { %v2923_v50 = vpop.f32.mrf.mxu3  ;;  %v2975_v40 = vpop.f32.mrf.mxu0 }
 0x22c   : > { %v2924_v43 = vadd.f32 %v2923_v50, %v2870_v29  ;;  %v2976_v15 = vadd.f32 %v2975_v40, %v2922_v35  ;;  %v3029_v10 = vpop.f32.mrf.mxu1  ;;  %v1042_v42 = vsel %vm628_vm4, %v1020_v26, %v1041_v45  ;;  %v964_v40 = vsel %vm587_vm3, %v961_v56, %v963_v20 }
 0x22d   : > { %v1053_v56 = vrot.slane %v5640_v22, 3 }
 0x22e   : > { %v5851_v48 = vadd.f32 %v3029_v10, %v2976_v15  ;;  %3082 = vmatmul.bf16.gmra.mxu2 %v960_v13  ;;  %3185 = vmatmul.bf16.vlgmr.msra.gmra.mxu0 %v1021_v54 }
 0x22f   : > { %3239 = vmatmul.bf16.vlgmr.msra.gmra.mxu1 %v5815_v33 }
 0x230   : > { %3136 = vmatmul.bf16.gmra.mxu3 %v962_v38 }
 0x231   : > { %v2872_v36 = vpop.f32.mrf.mxu2 }
 0x232   : > { %v2873_v30 = vadd.f32 %v2872_v36, %v5598_v24  ;;  %v1075_v24 = vrot.slane %v1073_v8, 3  ;;  %v1052_v36 = vrot.slane %v5643_v0, 2 }
 0x233   : > { %v2926_v31 = vpop.f32.mrf.mxu3  ;;  %v2977_v12 = vpop.f32.mrf.mxu0 }
 0x234   : > { %v2927_v7 = vadd.f32 %v2926_v31, %v2873_v30  ;;  %v2978_v35 = vadd.f32 %v2977_v12, %v2924_v43  ;;  %v3031_v13 = vpop.f32.mrf.mxu1  ;;  %v1076_v1 = vor.u32 %v1075_v24, %v1072_v47 }
 0x236   : > { %v5862_v33 = vadd.f32 %v3031_v13, %v2978_v35 }
 0x239   : > { %v2874_v5 = vpop.f32.mrf.mxu2 }
 0x23a   : > { %v2875_v52 = vadd.f32 %v2874_v5, %v5613_v14  ;;  %v1077_v14 = vsel %vm628_vm4, %v1063_v49, %v1076_v1  ;;  %v4628_v49 = vld [vmem:[%s5299_s29 + $0x30] sm:$0xff] }
 0x23b   : > { %v2928_v23 = vpop.f32.mrf.mxu3  ;;  %v2980_v57 = vpop.f32.mrf.mxu0 }
 0x23c   : > { %v2929_v55 = vadd.f32 %v2928_v23, %v2875_v52  ;;  %v2981_v29 = vadd.f32 %v2980_v57, %v2927_v7  ;;  %v3034_v50 = vpop.f32.mrf.mxu1  ;;  %v965_v7 = vrot.slane %v4628_v49, 2 }
 0x23e   : > { %v5868_v54 = vadd.f32 %v3034_v50, %v2981_v29  ;;  %3087 = vmatmul.bf16.gmra.mxu2 %v962_v38  ;;  %3190 = vmatmul.bf16.gmra.mxu0 %v1042_v42  ;;  %v1083_v38 = vshrl.u32 %v5765_v3, 16  ;;  %v966_v5 = vsel %vm587_vm3, %v963_v20, %v965_v7  ;;  %v1065_v20 = vrot.slane %v5678_v41, 2 }
 0x23f   : > { %3244 = vmatmul.bf16.gmra.mxu1 %v5836_v60  ;;  %v1054_v60 = vor.u32 %v1053_v56, %v1052_v36 }
 0x240   : > { %3141 = vmatmul.bf16.gmra.mxu3 %v964_v40  ;;  %v1085_v35 = vrot.slane %v1083_v38, 2 }
 0x241   : > { %v2877_v43 = vpop.f32.mrf.mxu2  ;;  %v1055_v22 = vsel %vm628_vm4, %v1041_v45, %v1054_v60 }
 0x242   : > { %v2878_v15 = vadd.f32 %v2877_v43, %v5630_v6  ;;  %v1088_v6 = vrot.slane %v1086_v16, 3 }
 0x243   : > { %v2931_v26 = vpop.f32.mrf.mxu3  ;;  %v2982_v10 = vpop.f32.mrf.mxu0 }
 0x244   : > { %v2932_v30 = vadd.f32 %v2931_v26, %v2878_v15  ;;  %v2983_v31 = vadd.f32 %v2982_v10, %v2929_v55  ;;  %v3036_v12 = vpop.f32.mrf.mxu1  ;;  %v5883_v3 = vor.u32 %v1088_v6, %v1085_v35  ;;  %v1066_v55 = vrot.slane %v5675_v44, 3  ;;  %v4629_v26 = vld [vmem:[%s5299_s29 + $0x38] sm:$0xff] }
 0x245   : > { %v1078_v35 = vrot.slane %v5710_v63, 2 }
 0x246   : > { %v5877_v17 = vadd.f32 %v3036_v12, %v2983_v31  ;;  %v1067_v15 = vor.u32 %v1066_v55, %v1065_v20 }
 0x249   : > { %v2879_v13 = vpop.f32.mrf.mxu2 }
 0x24a   : > { %v2880_v51 = vadd.f32 %v2879_v13, %v5648_v39  ;;  %v1090_v39 = vsel %vm628_vm4, %v1076_v1, %v5883_v3 }
 0x24b   : > { %v2933_v0 = vpop.f32.mrf.mxu3  ;;  %v2985_v8 = vpop.f32.mrf.mxu0 }
 0x24c   : > { %v2934_v53 = vadd.f32 %v2933_v0, %v2880_v51  ;;  %v2986_v47 = vadd.f32 %v2985_v8, %v2932_v30  ;;  %v3039_v24 = vpop.f32.mrf.mxu1  ;;  %v969_v8 = vrot.slane %v5530_v37, 2 }
 0x24e   : > { %v5885_v52 = vadd.f32 %v3039_v24, %v2986_v47  ;;  %3092 = vmatmul.bf16.gmra.mxu2 %v964_v40  ;;  %3195 = vmatmul.bf16.gmra.mxu0 %v1055_v22 }
 0x24f   : > { %3249 = vmatmul.bf16.gmra.mxu1 %v5855_v28  ;;  %v967_v28 = vrot.slane %v4629_v26, 2 }
 0x250   : > { %3146 = vmatmul.bf16.gmra.mxu3 %v966_v5 }
 0x251   : > { %v2882_v23 = vpop.f32.mrf.mxu2  ;;  %v968_v44 = vsel %vm587_vm3, %v965_v7, %v967_v28 }
 0x252   : > { %v2883_v45 = vadd.f32 %v2882_v23, %v5665_v59  ;;  %v1068_v59 = vsel %vm628_vm4, %v1054_v60, %v1067_v15  ;;  %v1079_v60 = vrot.slane %v5707_v21, 3  ;;  %v970_v23 = vsel %vm587_vm3, %v967_v28, %v969_v8 }
 0x253   : > { %v2936_v57 = vpop.f32.mrf.mxu3  ;;  %v2987_v42 = vpop.f32.mrf.mxu0 }
 0x254   : > { %v2937_v29 = vadd.f32 %v2936_v57, %v2883_v45  ;;  %v2988_v50 = vadd.f32 %v2987_v42, %v2934_v53  ;;  %v3041_v40 = vpop.f32.mrf.mxu1  ;;  %v1080_v7 = vor.u32 %v1079_v60, %v1078_v35 }
 0x256   : > { %v5893_v43 = vadd.f32 %v3041_v40, %v2988_v50  ;;  %v1081_v24 = vsel %vm628_vm4, %v1067_v15, %v1080_v7  ;;  %v1091_v50 = vrot.slane %v5742_v19, 2  ;;  %v1092_v40 = vrot.slane %v5739_v2, 3 }
 0x259   : > { %v2884_v10 = vpop.f32.mrf.mxu2 }
 0x25a   : > { %v2885_v1 = vadd.f32 %v2884_v10, %v5683_v34 }
 0x25b   : > { %v2938_v36 = vpop.f32.mrf.mxu3  ;;  %v2990_v56 = vpop.f32.mrf.mxu0 }
 0x25c   : > { %v2939_v30 = vadd.f32 %v2938_v36, %v2885_v1  ;;  %v2991_v31 = vadd.f32 %v2990_v56, %v2937_v29  ;;  %v3044_v41 = vpop.f32.mrf.mxu1  ;;  %v1000_v1 = vshll.u32 %v5794_v46, 16  ;;  %v1093_v36 = vor.u32 %v1092_v40, %v1091_v50 }
 0x25d   : > { %v5922_v56 = vrot.slane %v5761_v61, 2  ;;  %v990_v50 = vrot.slane %v5794_v46, 2 }
 0x25e   : > { %v5899_v12 = vadd.f32 %v3044_v41, %v2991_v31  ;;  %3097 = vmatmul.bf16.gmra.mxu2 %v966_v5  ;;  %3200 = vmatmul.bf16.gmra.mxu0 %v1068_v59  ;;  %v1002_v2 = vrot.slane %v1000_v1, 1  ;;  %v6092_v31 = vld [vmem:[#allocation2_spill] sm:$0xff] }
 0x25f   : > { %3254 = vmatmul.bf16.gmra.mxu1 %v1077_v14  ;;  %v996_v14 = vrot.slane %v5784_v9, 1  ;;  %v972_v61 = vsel %vm587_vm3, %v969_v8, %v5922_v56 }
 0x260   : > { %3151 = vmatmul.bf16.gmra.mxu3 %v968_v44 }
 0x261   : > { %v2887_v38 = vpop.f32.mrf.mxu2  ;;  %v997_v45 = vsel %vm401_vm0, %v5799_v32, %v996_v14 }
 0x262   : > { %v2888_v16 = vadd.f32 %v2887_v38, %v5700_v27  ;;  %v1096_v37 = vshrl.u32 %v997_v45, 16  ;;  %v343_v38 = vld [vmem:[%s5299_s29 + $0x58] sm:$0xf] }
 0x263   : > { %v2941_v49 = vpop.f32.mrf.mxu3  ;;  %v2992_v34 = vpop.f32.mrf.mxu0 }
 0x264   : > { %v2942_v6 = vadd.f32 %v2941_v49, %v2888_v16  ;;  %v2993_v13 = vadd.f32 %v2992_v34, %v2939_v30  ;;  %v3046_v51 = vpop.f32.mrf.mxu1  ;;  %v1098_v28 = vrot.slane %v1096_v37, 2  ;;  %v6091_v30 = vld [vmem:[#allocation4_spill] sm:$0xff]  ;;  %v1094_v49 = vsel %vm628_vm4, %v1080_v7, %v1093_v36 }
 0x265   : > { %v998_v19 = vor.u32 %v996_v14, %v6091_v30 }
 0x266   : > { %v5904_v0 = vadd.f32 %v3046_v51, %v2993_v13  ;;  %v987_v51 = vunpack.c.l.b16 %v343_v38 }
 0x267   : > { %v1003_v13 = vsel %vm401_vm0, %v998_v19, %v1002_v2 }
 0x268   : > { %v1109_v14 = vshrl.u32 %v1003_v13, 16  ;;  %v1112_v7 = vshll.u32 %v1003_v13, 16 }
 0x269   : > { %v2889_v22 = vpop.f32.mrf.mxu2 }
 0x26a   : > { %v2890_v53 = vadd.f32 %v2889_v22, %v5718_v25  ;;  %v1099_v25 = vshll.u32 %v997_v45, 16 }
 0x26b   : > { %v2943_v27 = vpop.f32.mrf.mxu3  ;;  %v2995_v47 = vpop.f32.mrf.mxu0 }
 0x26c   : > { %v2944_v63 = vadd.f32 %v2943_v27, %v2890_v53  ;;  %v2996_v5 = vadd.f32 %v2995_v47, %v2942_v6  ;;  %v3049_v21 = vpop.f32.mrf.mxu1  ;;  %v1101_v10 = vrot.slane %v1099_v25, 3  ;;  %v5937_v27 = vpack.c.b16 %v987_v51, %v987_v51  ;;  %v6093_v47 = vld [vmem:[#allocation3_spill] sm:$0xff] }
 0x26d   : > { %v1114_v25 = vrot.slane %v1112_v7, 3 }
 0x26e   : > { %v5913_v57 = vadd.f32 %v3049_v21, %v2996_v5  ;;  %3102 = vmatmul.bf16.gmra.mxu2 %v968_v44  ;;  %3205 = vmatmul.bf16.gmra.mxu0 %v1081_v24  ;;  %v1105_v5 = vrot.slane %v5784_v9, 3 }
 0x26f   : > { %3259 = vmatmul.bf16.gmra.mxu1 %v1090_v39 }
 0x270   : > { %3156 = vmatmul.bf16.gmra.mxu3 %v970_v23 }
 0x271   : > { %v2892_v42 = vpop.f32.mrf.mxu2 }
 0x272   : > { %v2893_v20 = vadd.f32 %v2892_v42, %v5732_v62  ;;  %v1102_v62 = vor.u32 %v1101_v10, %v1098_v28  ;;  %v1008_v42 = vshll.u32 %v5937_v27, 16 }
 0x273   : > { %v2946_v55 = vpop.f32.mrf.mxu3  ;;  %v2997_v29 = vpop.f32.mrf.mxu0 }
 0x274   : > { %v2947_v15 = vadd.f32 %v2946_v55, %v2893_v20  ;;  %v2998_v32 = vadd.f32 %v2997_v29, %v2944_v63  ;;  %v3051_v26 = vpop.f32.mrf.mxu1  ;;  %v1103_v6 = vsel %vm628_vm4, %v5883_v3, %v1102_v62  ;;  %v1104_v3 = vrot.slane %v6091_v30, 2 }
 0x275   : > { %v1004_v20 = vshrl.u32 %v5794_v46, 16  ;;  %v1010_v9 = vrot.slane %v1008_v42, 1 }
 0x276   : > { %v5919_v39 = vadd.f32 %v3051_v26, %v2998_v32  ;;  %v1106_v29 = vor.u32 %v1105_v5, %v1104_v3  ;;  %v6095_v5 = vld [vmem:[#allocation6_spill] sm:$0xff] }
 0x277   : > { %v1006_v32 = vor.u32 %v1004_v20, %v1002_v2 }
 0x279   : > { %v2894_v59 = vpop.f32.mrf.mxu2  ;;  %v1011_v38 = vsel %vm401_vm0, %v1006_v32, %v1010_v9 }
 0x27a   : > { %v2895_v41 = vadd.f32 %v2894_v59, %v6092_v31  ;;  %v1107_v59 = vsel %vm628_vm4, %v1093_v36, %v1106_v29 }
 0x27b   : > { %v2948_v44 = vpop.f32.mrf.mxu3  ;;  %v3000_v16 = vpop.f32.mrf.mxu0 }
 0x27c   : > { %v2949_v34 = vadd.f32 %v2948_v44, %v2895_v41  ;;  %v3001_v35 = vadd.f32 %v3000_v16, %v2947_v15  ;;  %v3054_v60 = vpop.f32.mrf.mxu1  ;;  %v991_v41 = vsel %vm587_vm3, %v5922_v56, %v990_v50  ;;  %v1125_v16 = vshll.u32 %v1011_v38, 16 }
 0x27e   : > { %v5935_v22 = vadd.f32 %v3054_v60, %v3001_v35  ;;  %3107 = vmatmul.bf16.gmra.mxu2 %v970_v23  ;;  %3210 = vmatmul.bf16.gmra.mxu0 %v1094_v49  ;;  %v1111_v23 = vrot.slane %v1109_v14, 2  ;;  %v1117_v60 = vrot.slane %v1004_v20, 2  ;;  %v1127_v7 = vrot.slane %v1125_v16, 3 }
 0x27f   : > { %3264 = vmatmul.bf16.gmra.mxu1 %v1103_v6  ;;  %v1118_v6 = vrot.slane %v1000_v1, 3 }
 0x280   : > { %3161 = vmatmul.bf16.gmra.mxu3 %v972_v61  ;;  %v1115_v40 = vor.u32 %v1114_v25, %v1111_v23 }
 0x281   : > { %v2897_v53 = vpop.f32.mrf.mxu2 }
 0x282   : > { %v2898_v24 = vadd.f32 %v2897_v53, %v6093_v47  ;;  %v1116_v44 = vsel %vm628_vm4, %v1102_v62, %v1115_v40  ;;  %v6094_v53 = vld [vmem:[#allocation5_spill] sm:$0xff] }
 0x283   : > { %v2951_v8 = vpop.f32.mrf.mxu3  ;;  %v3002_v63 = vpop.f32.mrf.mxu0  ;;  %v973_v47 = vrot.slane %v6094_v53, 2 }
 0x284   : > { %v2952_v21 = vadd.f32 %v2951_v8, %v2898_v24  ;;  %v3003_v45 = vadd.f32 %v3002_v63, %v2949_v34  ;;  %v3056_v37 = vpop.f32.mrf.mxu1  ;;  %v992_v24 = vrot.slane %v5937_v27, 2  ;;  %v1119_v8 = vor.u32 %v1118_v6, %v1117_v60 }
 0x286   : > { %v5944_v55 = vadd.f32 %v3056_v37, %v3003_v45  ;;  %v974_v45 = vsel %vm587_vm3, %v5922_v56, %v973_v47  ;;  %v993_v37 = vsel %vm587_vm3, %v990_v50, %v992_v24  ;;  %v1120_v23 = vsel %vm628_vm4, %v1106_v29, %v1119_v8 }
 0x287   : > { %v1131_v29 = vrot.slane %v1008_v42, 3 }
 0x289   : > { %v2899_v15 = vpop.f32.mrf.mxu2 }
 0x28a   : > { %v2900_v26 = vadd.f32 %v2899_v15, %v5796_v58  ;;  %v1122_v58 = vshrl.u32 %v1011_v38, 16 }
 0x28b   : > { %v2953_v28 = vpop.f32.mrf.mxu3  ;;  %v3005_v10 = vpop.f32.mrf.mxu0 }
 0x28c   : > { %v2954_v30 = vadd.f32 %v2953_v28, %v2900_v26  ;;  %v3006_v19 = vadd.f32 %v3005_v10, %v2952_v21  ;;  %v3059_v31 = vpop.f32.mrf.mxu1  ;;  %v1124_v14 = vrot.slane %v1122_v58, 2 }
 0x28e   : > { %v5955_v2 = vadd.f32 %v3059_v31, %v3006_v19  ;;  %3112 = vmatmul.bf16.gmra.mxu2 %v972_v61  ;;  %3215 = vmatmul.bf16.gmra.mxu0 %v1107_v59  ;;  %v1128_v63 = vor.u32 %v1127_v7, %v1124_v14 }
 0x28f   : > { %3269 = vmatmul.bf16.gmra.mxu1 %v1116_v44 }
 0x290   : > { %3166 = vmatmul.bf16.gmra.mxu3 %v991_v41  ;;  %v1129_v32 = vsel %vm628_vm4, %v1115_v40, %v1128_v63 }
 0x291   : > { %v2902_v49 = vpop.f32.mrf.mxu2 }
 0x292   : > { %v2903_v36 = vadd.f32 %v2902_v49, %v5812_v4  ;;  %v1012_v4 = vshrl.u32 %v5937_v27, 16  ;;  %v5982_v27 = vld [vmem:[%s6076_s3] ss:$0 sm:$0xff] }
 0x293   : > { %v2956_v34 = vpop.f32.mrf.mxu3  ;;  %v3007_v35 = vpop.f32.mrf.mxu0 }
 0x294   : > { %v2957_v62 = vadd.f32 %v2956_v34, %v2903_v36  ;;  %v3008_v13 = vadd.f32 %v3007_v35, %v2954_v30  ;;  %v3061_v51 = vpop.f32.mrf.mxu1  ;;  %v1014_v26 = vor.u32 %v1012_v4, %v1010_v9  ;;  %v1130_v50 = vrot.slane %v1012_v4, 2 }
 0x296   : > { %v5960_v61 = vadd.f32 %v3061_v51, %v3008_v13  ;;  %v1135_v10 = vshrl.u32 %v1014_v26, 16  ;;  %v1138_v59 = vshll.u32 %v1014_v26, 16  ;;  %v1132_v58 = vor.u32 %v1131_v29, %v1130_v50  ;;  %v5989_v51 = vld [vmem:[%s6077_s4] ss:$0 sm:$0xff] }
 0x298   : > { %v1137_v44 = vrot.slane %v1135_v10, 2  ;;  %v1140_v40 = vrot.slane %v1138_v59, 3  ;;  %v1133_v60 = vsel %vm628_vm4, %v1119_v8, %v1132_v58 }
 0x299   : > { %v2904_v3 = vpop.f32.mrf.mxu2 }
 0x29a   : > { %v2905_v21 = vadd.f32 %v2904_v3, %v6095_v5  ;;  %v1141_v16 = vor.u32 %v1140_v40, %v1137_v44 }
 0x29b   : > { %v2958_v46 = vpop.f32.mrf.mxu3  ;;  %v3010_v1 = vpop.f32.mrf.mxu0 }
 0x29c   : > { %v2959_v25 = vadd.f32 %v2958_v46, %v2905_v21  ;;  %v3011_v20 = vadd.f32 %v3010_v1, %v2957_v62  ;;  %v3064_v15 = vpop.f32.mrf.mxu1  ;;  %v1142_v42 = vsel %vm628_vm4, %v1128_v63, %v1141_v16 }
 0x29e   : > { %v5971_v28 = vadd.f32 %v3064_v15, %v3011_v20  ;;  %3117 = vmatmul.bf16.gmra.mxu2 %v974_v45  ;;  %3220 = vmatmul.bf16.gmra.mxu0 %v1120_v23 }
 0x29f   : > { %3274 = vmatmul.bf16.gmra.mxu1 %v1129_v32 }
 0x2a0   : > { %3171 = vmatmul.bf16.gmra.mxu3 %v993_v37 }
 0x2a1   : > { %v3078_v30 = vpop.f32.mrf.mxu2 }
 0x2a2   : > { %v3079_v9 = vadd.f32 %v3078_v30, %v5833_v18 }
 0x2a3   : > { %v3132_v56 = vpop.f32.mrf.mxu3  ;;  %v3012_v19 = vpop.f32.mrf.mxu0 }
 0x2a4   : > { %v3013_v31 = vadd.f32 %v3012_v19, %v2959_v25  ;;  %v3066_v41 = vpop.f32.mrf.mxu1  ;;  %v3133_v36 = vadd.f32 %v3132_v56, %v3079_v9 }
 0x2a6   : > { %v5976_v38 = vadd.f32 %v3066_v41, %v3013_v31 }
 0x2a9   : > { %v3080_v49 = vpop.f32.mrf.mxu2 }
 0x2aa   : > { %v3081_v18 = vadd.f32 %v3080_v49, %v5845_v11 }
 0x2ab   : > { %v3134_v34 = vpop.f32.mrf.mxu3  ;;  %v3186_v35 = vpop.f32.mrf.mxu0 }
 0x2ac   : > { %v3187_v6 = vadd.f32 %v3186_v35, %v3133_v36  ;;  %v3240_v62 = vpop.f32.mrf.mxu1  ;;  %v3135_v53 = vadd.f32 %v3134_v34, %v3081_v18 }
 0x2ae   : > { %v3241_v13 = vadd.f32 %v3240_v62, %v3187_v6  ;;  %3225 = vmatmul.bf16.gmra.mxu0 %v1133_v60 }
 0x2af   : > { %3279 = vmatmul.bf16.gmra.mxu1 %v1142_v42 }
 0x2b0   : > { %v3289_v14 = vmul.f32 %v5982_v27, %v3241_v13 }
 0x2b1   : > { %v3083_v7 = vpop.f32.mrf.mxu2 }
 0x2b2   : > { %v3311_v47 = vadd.f32 %v5989_v51, %v3289_v14  ;;  %v3084_v11 = vadd.f32 %v3083_v7, %v5851_v48 }
 0x2b3   : > { %v3137_v24 = vpop.f32.mrf.mxu3  ;;  %v3188_v8 = vpop.f32.mrf.mxu0 }
 0x2b4   : > { %v3329_v63 = vmax.f32 %v3311_v47, 0.0  ;;  %v3189_v4 = vadd.f32 %v3188_v8, %v3135_v53  ;;  %v3242_v3 = vpop.f32.mrf.mxu1  ;;  %v3138_v23 = vadd.f32 %v3137_v24, %v3084_v11 }
 0x2b6   : > { %v3365_v5 = vrot.slane %v3329_v63, 2  ;;  %v3366_v21 = vrot.slane %v3329_v63, 4  ;;  %v3367_v46 = vrot.slane %v3329_v63, 6  ;;  %3413 = vst [vmem:[#allocation1] ss:$4 sm:$0xff] %v3329_v63  ;;  %v3243_v1 = vadd.f32 %v3242_v3, %v3189_v4 }
 0x2b8   : > { %3415 = vst [vmem:[#allocation1 + $0x1] ss:$4 sm:$0xff] %v3365_v5  ;;  %v3290_v45 = vmul.f32 %v5982_v27, %v3243_v1 }
 0x2b9   : > { %3417 = vst [vmem:[#allocation1 + $0x2] ss:$4 sm:$0xff] %v3366_v21  ;;  %v3085_v37 = vpop.f32.mrf.mxu2 }
 0x2ba   : > { %3419 = vst [vmem:[#allocation1 + $0x3] ss:$4 sm:$0xff] %v3367_v46  ;;  %v3312_v25 = vadd.f32 %v5989_v51, %v3290_v45  ;;  %v3086_v10 = vadd.f32 %v3085_v37, %v5862_v33 }
 0x2bb   : > { %v3139_v20 = vpop.f32.mrf.mxu3  ;;  %v3191_v15 = vpop.f32.mrf.mxu0 }
 0x2bc   : > { %v3330_v48 = vmax.f32 %v3312_v25, 0.0  ;;  %v3192_v32 = vadd.f32 %v3191_v15, %v3138_v23  ;;  %v3245_v26 = vpop.f32.mrf.mxu1  ;;  %v3140_v31 = vadd.f32 %v3139_v20, %v3086_v10 }
 0x2be   : > { %v3368_v59 = vrot.slane %v3330_v48, 2  ;;  %v3369_v30 = vrot.slane %v3330_v48, 4  ;;  %3421 = vst [vmem:[#allocation1 + $0x20] ss:$4 sm:$0xff] %v3330_v48  ;;  %v3246_v56 = vadd.f32 %v3245_v26, %v3192_v32  ;;  %v3370_v19 = vrot.slane %v3330_v48, 6 }
 0x2c0   : > { %3423 = vst [vmem:[#allocation1 + $0x21] ss:$4 sm:$0xff] %v3368_v59  ;;  %v3291_v50 = vmul.f32 %v5982_v27, %v3246_v56 }
 0x2c1   : > { %3425 = vst [vmem:[#allocation1 + $0x22] ss:$4 sm:$0xff] %v3369_v30  ;;  %v3088_v29 = vpop.f32.mrf.mxu2  ;;  %v3428_v60 = vld.sshfl [vmem:[#allocation1] sm:$0xff pattern:$0x73625140] }
 0x2c2   : > { %v3313_v41 = vadd.f32 %v5989_v51, %v3291_v50  ;;  %3427 = vst [vmem:[#allocation1 + $0x23] ss:$4 sm:$0xff] %v3370_v19  ;;  %v3089_v16 = vadd.f32 %v3088_v29, %v5868_v54 }
 0x2c3   : > { %v3142_v44 = vpop.f32.mrf.mxu3  ;;  %v3193_v40 = vpop.f32.mrf.mxu0 }
 0x2c4   : > { %v3331_v33 = vmax.f32 %v3313_v41, 0.0  ;;  %v3194_v9 = vadd.f32 %v3193_v40, %v3140_v31  ;;  %v3247_v58 = vpop.f32.mrf.mxu1  ;;  %v3143_v54 = vadd.f32 %v3142_v44, %v3089_v16 }
 0x2c6   : > { %v3371_v49 = vrot.slane %v3331_v33, 2  ;;  %v3372_v36 = vrot.slane %v3331_v33, 4  ;;  %v3373_v34 = vrot.slane %v3331_v33, 6  ;;  %v3248_v35 = vadd.f32 %v3247_v58, %v3194_v9 }
 0x2c8   : > { %3430 = vst [vmem:[#allocation1] ss:$4 sm:$0xff] %v3371_v49  ;;  %v3292_v6 = vmul.f32 %v5982_v27, %v3248_v35 }
 0x2c9   : > { %3431 = vst [vmem:[#allocation1 + $0x1] ss:$4 sm:$0xff] %v3372_v36  ;;  %v3090_v62 = vpop.f32.mrf.mxu2  ;;  %v3429_v42 = vld.sshfl [vmem:[#allocation1 + $0x20] sm:$0xff pattern:$0x73625140] }
 0x2ca   : > { %3432 = vst [vmem:[#allocation1 + $0x2] ss:$4 sm:$0xff] %v3373_v34  ;;  %v3314_v18 = vadd.f32 %v5989_v51, %v3292_v6  ;;  %v4510_v14 = vpack.c.bf16 %v3429_v42, %v3428_v60  ;;  %v3091_v8 = vadd.f32 %v3090_v62, %v5877_v17 }
 0x2cb   : > { %v3144_v13 = vpop.f32.mrf.mxu3  ;;  %v3196_v7 = vpop.f32.mrf.mxu0 }
 0x2cc   : > { %v3332_v53 = vmax.f32 %v3314_v18, 0.0  ;;  %v3197_v47 = vadd.f32 %v3196_v7, %v3143_v54  ;;  %v3250_v24 = vpop.f32.mrf.mxu1  ;;  %4511 = vst [vmem:[%s6006_s16] sm:$0xff] %v4510_v14   ;;  %v3145_v46 = vadd.f32 %v3144_v13, %v3091_v8 }
 0x2ce   : > { %v3374_v63 = vrot.slane %v3332_v53, 2  ;;  %v3375_v4 = vrot.slane %v3332_v53, 4  ;;  %v3376_v3 = vrot.slane %v3332_v53, 6  ;;  %3433 = vst [vmem:[#allocation1 + $0x3] ss:$4 sm:$0xff] %v3332_v53  ;;  %v3251_v11 = vadd.f32 %v3250_v24, %v3197_v47 }
 0x2d0   : > { %v3293_v5 = vmul.f32 %v5982_v27, %v3251_v11  ;;  %3434 = vst [vmem:[#allocation1 + $0x20] ss:$4 sm:$0xff] %v3374_v63 }
 0x2d1   : > { %3435 = vst [vmem:[#allocation1 + $0x21] ss:$4 sm:$0xff] %v3375_v4  ;;  %v3093_v21 = vpop.f32.mrf.mxu2 }
 0x2d2   : > { %v3315_v1 = vadd.f32 %v5989_v51, %v3293_v5  ;;  %3436 = vst [vmem:[#allocation1 + $0x22] ss:$4 sm:$0xff] %v3376_v3  ;;  %v3094_v48 = vadd.f32 %v3093_v21, %v5885_v52 }
 0x2d3   : > { %v3147_v45 = vpop.f32.mrf.mxu3  ;;  %v3198_v37 = vpop.f32.mrf.mxu0 }
 0x2d4   : > { %v3333_v23 = vmax.f32 %v3315_v1, 0.0  ;;  %v3199_v25 = vadd.f32 %v3198_v37, %v3145_v46  ;;  %v3252_v20 = vpop.f32.mrf.mxu1  ;;  %v3148_v30 = vadd.f32 %v3147_v45, %v3094_v48 }
 0x2d5   : > { %v3438_v26 = vld.sshfl [vmem:[#allocation1] sm:$0xff pattern:$0x73625140] }
 0x2d6   : > { %v3377_v17 = vrot.slane %v3333_v23, 4  ;;  %v3378_v15 = vrot.slane %v3333_v23, 6  ;;  %3437 = vst [vmem:[#allocation1 + $0x23] ss:$4 sm:$0xff] %v3333_v23  ;;  %v3253_v32 = vadd.f32 %v3252_v20, %v3199_v25 }
 0x2d8   : > { %3440 = vst [vmem:[#allocation1] ss:$4 sm:$0xff] %v3377_v17  ;;  %v3294_v10 = vmul.f32 %v5982_v27, %v3253_v32 }
 0x2d9   : > { %3441 = vst [vmem:[#allocation1 + $0x1] ss:$4 sm:$0xff] %v3378_v15  ;;  %v3095_v59 = vpop.f32.mrf.mxu2 }
 0x2da   : > { %v3316_v56 = vadd.f32 %v5989_v51, %v3294_v10  ;;  %v3096_v44 = vadd.f32 %v3095_v59, %v5893_v43 }
 0x2db   : > { %v3149_v19 = vpop.f32.mrf.mxu3  ;;  %v3201_v50 = vpop.f32.mrf.mxu0 }
 0x2dc   : > { %v3334_v29 = vmax.f32 %v3316_v56, 0.0  ;;  %v3202_v31 = vadd.f32 %v3201_v50, %v3148_v30  ;;  %v3255_v41 = vpop.f32.mrf.mxu1  ;;  %v3150_v34 = vadd.f32 %v3149_v19, %v3096_v44 }
 0x2dd   : > { %v3439_v40 = vld.sshfl [vmem:[#allocation1 + $0x20] sm:$0xff pattern:$0x73625140] }
 0x2de   : > { %v3379_v52 = vrot.slane %v3334_v29, 2  ;;  %v3380_v33 = vrot.slane %v3334_v29, 4  ;;  %v3381_v9 = vrot.slane %v3334_v29, 6  ;;  %3442 = vst [vmem:[#allocation1 + $0x2] ss:$4 sm:$0xff] %v3334_v29  ;;  %v3256_v58 = vadd.f32 %v3255_v41, %v3202_v31 }
 0x2df   : > { %v4515_v16 = vpack.c.bf16 %v3439_v40, %v3438_v26 }
 0x2e0   : > { %3443 = vst [vmem:[#allocation1 + $0x3] ss:$4 sm:$0xff] %v3379_v52  ;;  %v3295_v49 = vmul.f32 %v5982_v27, %v3256_v58 }
 0x2e1   : > { %3444 = vst [vmem:[#allocation1 + $0x20] ss:$4 sm:$0xff] %v3380_v33  ;;  %v3098_v36 = vpop.f32.mrf.mxu2 }
 0x2e2   : > { %v3317_v35 = vadd.f32 %v5989_v51, %v3295_v49  ;;  %3445 = vst [vmem:[#allocation1 + $0x21] ss:$4 sm:$0xff] %v3381_v9  ;;  %v3099_v13 = vadd.f32 %v3098_v36, %v5899_v12 }
 0x2e3   : > { %v3152_v60 = vpop.f32.mrf.mxu3  ;;  %v3203_v6 = vpop.f32.mrf.mxu0  ;;  %4551 = vst [vmem:[%s6006_s16 + $0x8] sm:$0xff] %v4515_v16  }
 0x2e4   : > { %v3335_v43 = vmax.f32 %v3317_v35, 0.0  ;;  %v3204_v62 = vadd.f32 %v3203_v6, %v3150_v34  ;;  %v3257_v42 = vpop.f32.mrf.mxu1  ;;  %v3153_v24 = vadd.f32 %v3152_v60, %v3099_v13 }
 0x2e6   : > { %v3382_v54 = vrot.slane %v3335_v43, 2  ;;  %v3383_v18 = vrot.slane %v3335_v43, 6  ;;  %3446 = vst [vmem:[#allocation1 + $0x22] ss:$4 sm:$0xff] %v3335_v43  ;;  %v3258_v14 = vadd.f32 %v3257_v42, %v3204_v62 }
 0x2e7   : > { %v3448_v7 = vld.sshfl [vmem:[#allocation1] sm:$0xff pattern:$0x73625140] }
 0x2e8   : > { %3447 = vst [vmem:[#allocation1 + $0x23] ss:$4 sm:$0xff] %v3382_v54  ;;  %v3296_v53 = vmul.f32 %v5982_v27, %v3258_v14 }
 0x2e9   : > { %3450 = vst [vmem:[#allocation1] ss:$4 sm:$0xff] %v3383_v18  ;;  %v3100_v47 = vpop.f32.mrf.mxu2 }
 0x2ea   : > { %v3318_v8 = vadd.f32 %v5989_v51, %v3296_v53  ;;  %v3101_v21 = vadd.f32 %v3100_v47, %v5904_v0 }
 0x2eb   : > { %v3154_v63 = vpop.f32.mrf.mxu3  ;;  %v3206_v4 = vpop.f32.mrf.mxu0 }
 0x2ec   : > { %v3336_v3 = vmax.f32 %v3318_v8, 0.0  ;;  %v3207_v11 = vadd.f32 %v3206_v4, %v3153_v24  ;;  %v3260_v5 = vpop.f32.mrf.mxu1  ;;  %v3155_v17 = vadd.f32 %v3154_v63, %v3101_v21 }
 0x2ee   : > { %v3384_v46 = vrot.slane %v3336_v3, 2  ;;  %v3385_v12 = vrot.slane %v3336_v3, 4  ;;  %v3386_v1 = vrot.slane %v3336_v3, 6  ;;  %3451 = vst [vmem:[#allocation1 + $0x1] ss:$4 sm:$0xff] %v3336_v3  ;;  %v3261_v45 = vadd.f32 %v3260_v5, %v3207_v11 }
 0x2ef   : > { %v3449_v37 = vld.sshfl [vmem:[#allocation1 + $0x20] sm:$0xff pattern:$0x73625140] }
 0x2f0   : > { %3452 = vst [vmem:[#allocation1 + $0x2] ss:$4 sm:$0xff] %v3384_v46  ;;  %v3297_v23 = vmul.f32 %v5982_v27, %v3261_v45  ;;  %v4520_v25 = vpack.c.bf16 %v3449_v37, %v3448_v7 }
 0x2f1   : > { %3453 = vst [vmem:[#allocation1 + $0x3] ss:$4 sm:$0xff] %v3385_v12  ;;  %v3103_v20 = vpop.f32.mrf.mxu2 }
 0x2f2   : > { %v3319_v15 = vadd.f32 %v5989_v51, %v3297_v23  ;;  %3454 = vst [vmem:[#allocation1 + $0x20] ss:$4 sm:$0xff] %v3386_v1  ;;  %v3104_v56 = vadd.f32 %v3103_v20, %v5913_v57 }
 0x2f3   : > { %v3157_v48 = vpop.f32.mrf.mxu3  ;;  %v3208_v32 = vpop.f32.mrf.mxu0  ;;  %4552 = vst [vmem:[%s6006_s16 + $0x10] sm:$0xff] %v4520_v25  }
 0x2f4   : > { %v3337_v0 = vmax.f32 %v3319_v15, 0.0  ;;  %v3209_v26 = vadd.f32 %v3208_v32, %v3155_v17  ;;  %v3262_v10 = vpop.f32.mrf.mxu1  ;;  %v3158_v31 = vadd.f32 %v3157_v48, %v3104_v56 }
 0x2f6   : > { %v3387_v59 = vrot.slane %v3337_v0, 2  ;;  %v3388_v30 = vrot.slane %v3337_v0, 4  ;;  %3455 = vst [vmem:[#allocation1 + $0x21] ss:$4 sm:$0xff] %v3337_v0  ;;  %v3263_v19 = vadd.f32 %v3262_v10, %v3209_v26 }
 0x2f8   : > { %3456 = vst [vmem:[#allocation1 + $0x22] ss:$4 sm:$0xff] %v3387_v59  ;;  %v3298_v50 = vmul.f32 %v5982_v27, %v3263_v19  ;;  %v3458_v58 = vld.sshfl [vmem:[#allocation1] sm:$0xff pattern:$0x73625140] }
 0x2f9   : > { %3457 = vst [vmem:[#allocation1 + $0x23] ss:$4 sm:$0xff] %v3388_v30  ;;  %v3105_v29 = vpop.f32.mrf.mxu2 }
 0x2fa   : > { %v3320_v41 = vadd.f32 %v5989_v51, %v3298_v50  ;;  %v3106_v16 = vadd.f32 %v3105_v29, %v5919_v39 }
 0x2fb   : > { %v3159_v44 = vpop.f32.mrf.mxu3  ;;  %v3211_v40 = vpop.f32.mrf.mxu0 }
 0x2fc   : > { %v3338_v52 = vmax.f32 %v3320_v41, 0.0  ;;  %v3212_v33 = vadd.f32 %v3211_v40, %v3158_v31  ;;  %v3265_v9 = vpop.f32.mrf.mxu1  ;;  %v3160_v62 = vadd.f32 %v3159_v44, %v3106_v16 }
 0x2fe   : > { %v3389_v49 = vrot.slane %v3338_v52, 2  ;;  %v3390_v57 = vrot.slane %v3338_v52, 4  ;;  %v3391_v36 = vrot.slane %v3338_v52, 6  ;;  %3460 = vst [vmem:[#allocation1] ss:$4 sm:$0xff] %v3338_v52  ;;  %v3266_v34 = vadd.f32 %v3265_v9, %v3212_v33 }
 0x300   : > { %3461 = vst [vmem:[#allocation1 + $0x1] ss:$4 sm:$0xff] %v3389_v49  ;;  %v3299_v35 = vmul.f32 %v5982_v27, %v3266_v34  ;;  %v3459_v60 = vld.sshfl [vmem:[#allocation1 + $0x20] sm:$0xff pattern:$0x73625140] }
 0x301   : > { %3462 = vst [vmem:[#allocation1 + $0x2] ss:$4 sm:$0xff] %v3390_v57  ;;  %v3108_v6 = vpop.f32.mrf.mxu2  ;;  %v4525_v43 = vpack.c.bf16 %v3459_v60, %v3458_v58 }
 0x302   : > { %3463 = vst [vmem:[#allocation1 + $0x3] ss:$4 sm:$0xff] %v3391_v36  ;;  %v3321_v42 = vadd.f32 %v5989_v51, %v3299_v35  ;;  %v3109_v7 = vadd.f32 %v3108_v6, %v5935_v22 }
 0x303   : > { %v3162_v54 = vpop.f32.mrf.mxu3  ;;  %v3213_v18 = vpop.f32.mrf.mxu0  ;;  %4553 = vst [vmem:[%s6006_s16 + $0x18] sm:$0xff] %v4525_v43  }
 0x304   : > { %v3339_v39 = vmax.f32 %v3321_v42, 0.0  ;;  %v3214_v13 = vadd.f32 %v3213_v18, %v3160_v62  ;;  %v3267_v14 = vpop.f32.mrf.mxu1  ;;  %v3163_v3 = vadd.f32 %v3162_v54, %v3109_v7 }
 0x306   : > { %v3392_v53 = vrot.slane %v3339_v39, 2  ;;  %v3393_v47 = vrot.slane %v3339_v39, 4  ;;  %v3394_v24 = vrot.slane %v3339_v39, 6  ;;  %3464 = vst [vmem:[#allocation1 + $0x20] ss:$4 sm:$0xff] %v3339_v39  ;;  %v3268_v8 = vadd.f32 %v3267_v14, %v3214_v13 }
 0x308   : > { %3465 = vst [vmem:[#allocation1 + $0x21] ss:$4 sm:$0xff] %v3392_v53  ;;  %v3300_v63 = vmul.f32 %v5982_v27, %v3268_v8 }
 0x309   : > { %3466 = vst [vmem:[#allocation1 + $0x22] ss:$4 sm:$0xff] %v3393_v47  ;;  %v3110_v4 = vpop.f32.mrf.mxu2  ;;  %v3468_v20 = vld.sshfl [vmem:[#allocation1] sm:$0xff pattern:$0x73625140] }
 0x30a   : > { %3467 = vst [vmem:[#allocation1 + $0x23] ss:$4 sm:$0xff] %v3394_v24  ;;  %v3322_v11 = vadd.f32 %v5989_v51, %v3300_v63  ;;  %v3111_v22 = vadd.f32 %v3110_v4, %v5944_v55 }
 0x30b   : > { %v3164_v5 = vpop.f32.mrf.mxu3  ;;  %v3216_v21 = vpop.f32.mrf.mxu0 }
 0x30c   : > { %v3340_v46 = vmax.f32 %v3322_v11, 0.0  ;;  %v3217_v12 = vadd.f32 %v3216_v21, %v3163_v3  ;;  %v3270_v1 = vpop.f32.mrf.mxu1  ;;  %v3165_v0 = vadd.f32 %v3164_v5, %v3111_v22 }
 0x30e   : > { %v3395_v45 = vrot.slane %v3340_v46, 2  ;;  %v3396_v37 = vrot.slane %v3340_v46, 4  ;;  %v3397_v23 = vrot.slane %v3340_v46, 6  ;;  %v3271_v25 = vadd.f32 %v3270_v1, %v3217_v12 }
 0x310   : > { %3470 = vst [vmem:[#allocation1] ss:$4 sm:$0xff] %v3395_v45  ;;  %v3301_v17 = vmul.f32 %v5982_v27, %v3271_v25 }
 0x311   : > { %v3469_v15 = vld.sshfl [vmem:[#allocation1 + $0x20] sm:$0xff pattern:$0x73625140]  ;;  %3471 = vst [vmem:[#allocation1 + $0x1] ss:$4 sm:$0xff] %v3396_v37  ;;  %v3113_v48 = vpop.f32.mrf.mxu2 }
 0x312   : > { %v4530_v32 = vpack.c.bf16 %v3469_v15, %v3468_v20  ;;  %3472 = vst [vmem:[#allocation1 + $0x2] ss:$4 sm:$0xff] %v3397_v23  ;;  %v3323_v26 = vadd.f32 %v5989_v51, %v3301_v17  ;;  %v3114_v19 = vadd.f32 %v3113_v48, %v5955_v2 }
 0x313   : > { %v3167_v10 = vpop.f32.mrf.mxu3  ;;  %v3218_v59 = vpop.f32.mrf.mxu0 }
 0x314   : > { %v3341_v55 = vmax.f32 %v3323_v26, 0.0  ;;  %v3219_v30 = vadd.f32 %v3218_v59, %v3165_v0  ;;  %v3272_v56 = vpop.f32.mrf.mxu1  ;;  %4554 = vst [vmem:[%s6006_s16 + $0x20] sm:$0xff] %v4530_v32   ;;  %v3168_v52 = vadd.f32 %v3167_v10, %v3114_v19 }
 0x316   : > { %v3398_v50 = vrot.slane %v3341_v55, 2  ;;  %v3399_v29 = vrot.slane %v3341_v55, 4  ;;  %v3400_v31 = vrot.slane %v3341_v55, 6  ;;  %3473 = vst [vmem:[#allocation1 + $0x3] ss:$4 sm:$0xff] %v3341_v55  ;;  %v3273_v41 = vadd.f32 %v3272_v56, %v3219_v30 }
 0x318   : > { %3474 = vst [vmem:[#allocation1 + $0x20] ss:$4 sm:$0xff] %v3398_v50  ;;  %v3302_v44 = vmul.f32 %v5982_v27, %v3273_v41 }
 0x319   : > { %3475 = vst [vmem:[#allocation1 + $0x21] ss:$4 sm:$0xff] %v3399_v29  ;;  %v3115_v40 = vpop.f32.mrf.mxu2 }
 0x31a   : > { %3476 = vst [vmem:[#allocation1 + $0x22] ss:$4 sm:$0xff] %v3400_v31  ;;  %v3324_v33 = vadd.f32 %v5989_v51, %v3302_v44  ;;  %v3116_v34 = vadd.f32 %v3115_v40, %v5960_v61 }
 0x31b   : > { %v3221_v9 = vpop.f32.mrf.mxu0  ;;  %v3169_v57 = vpop.f32.mrf.mxu3 }
 0x31c   : > { %v3342_v58 = vmax.f32 %v3324_v33, 0.0  ;;  %v3222_v16 = vadd.f32 %v3221_v9, %v3168_v52  ;;  %v3275_v49 = vpop.f32.mrf.mxu1  ;;  %v3170_v62 = vadd.f32 %v3169_v57, %v3116_v34 }
 0x31d   : > { %v3478_v60 = vld.sshfl [vmem:[#allocation1] sm:$0xff pattern:$0x73625140] }
 0x31e   : > { %v3401_v2 = vrot.slane %v3342_v58, 4  ;;  %v3402_v36 = vrot.slane %v3342_v58, 6  ;;  %3477 = vst [vmem:[#allocation1 + $0x23] ss:$4 sm:$0xff] %v3342_v58  ;;  %v3276_v35 = vadd.f32 %v3275_v49, %v3222_v16 }
 0x320   : > { %3480 = vst [vmem:[#allocation1] ss:$4 sm:$0xff] %v3401_v2  ;;  %v3303_v6 = vmul.f32 %v5982_v27, %v3276_v35 }
 0x321   : > { %3481 = vst [vmem:[#allocation1 + $0x1] ss:$4 sm:$0xff] %v3402_v36  ;;  %v3118_v43 = vpop.f32.mrf.mxu2 }
 0x322   : > { %v3325_v42 = vadd.f32 %v5989_v51, %v3303_v6  ;;  %v3119_v61 = vadd.f32 %v3118_v43, %v5971_v28 }
 0x323   : > { %v3223_v54 = vpop.f32.mrf.mxu0  ;;  %v3172_v8 = vpop.f32.mrf.mxu3 }
 0x324   : > { %v3343_v18 = vmax.f32 %v3325_v42, 0.0  ;;  %v3224_v39 = vadd.f32 %v3223_v54, %v3170_v62  ;;  %v3277_v13 = vpop.f32.mrf.mxu1  ;;  %v3173_v3 = vadd.f32 %v3172_v8, %v3119_v61 }
 0x325   : > { %v3479_v14 = vld.sshfl [vmem:[#allocation1 + $0x20] sm:$0xff pattern:$0x73625140] }
 0x326   : > { %v4535_v7 = vpack.c.bf16 %v3479_v14, %v3478_v60  ;;  %v3403_v53 = vrot.slane %v3343_v18, 2  ;;  %v3404_v47 = vrot.slane %v3343_v18, 4  ;;  %3482 = vst [vmem:[#allocation1 + $0x2] ss:$4 sm:$0xff] %v3343_v18  ;;  %v3405_v24 = vrot.slane %v3343_v18, 6 }
 0x327   : > { %v3278_v63 = vadd.f32 %v3277_v13, %v3224_v39 }
 0x328   : > { %4555 = vst [vmem:[%s6006_s16 + $0x28] sm:$0xff] %v4535_v7  }
 0x329   : > { %3483 = vst [vmem:[#allocation1 + $0x3] ss:$4 sm:$0xff] %v3403_v53  ;;  %v3304_v4 = vmul.f32 %v5982_v27, %v3278_v63  ;;  %v3120_v5 = vpop.f32.mrf.mxu2 }
 0x32a   : > { %3484 = vst [vmem:[#allocation1 + $0x20] ss:$4 sm:$0xff] %v3404_v47  ;;  %v3121_v22 = vadd.f32 %v3120_v5, %v5976_v38 }
 0x32b   : > { %3485 = vst [vmem:[#allocation1 + $0x21] ss:$4 sm:$0xff] %v3405_v24  ;;  %v3326_v11 = vadd.f32 %v5989_v51, %v3304_v4  ;;  %v3226_v21 = vpop.f32.mrf.mxu0  ;;  %v3174_v20 = vpop.f32.mrf.mxu3 }
 0x32c   : > { %v3227_v46 = vadd.f32 %v3226_v21, %v3173_v3  ;;  %v3280_v12 = vpop.f32.mrf.mxu1  ;;  %v3175_v17 = vadd.f32 %v3174_v20, %v3121_v22 }
 0x32d   : > { %v3344_v1 = vmax.f32 %v3326_v11, 0.0 }
 0x32e   : > { %v3281_v28 = vadd.f32 %v3280_v12, %v3227_v46 }
 0x32f   : > { %v3406_v45 = vrot.slane %v3344_v1, 2  ;;  %v3407_v37 = vrot.slane %v3344_v1, 6  ;;  %3486 = vst [vmem:[#allocation1 + $0x22] ss:$4 sm:$0xff] %v3344_v1 }
 0x330   : > { %v3488_v23 = vld.sshfl [vmem:[#allocation1] sm:$0xff pattern:$0x73625140]  ;;  %v3305_v25 = vmul.f32 %v5982_v27, %v3281_v28 }
 0x331   : > { %3487 = vst [vmem:[#allocation1 + $0x23] ss:$4 sm:$0xff] %v3406_v45 }
 0x332   : > { %3490 = vst [vmem:[#allocation1] ss:$4 sm:$0xff] %v3407_v37  ;;  %v3327_v15 = vadd.f32 %v5989_v51, %v3305_v25 }
 0x333   : > { %v3228_v48 = vpop.f32.mrf.mxu0 }
 0x334   : > { %v3345_v32 = vmax.f32 %v3327_v15, 0.0  ;;  %v3229_v0 = vadd.f32 %v3228_v48, %v3175_v17  ;;  %v3282_v26 = vpop.f32.mrf.mxu1 }
 0x336   : > { %v3408_v10 = vrot.slane %v3345_v32, 2  ;;  %v3409_v38 = vrot.slane %v3345_v32, 4  ;;  %v3410_v59 = vrot.slane %v3345_v32, 6  ;;  %3491 = vst [vmem:[#allocation1 + $0x1] ss:$4 sm:$0xff] %v3345_v32  ;;  %v3283_v55 = vadd.f32 %v3282_v26, %v3229_v0 }
 0x338   : > { %v3489_v30 = vld.sshfl [vmem:[#allocation1 + $0x20] sm:$0xff pattern:$0x73625140]  ;;  %3492 = vst [vmem:[#allocation1 + $0x2] ss:$4 sm:$0xff] %v3408_v10  ;;  %v3306_v56 = vmul.f32 %v5982_v27, %v3283_v55 }
 0x339   : > { %v4540_v19 = vpack.c.bf16 %v3489_v30, %v3488_v23  ;;  %3493 = vst [vmem:[#allocation1 + $0x3] ss:$4 sm:$0xff] %v3409_v38 }
 0x33a   : > { %3494 = vst [vmem:[#allocation1 + $0x20] ss:$4 sm:$0xff] %v3410_v59  ;;  %v3328_v50 = vadd.f32 %v5989_v51, %v3306_v56 }
 0x33b   : > { %4556 = vst [vmem:[%s6006_s16 + $0x30] sm:$0xff] %v4540_v19  }
 0x33c   : > { %v3346_v29 = vmax.f32 %v3328_v50, 0.0 }
 0x33e   : > { %v3411_v31 = vrot.slane %v3346_v29, 2  ;;  %v3412_v41 = vrot.slane %v3346_v29, 4  ;;  %3495 = vst [vmem:[#allocation1 + $0x21] ss:$4 sm:$0xff] %v3346_v29 }
 0x340   : > { %3496 = vst [vmem:[#allocation1 + $0x22] ss:$4 sm:$0xff] %v3411_v31  ;;  %v3498_v44 = vld.sshfl [vmem:[#allocation1] sm:$0xff pattern:$0x73625140] }
 0x341   : > { %3497 = vst [vmem:[#allocation1 + $0x23] ss:$4 sm:$0xff] %v3412_v41 }
 0x348   : > { %v3499_v40 = vld.sshfl [vmem:[#allocation1 + $0x20] sm:$0xff pattern:$0x73625140] }
 0x349   : > { %v4545_v52 = vpack.c.bf16 %v3499_v40, %v3498_v44 }
 0x34b   : > { %4557 = vst [vmem:[%s6006_s16 + $0x38] sm:$0xff] %v4545_v52  }
 0x34c PF: > { %s15_s22 = sadd.s32 1, %s4668_s22   ;;  %s6096_s18 = smov %s4660_s20 }
 0x34d   : > { %p12_p8 = scmp.ge.s32.totalorder %s15_s22, 6   ;;  %s6097_s19 = smov %s4664_s21 }
 0x34e   : > { %s6098_s20 = smov %s6101_s23  ;;  %s6099_s21 = smov %s6105_s24 }
 0x34f   :  { %14 = sbr.rel (!%p12_p8) target bundleno = 3 (0x3), region = 80 }

// kernel: decoder_forward.5
= control target key start
LH: loop header
LB: loop body
LE: loop exit
PB: predicated region body
PF: predicated region fallthrough
CT: control target
= control target key end

     0   :  { %s2600_s15 = smov 0   ;;  %s2602_s16 = smov 0   ;;  %s3310_s0 = inlined_call_operand.vmem [shape: bf16[2,2,184,128], index: 0, kind: input, shape index: {}]   ;;  %s3311_s1 = inlined_call_operand.vmem [shape: bf16[1152,128], index: 1, kind: input, shape index: {}]   ;;  %s3312_s2 = inlined_call_operand.vmem [shape: f32[1,128], index: 2, kind: input, shape index: {}]   ;;  %s3313_s3 = inlined_call_operand.vmem [shape: f32[1,128], index: 3, kind: input, shape index: {}]   ;;  %s3314_s4 = inlined_call_operand.vmem [shape: f32[2,16,16,128], index: 4, kind: output, shape index: {}]  }
   0x1   :  { %s2604_s17 = smov 0   ;;  %s2606_s18 = smov 0  }
   0x2   :  { %s2608_s19 = smov 0  }
   0x3 LB: > { %s23_s20 = sadd.s32 1, %s2565_s17  ;;  %s26_s21 = sadd.s32 1, %s2569_s18  ;;  %s2573_s19 = sphi %s2608_s19, %s14_s19   ;;  %s2569_s18 = sphi %s2606_s18, %s3318_s18   ;;  %s2565_s17 = sphi %s2604_s17, %s3317_s17   ;;  %s2561_s16 = sphi %s2602_s16, %s3316_s16   ;;  %s2557_s15 = sphi %s2600_s15, %s3315_s15  }
   0x4   : > { %p24_p0 = scmp.ge.s32.totalorder %s23_s20, 2  ;;  %p2044_p1 = scmp.ge.s32.totalorder %s2573_s19, 1 }
   0x5   : > { %p182_p2 = scmp.lt.s32.totalorder %s2573_s19, 5 }
   0x6   : > { %s3320_s20 = smov (%p24_p0, %s23_s20), 0  ;;  %s3322_s21 = smov (!%p24_p0, %s26_s21), %s2569_s18 }
   0x7   : > { %p183_p3 = pnand %p2044_p1, %p182_p2  ;;  %p28_p4 = scmp.ge.s32.totalorder %s3322_s21, 2 }
   0x8   : > { %p217_p5 = scmp.lt.s32.totalorder (!%p183_p3), %s2561_s16, 1  ;;  %p219_p6 = scmp.lt.s32.totalorder (!%p183_p3), %s2557_s15, 1 }
   0x9   : > { %s3324_s21 = smov (%p28_p4, %s3322_s21), 0  ;;  %186 = sbr.rel (%p183_p3) target bundleno = 530 (0x212), region = 36 }
   0xe   : > { %v2392_v0 = vld [vmem:[%s3311_s1 + $0x38] sm:$0xff]  ;;  %v2391_v1 = vld [vmem:[%s3311_s1 + $0x30] sm:$0xff]  ;;  %v2390_v2 = vld [vmem:[%s3311_s1 + $0x28] sm:$0xff]  ;;  %s3326_s16 = smov (!%p217_p5, %s2561_s16), 1  ;;  %vm403_vm0 = vcmask 1046528   ;;  %vm603_vm4 = vcmask 1044480  }
   0xf   : > { %2467 = vmatpush.bf16.msra.mxu1 %v2392_v0  ;;  %2468 = vmatpush.bf16.msra.mxu2 %v2392_v0  ;;  %v2389_v3 = vld [vmem:[%s3311_s1 + $0x20] sm:$0xff]  ;;  %s220_s30 = scalar_select %p219_p6, %s2557_s15, 1  ;;  %v2388_v4 = vld [vmem:[%s3311_s1 + $0x18] sm:$0xff]  ;;  %v2387_v5 = vld [vmem:[%s3311_s1 + $0x10] sm:$0xff]  ;;  %vm444_vm1 = vsmask.f32 6400 }
  0x10   : > { %2469 = vmatpush.bf16.msra.mxu3 %v2392_v0  ;;  %1208 = vmatpush.bf16.msra.mxu0 %v2392_v0  ;;  %s2492_s7 = smul.u32 46, %s3326_s16  ;;  %v2386_v6 = vld [vmem:[%s3311_s1 + $0x8] sm:$0xff]  ;;  %v2385_v7 = vld [vmem:[%s3311_s1] sm:$0xff]  ;;  %v2408_v8 = vld [vmem:[%s3311_s1 + $0xb8] sm:$0xff]  ;;  %vm317_vm2 = vsmask.f32 7424 }
  0x11   : > { %s2491_s8 = smul.u32 23, %s220_s30  ;;  %v2400_v9 = vld [vmem:[%s3311_s1 + $0x78] sm:$0xff]  ;;  %v2407_v14 = vld [vmem:[%s3311_s1 + $0xb0] sm:$0xff]  ;;  %v2406_v20 = vld [vmem:[%s3311_s1 + $0xa8] sm:$0xff]  ;;  %vm544_vm3 = vsmask.f32 5376 }
  0x12   : > { %v2416_v12 = vld [vmem:[%s3311_s1 + $0xf8] sm:$0xff]  ;;  %v2399_v15 = vld [vmem:[%s3311_s1 + $0x70] sm:$0xff]  ;;  %v2398_v21 = vld [vmem:[%s3311_s1 + $0x68] sm:$0xff]  ;;  %vm503_vm5 = vcmask 1045504  }
  0x13   : > { %2470 = vmatpush.bf16.msra.mxu1 %v2391_v1  ;;  %2471 = vmatpush.bf16.msra.mxu2 %v2391_v1  ;;  %s223_s11 = sadd.s32 %s2492_s7, %s2491_s8  ;;  %v2424_v13 = vld [vmem:[%s3311_s1 + $0x138] sm:$0xff]  ;;  %v2415_v18 = vld [vmem:[%s3311_s1 + $0xf0] sm:$0xff]  ;;  %v2414_v22 = vld [vmem:[%s3311_s1 + $0xe8] sm:$0xff] }
  0x14   : > { %2472 = vmatpush.bf16.msra.mxu3 %v2391_v1  ;;  %1209 = vmatpush.bf16.msra.mxu0 %v2391_v1  ;;  %s2045_s14 = sshll.u32 %s223_s11, 2  ;;  %v2423_v19 = vld [vmem:[%s3311_s1 + $0x130] sm:$0xff]  ;;  %v2422_v23 = vld [vmem:[%s3311_s1 + $0x128] sm:$0xff]  ;;  %v2405_v24 = vld [vmem:[%s3311_s1 + $0xa0] sm:$0xff] }
  0x15   : > { %s2668_s26 = scalar_lea.vmem %s3310_s0, %s2045_s14  ;;  %v2397_v25 = vld [vmem:[%s3311_s1 + $0x60] sm:$0xff]  ;;  %v2404_v28 = vld [vmem:[%s3311_s1 + $0x98] sm:$0xff]  ;;  %v2403_v34 = vld [vmem:[%s3311_s1 + $0x90] sm:$0xff] }
  0x16   : > { %v2677_v10 = vld [vmem:[%s2668_s26 + $0x10] sm:$0xff]  ;;  %v2680_v11 = vld [vmem:[%s2668_s26 + $0x28] sm:$0xff]  ;;  %v2695_v16 = vld [vmem:[%s2668_s26] sm:$0xff] }
  0x17   : > { %2473 = vmatpush.bf16.msra.mxu1 %v2390_v2  ;;  %2474 = vmatpush.bf16.msra.mxu2 %v2390_v2  ;;  %v2698_v17 = vld [vmem:[%s2668_s26 + $0x40] sm:$0xff]  ;;  %v2396_v29 = vld [vmem:[%s3311_s1 + $0x58] sm:$0xff]  ;;  %v2744_v31 = vld [vmem:[%s2668_s26 + $0x30] sm:$0xff]  ;;  %v2779_v43 = vshll.u32 %v2677_v10, 16  ;;  %v2782_v44 = vshrl.u32 %v2677_v10, 16  ;;  %v407_v58 = vrot.slane %v2677_v10, 1 }
  0x18   : > { %2475 = vmatpush.bf16.msra.mxu3 %v2390_v2  ;;  %1210 = vmatpush.bf16.msra.mxu0 %v2390_v2  ;;  %v2413_v26 = vld [vmem:[%s3311_s1 + $0xe0] sm:$0xff]  ;;  %v2741_v30 = vld [vmem:[%s2668_s26 + $0x18] sm:$0xff]  ;;  %v2395_v35 = vld [vmem:[%s3311_s1 + $0x50] sm:$0xff] }
  0x19   : > { %v2421_v27 = vld [vmem:[%s3311_s1 + $0x120] sm:$0xff]  ;;  %v2412_v32 = vld [vmem:[%s3311_s1 + $0xd8] sm:$0xff]  ;;  %v2759_v36 = vld [vmem:[%s2668_s26 + $0x8] sm:$0xff]  ;;  %v448_v53 = vrot.slane %v2782_v44, 1  ;;  %v449_v54 = vrot.slane %v2779_v43, 2 }
  0x1a   : > { %v2420_v33 = vld [vmem:[%s3311_s1 + $0x118] sm:$0xff]  ;;  %v2411_v37 = vld [vmem:[%s3311_s1 + $0xd0] sm:$0xff]  ;;  %v2402_v39 = vld [vmem:[%s3311_s1 + $0x88] sm:$0xff]  ;;  %v326_v41 = vshll.u32 %v2759_v36, 16  ;;  %v330_v42 = vshrl.u32 %v2759_v36, 16  ;;  %v405_v57 = vrot.slane %v2759_v36, 1 }
  0x1b   : > { %2476 = vmatpush.bf16.msra.mxu1 %v2389_v3  ;;  %2477 = vmatpush.bf16.msra.mxu2 %v2389_v3  ;;  %v2419_v38 = vld [vmem:[%s3311_s1 + $0x110] sm:$0xff]  ;;  %v2394_v40 = vld [vmem:[%s3311_s1 + $0x48] sm:$0xff]  ;;  %v2401_v47 = vld [vmem:[%s3311_s1 + $0x80] sm:$0xff]  ;;  %v450_v0 = vor.u32 %v449_v54, %v448_v53 }
  0x1c   : > { %2478 = vmatpush.bf16.msra.mxu3 %v2389_v3  ;;  %1211 = vmatpush.bf16.msra.mxu0 %v2389_v3  ;;  %v2410_v45 = vld [vmem:[%s3311_s1 + $0xc8] sm:$0xff]  ;;  %v2393_v48 = vld [vmem:[%s3311_s1 + $0x40] sm:$0xff]  ;;  %v2440_v49 = vld [vmem:[%s3311_s1 + $0x1b8] sm:$0xff]  ;;  %v445_v51 = vrot.slane %v330_v42, 1  ;;  %v446_v52 = vrot.slane %v326_v41, 2  ;;  %v408_v1 = vsel %vm403_vm0, %v405_v57, %v407_v58 }
  0x1d   : > { %v2418_v46 = vld [vmem:[%s3311_s1 + $0x108] sm:$0xff]  ;;  %v2432_v50 = vld [vmem:[%s3311_s1 + $0x178] sm:$0xff]  ;;  %v2409_v55 = vld [vmem:[%s3311_s1 + $0xc0] sm:$0xff] }
  0x1e   : > { %v2417_v56 = vld [vmem:[%s3311_s1 + $0x100] sm:$0xff]  ;;  %v2448_v59 = vld [vmem:[%s3311_s1 + $0x1f8] sm:$0xff]  ;;  %v447_v63 = vor.u32 %v446_v52, %v445_v51  ;;  %v2439_v3 = vld [vmem:[%s3311_s1 + $0x1b0] sm:$0xff] }
  0x1f   : > { %2479 = vmatpush.bf16.msra.mxu1 %v2388_v4  ;;  %2480 = vmatpush.bf16.msra.mxu2 %v2388_v4  ;;  %v2456_v60 = vld [vmem:[%s3311_s1 + $0x238] sm:$0xff]  ;;  %v2821_v61 = vld [vmem:[%s2668_s26 + $0x20] sm:$0xff] }
  0x20   : > { %2481 = vmatpush.bf16.msra.mxu3 %v2388_v4  ;;  %1212 = vmatpush.bf16.msra.mxu0 %v2388_v4  ;;  %v2824_v62 = vld [vmem:[%s2668_s26 + $0x38] sm:$0xff]  ;;  %v451_v2 = vsel %vm444_vm1, %v447_v63, %v450_v0  ;;  %v2447_v4 = vld [vmem:[%s3311_s1 + $0x1f0] sm:$0xff] }
  0x21   : > { %v2436_v63 = vld [vmem:[%s3311_s1 + $0x198] sm:$0xff] }
  0x23   : > { %2482 = vmatpush.bf16.msra.mxu1 %v2387_v5  ;;  %2483 = vmatpush.bf16.msra.mxu2 %v2387_v5 }
  0x24   : > { %2484 = vmatpush.bf16.msra.mxu3 %v2387_v5  ;;  %1213 = vmatpush.bf16.msra.mxu0 %v2387_v5  ;;  %v2431_v5 = vld [vmem:[%s3311_s1 + $0x170] sm:$0xff] }
  0x27   : > { %2485 = vmatpush.bf16.msra.mxu1 %v2386_v6  ;;  %2486 = vmatpush.bf16.msra.mxu2 %v2386_v6 }
  0x28   : > { %2487 = vmatpush.bf16.msra.mxu3 %v2386_v6  ;;  %1214 = vmatpush.bf16.msra.mxu0 %v2386_v6  ;;  %v321_v6 = vshll.u32 %v2695_v16, 16 }
  0x2b   : > { %2488 = vmatpush.bf16.msra.mxu1 %v2385_v7  ;;  %2489 = vmatpush.bf16.msra.mxu2 %v2385_v7 }
  0x2c   : > { %2490 = vmatpush.bf16.msra.mxu3 %v2385_v7  ;;  %1215 = vmatpush.bf16.msra.mxu0 %v2385_v7  ;;  %v2455_v7 = vld [vmem:[%s3311_s1 + $0x230] sm:$0xff] }
  0x2e   : > { %1226 = vmatmul.bf16.vlgmr.msra.gmra.mxu1 %v2677_v10  ;;  %1241 = vmatmul.bf16.vlgmr.msra.gmra.mxu2 %v2680_v11 }
  0x2f   : > { %1316 = vmatpush.bf16.msrb.mxu2 %v2408_v8  ;;  %1262 = vmatpush.bf16.msrb.mxu1 %v2400_v9  ;;  %v2844_v8 = vshll.u32 %v2741_v30, 16  ;;  %v2847_v9 = vshrl.u32 %v2741_v30, 16 }
  0x30   : > { %1370 = vmatpush.bf16.msrb.mxu3 %v2416_v12  ;;  %1424 = vmatpush.bf16.msrb.mxu0 %v2424_v13  ;;  %v319_v12 = vshrl.u32 %v2695_v16, 16  ;;  %v323_v13 = vrot.slane %v321_v6, 1 }
  0x31   : > { %1216 = vmatmul.bf16.vlgmr.msra.gmra.mxu0 %v2695_v16  ;;  %1256 = vmatmul.bf16.vlgmr.msra.gmra.mxu3 %v2698_v17  ;;  %v344_v54 = vrot.slane %v2844_v8, 1 }
  0x33   : > { %1317 = vmatpush.bf16.msrb.mxu2 %v2407_v14  ;;  %1263 = vmatpush.bf16.msrb.mxu1 %v2399_v15  ;;  %v452_v14 = vrot.slane %v2847_v9, 1  ;;  %v453_v15 = vrot.slane %v2844_v8, 2  ;;  %v348_v6 = vor.u32 %v2847_v9, %v344_v54 }
  0x34   : > { %1371 = vmatpush.bf16.msrb.mxu3 %v2415_v18  ;;  %1425 = vmatpush.bf16.msrb.mxu0 %v2423_v19  ;;  %v324_v18 = vor.u32 %v323_v13, %v319_v12  ;;  %v328_v19 = vrot.slane %v326_v41, 1  ;;  %v415_v12 = vrot.slane %v2744_v31, 1 }
  0x37   : > { %1318 = vmatpush.bf16.msrb.mxu2 %v2406_v20  ;;  %1264 = vmatpush.bf16.msrb.mxu1 %v2398_v21  ;;  %v404_v20 = vrot.slane %v2695_v16, 1  ;;  %v409_v21 = vrot.slane %v2741_v30, 1  ;;  %v2446_v16 = vld [vmem:[%s3311_s1 + $0x1e8] sm:$0xff] }
  0x38   : > { %1372 = vmatpush.bf16.msrb.mxu3 %v2414_v22  ;;  %1426 = vmatpush.bf16.msrb.mxu0 %v2422_v23  ;;  %v454_v22 = vor.u32 %v453_v15, %v452_v14  ;;  %v329_v23 = vsel %vm317_vm2, %v324_v18, %v328_v19 }
  0x3b   : > { %1319 = vmatpush.bf16.msrb.mxu2 %v2405_v24  ;;  %1265 = vmatpush.bf16.msrb.mxu1 %v2397_v25  ;;  %v406_v24 = vsel %vm403_vm0, %v404_v20, %v405_v57  ;;  %v410_v25 = vsel %vm403_vm0, %v407_v58, %v409_v21  ;;  %v2938_v20 = vshll.u32 %v2824_v62, 16 }
  0x3c   : > { %1373 = vmatpush.bf16.msrb.mxu3 %v2413_v26  ;;  %1427 = vmatpush.bf16.msrb.mxu0 %v2421_v27  ;;  %v455_v26 = vsel %vm444_vm1, %v450_v0, %v454_v22  ;;  %v2438_v27 = vld [vmem:[%s3311_s1 + $0x1a8] sm:$0xff]  ;;  %v2444_v0 = vld [vmem:[%s3311_s1 + $0x1d8] sm:$0xff] }
  0x3e   : > { %1231 = vmatmul.bf16.gmra.mxu1 %v2741_v30  ;;  %1246 = vmatmul.bf16.gmra.mxu2 %v2744_v31 }
  0x3f   : > { %1320 = vmatpush.bf16.msrb.mxu2 %v2404_v28  ;;  %1266 = vmatpush.bf16.msrb.mxu1 %v2396_v29  ;;  %v2430_v28 = vld [vmem:[%s3311_s1 + $0x168] sm:$0xff] }
  0x40   : > { %1374 = vmatpush.bf16.msrb.mxu3 %v2412_v32  ;;  %1428 = vmatpush.bf16.msrb.mxu0 %v2420_v33  ;;  %v2454_v29 = vld [vmem:[%s3311_s1 + $0x228] sm:$0xff]  ;;  %v2871_v32 = vshll.u32 %v2821_v61, 16  ;;  %v2874_v33 = vshrl.u32 %v2821_v61, 16 }
  0x41   : > { %1221 = vmatmul.bf16.gmra.mxu0 %v2759_v36 }
  0x43   : > { %1321 = vmatpush.bf16.msrb.mxu2 %v2403_v34  ;;  %1267 = vmatpush.bf16.msrb.mxu1 %v2395_v35  ;;  %v456_v34 = vrot.slane %v2874_v33, 1  ;;  %v457_v35 = vrot.slane %v2871_v32, 2 }
  0x44   : > { %1375 = vmatpush.bf16.msrb.mxu3 %v2411_v37  ;;  %1429 = vmatpush.bf16.msrb.mxu0 %v2419_v38  ;;  %v332_v37 = vor.u32 %v330_v42, %v328_v19  ;;  %v336_v38 = vrot.slane %v2779_v43, 1  ;;  %v2445_v42 = vld [vmem:[%s3311_s1 + $0x1e0] sm:$0xff]  ;;  %v2452_v19 = vld [vmem:[%s3311_s1 + $0x218] sm:$0xff] }
  0x46   : > { %v337_v41 = vsel %vm317_vm2, %v332_v37, %v336_v38  ;;  %v340_v53 = vor.u32 %v2782_v44, %v336_v38  ;;  %v2451_v38 = vld [vmem:[%s3311_s1 + $0x210] sm:$0xff] }
  0x47   : > { %1322 = vmatpush.bf16.msrb.mxu2 %v2402_v39  ;;  %1268 = vmatpush.bf16.msrb.mxu1 %v2394_v40  ;;  %v411_v39 = vrot.slane %v2821_v61, 1  ;;  %v458_v40 = vor.u32 %v457_v35, %v456_v34  ;;  %v2427_v34 = vld [vmem:[%s3311_s1 + $0x150] sm:$0xff] }
  0x48   : > { %1376 = vmatpush.bf16.msrb.mxu3 %v2410_v45  ;;  %1430 = vmatpush.bf16.msrb.mxu0 %v2418_v46  ;;  %v345_v57 = vsel %vm317_vm2, %v340_v53, %v344_v54  ;;  %v2442_v54 = vld [vmem:[%s3311_s1 + $0x1c8] sm:$0xff] }
  0x49   : > { %v412_v45 = vsel %vm403_vm0, %v409_v21, %v411_v39  ;;  %v459_v46 = vsel %vm444_vm1, %v454_v22, %v458_v40  ;;  %v2941_v21 = vshrl.u32 %v2824_v62, 16  ;;  %v2435_v22 = vld [vmem:[%s3311_s1 + $0x190] sm:$0xff] }
  0x4b   : > { %1323 = vmatpush.bf16.msrb.mxu2 %v2401_v47  ;;  %1269 = vmatpush.bf16.msrb.mxu1 %v2393_v48  ;;  %v2437_v47 = vld [vmem:[%s3311_s1 + $0x1a0] sm:$0xff] }
  0x4c   : > { %1377 = vmatpush.bf16.msrb.mxu3 %v2409_v55  ;;  %1431 = vmatpush.bf16.msrb.mxu0 %v2417_v56  ;;  %v2429_v48 = vld [vmem:[%s3311_s1 + $0x160] sm:$0xff]  ;;  %v413_v55 = vrot.slane %v2680_v11, 1 }
  0x4e   : > { %1236 = vmatmul.bf16.gmra.mxu1 %v2821_v61  ;;  %1251 = vmatmul.bf16.gmra.mxu2 %v2824_v62  ;;  %v414_v58 = vsel %vm403_vm0, %v411_v39, %v413_v55  ;;  %v416_v15 = vsel %vm403_vm0, %v413_v55, %v415_v12  ;;  %v2964_v39 = vshll.u32 %v2698_v17, 16 }
  0x4f   : > { %1532 = vmatpush.bf16.msra.mxu2 %v2440_v49  ;;  %1478 = vmatpush.bf16.msra.mxu1 %v2432_v50  ;;  %v2895_v49 = vshll.u32 %v2680_v11, 16  ;;  %v2898_v50 = vshrl.u32 %v2680_v11, 16 }
  0x50   : > { %1586 = vmatpush.bf16.msra.mxu3 %v2448_v59  ;;  %1640 = vmatpush.bf16.msra.mxu0 %v2456_v60  ;;  %v2453_v60 = vld [vmem:[%s3311_s1 + $0x220] sm:$0xff] }
  0x51   : > { %1378 = vmatmul.bf16.vlgmr.msrb.gmra.mxu3 %v408_v1  ;;  %1432 = vmatmul.bf16.vlgmr.msrb.gmra.mxu0 %v451_v2  ;;  %v460_v51 = vrot.slane %v2898_v50, 1  ;;  %v461_v52 = vrot.slane %v2895_v49, 2  ;;  %v2921_v2 = vshll.u32 %v2744_v31, 16 }
  0x53   : > { %1533 = vmatpush.bf16.msra.mxu2 %v2439_v3  ;;  %1479 = vmatpush.bf16.msra.mxu1 %v2431_v5  ;;  %v462_v56 = vor.u32 %v461_v52, %v460_v51  ;;  %v2924_v3 = vshrl.u32 %v2744_v31, 16  ;;  %v465_v5 = vrot.slane %v2921_v2, 2 }
  0x54   : > { %1587 = vmatpush.bf16.msra.mxu3 %v2447_v4  ;;  %1641 = vmatpush.bf16.msra.mxu0 %v2455_v7  ;;  %v352_v7 = vrot.slane %v2871_v32, 1 }
  0x55   : > { %v463_v59 = vsel %vm444_vm1, %v458_v40, %v462_v56  ;;  %v464_v4 = vrot.slane %v2924_v3, 1  ;;  %v2967_v40 = vshrl.u32 %v2698_v17, 16 }
  0x56   : > { %v353_v14 = vsel %vm317_vm2, %v348_v6, %v352_v7 }
  0x57   : > { %1534 = vmatpush.bf16.msra.mxu2 %v2438_v27  ;;  %1480 = vmatpush.bf16.msra.mxu1 %v2430_v28  ;;  %v466_v13 = vor.u32 %v465_v5, %v464_v4  ;;  %v417_v27 = vrot.slane %v2824_v62, 1  ;;  %v2450_v4 = vld [vmem:[%s3311_s1 + $0x208] sm:$0xff] }
  0x58   : > { %1588 = vmatpush.bf16.msra.mxu3 %v2446_v16  ;;  %1642 = vmatpush.bf16.msra.mxu0 %v2454_v29  ;;  %v2443_v16 = vld [vmem:[%s3311_s1 + $0x1d0] sm:$0xff] }
  0x59   : > { %v467_v18 = vsel %vm444_vm1, %v462_v56, %v466_v13  ;;  %v418_v35 = vsel %vm403_vm0, %v415_v12, %v417_v27 }
  0x5b   : > { %1535 = vmatpush.bf16.msra.mxu2 %v2437_v47  ;;  %1481 = vmatpush.bf16.msra.mxu1 %v2429_v48  ;;  %v368_v47 = vrot.slane %v2921_v2, 1  ;;  %v2434_v48 = vld [vmem:[%s3311_s1 + $0x188] sm:$0xff] }
  0x5c   : > { %1589 = vmatpush.bf16.msra.mxu3 %v2445_v42  ;;  %1643 = vmatpush.bf16.msra.mxu0 %v2453_v60  ;;  %v2974_v42 = vrot.slane %v2698_v17, 1  ;;  %v2999_v60 = vld [vmem:[%s2668_s26 + $0x48] sm:$0xff]  }
  0x5d   : > { %v372_v12 = vor.u32 %v2924_v3, %v368_v47 }
  0x5e   : > { %1270 = vmatmul.bf16.vlgmr.msrb.gmra.mxu1 %v329_v23  ;;  %1324 = vmatmul.bf16.vlgmr.msrb.gmra.mxu2 %v406_v24  ;;  %v468_v23 = vrot.slane %v2941_v21, 1  ;;  %v469_v24 = vrot.slane %v2938_v20, 2  ;;  %v2987_v55 = vsel %vm403_vm0, %v417_v27, %v2974_v42 }
  0x5f   : > { %1536 = vmatpush.bf16.msra.mxu2 %v2436_v63  ;;  %v477_v63 = vshrl.u32 %v2999_v60, 16 }
  0x60   : > { %1590 = vmatpush.bf16.msra.mxu3 %v2444_v0  ;;  %1644 = vmatpush.bf16.msra.mxu0 %v2452_v19  ;;  %v470_v28 = vor.u32 %v469_v24, %v468_v23  ;;  %v480_v0 = vshll.u32 %v2999_v60, 16 }
  0x61   : > { %1383 = vmatmul.bf16.gmra.mxu3 %v410_v25  ;;  %1437 = vmatmul.bf16.gmra.mxu0 %v455_v26  ;;  %v360_v26 = vrot.slane %v2895_v49, 1  ;;  %v479_v6 = vrot.slane %v477_v63, 1 }
  0x62   : > { %v471_v37 = vsel %vm444_vm1, %v466_v13, %v470_v28  ;;  %v376_v13 = vrot.slane %v2938_v20, 1 }
  0x63   : > { %1537 = vmatpush.bf16.msra.mxu2 %v2435_v22 }
  0x64   : > { %1591 = vmatpush.bf16.msra.mxu3 %v2443_v16  ;;  %1645 = vmatpush.bf16.msra.mxu0 %v2451_v38  ;;  %v377_v23 = vsel %vm317_vm2, %v372_v12, %v376_v13 }
  0x67   : > { %1538 = vmatpush.bf16.msra.mxu2 %v2434_v48 }
  0x68   : > { %1592 = vmatpush.bf16.msra.mxu3 %v2442_v54  ;;  %1646 = vmatpush.bf16.msra.mxu0 %v2450_v4  ;;  %v384_v54 = vrot.slane %v2964_v39, 1 }
  0x6e   : > { %1275 = vmatmul.bf16.gmra.mxu1 %v337_v41  ;;  %1329 = vmatmul.bf16.gmra.mxu2 %v408_v1  ;;  %v2428_v1 = vld [vmem:[%s3311_s1 + $0x158] sm:$0xff]  ;;  %v472_v41 = vrot.slane %v2967_v40, 1 }
  0x6f   : > { %1482 = vmatpush.bf16.msra.mxu1 %v2428_v1 }
  0x71   : > { %1388 = vmatmul.bf16.gmra.mxu3 %v412_v45  ;;  %1442 = vmatmul.bf16.gmra.mxu0 %v459_v46  ;;  %v364_v46 = vor.u32 %v2898_v50, %v360_v26 }
  0x73   : > { %1483 = vmatpush.bf16.msra.mxu1 %v2427_v34  ;;  %v369_v53 = vsel %vm317_vm2, %v364_v46, %v368_v47  ;;  %v2425_v34 = vld [vmem:[%s3311_s1 + $0x140] sm:$0xff] }
  0x74   : > { %v2449_v46 = vld [vmem:[%s3311_s1 + $0x200] sm:$0xff] }
  0x75   : > { %1647 = vmatpush.bf16.msra.mxu0 %v2449_v46  ;;  %v546_v46 = vrot.slane %v2779_v43, 3 }
  0x7e   : > { %1280 = vmatmul.bf16.gmra.mxu1 %v345_v57  ;;  %1334 = vmatmul.bf16.gmra.mxu2 %v410_v25  ;;  %v356_v25 = vor.u32 %v2874_v33, %v352_v7  ;;  %v482_v7 = vrot.slane %v480_v0, 2 }
  0x80   : > { %v361_v29 = vsel %vm317_vm2, %v356_v25, %v360_v26  ;;  %v483_v19 = vor.u32 %v482_v7, %v479_v6  ;;  %v2433_v26 = vld [vmem:[%s3311_s1 + $0x180] sm:$0xff] }
  0x81   : > { %1393 = vmatmul.bf16.gmra.mxu3 %v414_v58  ;;  %1447 = vmatmul.bf16.gmra.mxu0 %v463_v59 }
  0x82   : > { %1539 = vmatpush.bf16.msra.mxu2 %v2433_v26 }
  0x8e   : > { %1285 = vmatmul.bf16.gmra.mxu1 %v353_v14  ;;  %1339 = vmatmul.bf16.gmra.mxu2 %v412_v45  ;;  %v473_v45 = vrot.slane %v2964_v39, 2  ;;  %v438_v14 = vrot.slane %v2999_v60, 1 }
  0x90   : > { %v474_v51 = vor.u32 %v473_v45, %v472_v41  ;;  %v439_v24 = vsel %vm403_vm0, %v2974_v42, %v438_v14 }
  0x91   : > { %1398 = vmatmul.bf16.gmra.mxu3 %v416_v15  ;;  %1452 = vmatmul.bf16.gmra.mxu0 %v467_v18  ;;  %v3020_v18 = vld [vmem:[%s2668_s26 + $0x50] sm:$0xff]  }
  0x92   : > { %v475_v57 = vsel %vm444_vm1, %v470_v28, %v474_v51  ;;  %v2463_v25 = vunpack.c.l.b16 %v3020_v18  ;;  %v484_v28 = vsel %vm444_vm1, %v474_v51, %v483_v19 }
  0x9e   : > { %1290 = vmatmul.bf16.gmra.mxu1 %v361_v29  ;;  %1344 = vmatmul.bf16.gmra.mxu2 %v414_v58  ;;  %v2426_v58 = vld [vmem:[%s3311_s1 + $0x148] sm:$0xff]  ;;  %v2441_v29 = vld [vmem:[%s3311_s1 + $0x1c0] sm:$0xff] }
  0x9f   : > { %1484 = vmatpush.bf16.msra.mxu1 %v2426_v58  ;;  %1593 = vmatpush.bf16.msra.mxu3 %v2441_v29 }
  0xa1   : > { %1403 = vmatmul.bf16.gmra.mxu3 %v418_v35  ;;  %1457 = vmatmul.bf16.gmra.mxu0 %v471_v37  ;;  %v3042_v37 = vpack.c.b16 %v2463_v25, %v2463_v25 }
  0xa3   : > { %1485 = vmatpush.bf16.msra.mxu1 %v2425_v34  ;;  %v486_v38 = vshrl.u32 %v3042_v37, 16  ;;  %v489_v41 = vshll.u32 %v3042_v37, 16  ;;  %v440_v58 = vrot.slane %v3042_v37, 1 }
  0xa5   : > { %v488_v48 = vrot.slane %v486_v38, 1  ;;  %v491_v51 = vrot.slane %v489_v41, 2  ;;  %v545_v41 = vrot.slane %v2782_v44, 2  ;;  %v605_v44 = vrot.slane %v2741_v30, 3 }
  0xa7   : > { %v492_v6 = vor.u32 %v491_v51, %v488_v48 }
  0xa9   : > { %v493_v25 = vsel %vm444_vm1, %v483_v19, %v492_v6  ;;  %v388_v19 = vor.u32 %v2967_v40, %v384_v54 }
  0xab   : > { %v2979_v52 = vpop.f32.mrf.mxu1 }
  0xae   : > { %1295 = vmatmul.bf16.gmra.mxu1 %v369_v53  ;;  %1349 = vmatmul.bf16.gmra.mxu2 %v416_v15  ;;  %v2989_v56 = vpop.f32.mrf.mxu0  ;;  %v380_v53 = vor.u32 %v2941_v21, %v376_v13 }
  0xb0   : > { %v385_v12 = vsel %vm317_vm2, %v380_v53, %v384_v54 }
  0xb1   : > { %1408 = vmatmul.bf16.gmra.mxu3 %v2987_v55  ;;  %v2996_v59 = vpop.f32.mrf.mxu2  ;;  %1462 = vmatmul.bf16.gmra.mxu0 %v475_v57 }
  0xb3   : > { %v3003_v1 = vpop.f32.mrf.mxu1 }
  0xb4   : > { %v3031_v27 = vpop.f32.mrf.mxu3 }
  0xb6   : > { %v3008_v5 = vpop.f32.mrf.mxu0 }
  0xb9   : > { %v3017_v15 = vpop.f32.mrf.mxu2 }
  0xbb   : > { %v3022_v22 = vpop.f32.mrf.mxu1 }
  0xbc   : > { %v3057_v57 = vpop.f32.mrf.mxu3 }
  0xbe   : > { %1300 = vmatmul.bf16.gmra.mxu1 %v377_v23  ;;  %1354 = vmatmul.bf16.gmra.mxu2 %v418_v35  ;;  %v3033_v16 = vpop.f32.mrf.mxu0  ;;  %v2459_v23 = vunpack.c.l.b16 %v2999_v60 }
  0xc0   : > { %v316_v26 = vpack.c.b16 %v2459_v23, %v2459_v23 }
  0xc1   : > { %1413 = vmatmul.bf16.gmra.mxu3 %v439_v24  ;;  %v3044_v35 = vpop.f32.mrf.mxu2  ;;  %1467 = vmatmul.bf16.gmra.mxu0 %v484_v28  ;;  %v441_v24 = vsel %vm403_vm0, %v438_v14, %v440_v58  ;;  %v548_v14 = vrot.slane %v2847_v9, 2  ;;  %v547_v58 = vor.u32 %v546_v46, %v545_v41 }
  0xc2   : > { %v390_v38 = vshll.u32 %v316_v26, 16  ;;  %v421_v53 = vrot.slane %v316_v26, 1 }
  0xc3   : > { %v3048_v45 = vpop.f32.mrf.mxu1 }
  0xc4   : > { %v392_v51 = vrot.slane %v390_v38, 1 }
  0xc6   : > { %v3053_v47 = vpop.f32.mrf.mxu0  ;;  %v393_v9 = vsel %vm317_vm2, %v388_v19, %v392_v51 }
  0xc9   : > { %v3060_v4 = vpop.f32.mrf.mxu2 }
  0xcb   : > { %v3062_v7 = vpop.f32.mrf.mxu1 }
  0xce   : > { %1305 = vmatmul.bf16.gmra.mxu1 %v385_v12  ;;  %1359 = vmatmul.bf16.gmra.mxu2 %v2987_v55  ;;  %v1433_v13 = vpop.f32.mrf.mxu0  ;;  %v549_v55 = vrot.slane %v2844_v8, 3  ;;  %v422_v8 = vsel %vm403_vm0, %v2974_v42, %v421_v53  ;;  %v552_v42 = vrot.slane %v2874_v33, 2 }
  0xd0   : > { %v550_v6 = vor.u32 %v549_v55, %v548_v14 }
  0xd1   : > { %1418 = vmatmul.bf16.gmra.mxu3 %v441_v24  ;;  %v3069_v28 = vpop.f32.mrf.mxu2  ;;  %1472 = vmatmul.bf16.gmra.mxu0 %v493_v25  ;;  %v604_v24 = vrot.slane %v2677_v10, 3 }
  0xd2   : > { %v551_v25 = vsel %vm544_vm3, %v547_v58, %v550_v6 }
  0xd3   : > { %v3071_v34 = vpop.f32.mrf.mxu1  ;;  %v606_v38 = vsel %vm603_vm4, %v604_v24, %v605_v44  ;;  %v505_v24 = vrot.slane %v2677_v10, 2 }
  0xd4   : > { %v1379_v29 = vpop.f32.mrf.mxu3 }
  0xd6   : > { %v1435_v48 = vpop.f32.mrf.mxu0 }
  0xd9   : > { %v3078_v12 = vpop.f32.mrf.mxu2 }
  0xdb   : > { %v1271_v43 = vpop.f32.mrf.mxu1 }
  0xdc   : > { %v1381_v23 = vpop.f32.mrf.mxu3  ;;  %v1272_v54 = vadd.f32 %v1271_v43, %v2989_v56  ;;  %v553_v56 = vrot.slane %v2871_v32, 3  ;;  %v504_v43 = vrot.slane %v2759_v36, 2 }
  0xde   : > { %1310 = vmatmul.bf16.gmra.mxu1 %v393_v9  ;;  %1364 = vmatmul.bf16.gmra.mxu2 %v422_v8  ;;  %v1438_v26 = vpop.f32.mrf.mxu0  ;;  %v507_v9 = vrot.slane %v2741_v30, 2  ;;  %v554_v8 = vor.u32 %v553_v56, %v552_v42  ;;  %v506_v33 = vsel %vm503_vm5, %v504_v43, %v505_v24 }
  0xe0   : > { %v508_v32 = vsel %vm503_vm5, %v505_v24, %v507_v9  ;;  %v555_v36 = vsel %vm544_vm3, %v550_v6, %v554_v8  ;;  %v557_v6 = vrot.slane %v2895_v49, 3 }
  0xe1   : > { %1594 = vmatmul.bf16.vlgmr.msra.gmra.mxu3 %v551_v25  ;;  %v1325_v41 = vpop.f32.mrf.mxu2  ;;  %1648 = vmatmul.bf16.vlgmr.msra.gmra.mxu0 %v606_v38 }
  0xe2   : > { %v1326_v46 = vadd.f32 %v1325_v41, %v1272_v54 }
  0xe3   : > { %v1273_v55 = vpop.f32.mrf.mxu1 }
  0xe4   : > { %v1384_v14 = vpop.f32.mrf.mxu3  ;;  %v1380_v19 = vadd.f32 %v1379_v29, %v1326_v46  ;;  %v1274_v51 = vadd.f32 %v1273_v55, %v3008_v5  ;;  %v607_v5 = vrot.slane %v2821_v61, 3 }
  0xe6   : > { %v1440_v53 = vpop.f32.mrf.mxu0  ;;  %v3091_v58 = vadd.f32 %v1433_v13, %v1380_v19  ;;  %v608_v30 = vsel %vm603_vm4, %v605_v44, %v607_v5  ;;  %v509_v44 = vrot.slane %v2821_v61, 2 }
  0xe9   : > { %v1327_v54 = vpop.f32.mrf.mxu2 }
  0xea   : > { %v1328_v25 = vadd.f32 %v1327_v54, %v1274_v51 }
  0xeb   : > { %v1276_v38 = vpop.f32.mrf.mxu1 }
  0xec   : > { %v1386_v29 = vpop.f32.mrf.mxu3  ;;  %v1382_v13 = vadd.f32 %v1381_v23, %v1328_v25  ;;  %v1277_v41 = vadd.f32 %v1276_v38, %v3033_v16  ;;  %v556_v16 = vrot.slane %v2898_v50, 2 }
  0xee   : > { %1486 = vmatmul.bf16.vlgmr.msra.gmra.mxu1 %v506_v33  ;;  %1540 = vmatmul.bf16.vlgmr.msra.gmra.mxu2 %v508_v32  ;;  %v1443_v10 = vpop.f32.mrf.mxu0  ;;  %v3102_v46 = vadd.f32 %v1435_v48, %v1382_v13  ;;  %v558_v48 = vor.u32 %v557_v6, %v556_v16  ;;  %v609_v33 = vrot.slane %v2680_v11, 3  ;;  %v611_v6 = vrot.slane %v2744_v31, 3 }
  0xf0   : > { %v610_v50 = vsel %vm603_vm4, %v607_v5, %v609_v33  ;;  %v511_v5 = vrot.slane %v2680_v11, 2 }
  0xf1   : > { %1599 = vmatmul.bf16.gmra.mxu3 %v555_v36  ;;  %v1330_v55 = vpop.f32.mrf.mxu2  ;;  %1653 = vmatmul.bf16.gmra.mxu0 %v608_v30 }
  0xf2   : > { %v1331_v19 = vadd.f32 %v1330_v55, %v1277_v41 }
  0xf3   : > { %v1278_v42 = vpop.f32.mrf.mxu1 }
  0xf4   : > { %v1389_v51 = vpop.f32.mrf.mxu3  ;;  %v1385_v56 = vadd.f32 %v1384_v14, %v1331_v19  ;;  %v1279_v23 = vadd.f32 %v1278_v42, %v3053_v47  ;;  %v510_v14 = vsel %vm503_vm5, %v507_v9, %v509_v44  ;;  %v559_v47 = vsel %vm544_vm3, %v554_v8, %v558_v48 }
  0xf5   : > { %v560_v9 = vrot.slane %v2924_v3, 2  ;;  %v561_v8 = vrot.slane %v2921_v2, 3 }
  0xf6   : > { %v1445_v43 = vpop.f32.mrf.mxu0  ;;  %v3107_v24 = vadd.f32 %v1438_v26, %v1385_v56 }
  0xf7   : > { %v562_v56 = vor.u32 %v561_v8, %v560_v9 }
  0xf9   : > { %v1332_v54 = vpop.f32.mrf.mxu2  ;;  %v563_v3 = vsel %vm544_vm3, %v558_v48, %v562_v56  ;;  %v565_v48 = vrot.slane %v2938_v20, 3 }
  0xfa   : > { %v1333_v25 = vadd.f32 %v1332_v54, %v1279_v23 }
  0xfb   : > { %v1281_v13 = vpop.f32.mrf.mxu1 }
  0xfc   : > { %v1391_v38 = vpop.f32.mrf.mxu3  ;;  %v1387_v41 = vadd.f32 %v1386_v29, %v1333_v25  ;;  %v1282_v61 = vadd.f32 %v1281_v13, %v2979_v52 }
  0xfe   : > { %1491 = vmatmul.bf16.gmra.mxu1 %v508_v32  ;;  %1545 = vmatmul.bf16.gmra.mxu2 %v510_v14  ;;  %v1448_v49 = vpop.f32.mrf.mxu0  ;;  %v3114_v26 = vadd.f32 %v1440_v53, %v1387_v41 }
 0x101   : > { %1604 = vmatmul.bf16.gmra.mxu3 %v559_v47  ;;  %v1335_v36 = vpop.f32.mrf.mxu2  ;;  %1658 = vmatmul.bf16.gmra.mxu0 %v610_v50 }
 0x102   : > { %v1336_v30 = vadd.f32 %v1335_v36, %v1282_v61 }
 0x103   : > { %v1283_v19 = vpop.f32.mrf.mxu1 }
 0x104   : > { %v1394_v55 = vpop.f32.mrf.mxu3  ;;  %v1390_v42 = vadd.f32 %v1389_v51, %v1336_v30  ;;  %v1284_v53 = vadd.f32 %v1283_v19, %v3003_v1  ;;  %v512_v51 = vsel %vm503_vm5, %v509_v44, %v511_v5  ;;  %v564_v44 = vrot.slane %v2941_v21, 2 }
 0x106   : > { %v1450_v29 = vpop.f32.mrf.mxu0  ;;  %v3119_v32 = vadd.f32 %v1443_v10, %v1390_v42  ;;  %v612_v10 = vsel %vm603_vm4, %v609_v33, %v611_v6  ;;  %v513_v33 = vrot.slane %v2744_v31, 2  ;;  %v566_v36 = vor.u32 %v565_v48, %v564_v44 }
 0x107   : > { %v613_v42 = vrot.slane %v2824_v62, 3 }
 0x108   : > { %v567_v21 = vsel %vm544_vm3, %v562_v56, %v566_v36  ;;  %v569_v56 = vrot.slane %v2964_v39, 3 }
 0x109   : > { %v1337_v23 = vpop.f32.mrf.mxu2 }
 0x10a   : > { %v1338_v52 = vadd.f32 %v1337_v23, %v1284_v53 }
 0x10b   : > { %v1286_v54 = vpop.f32.mrf.mxu1 }
 0x10c   : > { %v1396_v16 = vpop.f32.mrf.mxu3  ;;  %v1392_v25 = vadd.f32 %v1391_v38, %v1338_v52  ;;  %v1287_v1 = vadd.f32 %v1286_v54, %v3022_v22 }
 0x10e   : > { %1496 = vmatmul.bf16.gmra.mxu1 %v510_v14  ;;  %1550 = vmatmul.bf16.gmra.mxu2 %v512_v51  ;;  %v1453_v2 = vpop.f32.mrf.mxu0  ;;  %v3127_v11 = vadd.f32 %v1445_v43, %v1392_v25 }
 0x111   : > { %1609 = vmatmul.bf16.gmra.mxu3 %v563_v3  ;;  %v1340_v13 = vpop.f32.mrf.mxu2  ;;  %1663 = vmatmul.bf16.gmra.mxu0 %v612_v10 }
 0x112   : > { %v1341_v41 = vadd.f32 %v1340_v13, %v1287_v1  ;;  %v615_v13 = vrot.slane %v2698_v17, 3 }
 0x113   : > { %v1288_v50 = vpop.f32.mrf.mxu1 }
 0x114   : > { %v1399_v47 = vpop.f32.mrf.mxu3  ;;  %v1395_v61 = vadd.f32 %v1394_v55, %v1341_v41  ;;  %v1289_v43 = vadd.f32 %v1288_v50, %v3048_v45  ;;  %v514_v55 = vsel %vm503_vm5, %v511_v5, %v513_v33  ;;  %v568_v5 = vrot.slane %v2967_v40, 2 }
 0x116   : > { %v1455_v38 = vpop.f32.mrf.mxu0  ;;  %v3132_v14 = vadd.f32 %v1448_v49, %v1395_v61  ;;  %v614_v49 = vsel %vm603_vm4, %v611_v6, %v613_v42  ;;  %v515_v6 = vrot.slane %v2824_v62, 2  ;;  %v570_v3 = vor.u32 %v569_v56, %v568_v5 }
 0x118   : > { %v571_v40 = vsel %vm544_vm3, %v566_v36, %v570_v3  ;;  %v573_v36 = vrot.slane %v480_v0, 3 }
 0x119   : > { %v1342_v30 = vpop.f32.mrf.mxu2 }
 0x11a   : > { %v1343_v22 = vadd.f32 %v1342_v30, %v1289_v43 }
 0x11b   : > { %v1291_v9 = vpop.f32.mrf.mxu1 }
 0x11c   : > { %v1401_v19 = vpop.f32.mrf.mxu3  ;;  %v1397_v8 = vadd.f32 %v1396_v16, %v1343_v22  ;;  %v1292_v45 = vadd.f32 %v1291_v9, %v3062_v7 }
 0x11e   : > { %1501 = vmatmul.bf16.gmra.mxu1 %v512_v51  ;;  %1555 = vmatmul.bf16.gmra.mxu2 %v514_v55  ;;  %v1458_v20 = vpop.f32.mrf.mxu0  ;;  %v3140_v31 = vadd.f32 %v1450_v29, %v1397_v8 }
 0x121   : > { %1614 = vmatmul.bf16.gmra.mxu3 %v567_v21  ;;  %v1345_v53 = vpop.f32.mrf.mxu2  ;;  %1668 = vmatmul.bf16.gmra.mxu0 %v614_v49  ;;  %v617_v21 = vrot.slane %v2999_v60, 3 }
 0x122   : > { %v1346_v23 = vadd.f32 %v1345_v53, %v1292_v45 }
 0x123   : > { %v1293_v54 = vpop.f32.mrf.mxu1 }
 0x124   : > { %v1404_v52 = vpop.f32.mrf.mxu3  ;;  %v1400_v25 = vadd.f32 %v1399_v47, %v1346_v23  ;;  %v1294_v29 = vadd.f32 %v1293_v54, %v3071_v34  ;;  %v516_v47 = vsel %vm503_vm5, %v513_v33, %v515_v6  ;;  %v572_v33 = vrot.slane %v477_v63, 2 }
 0x125   : > { %v577_v23 = vshrl.u32 %v3020_v18, 16 }
 0x126   : > { %v1460_v16 = vpop.f32.mrf.mxu0  ;;  %v3145_v51 = vadd.f32 %v1453_v2, %v1400_v25  ;;  %v616_v2 = vsel %vm603_vm4, %v613_v42, %v615_v13 }
 0x129   : > { %v1347_v10 = vpop.f32.mrf.mxu2 }
 0x12a   : > { %v1348_v7 = vadd.f32 %v1347_v10, %v1294_v29  ;;  %v579_v29 = vrot.slane %v577_v23, 2  ;;  %v259_v10 = vld [vmem:[%s2668_s26 + $0x58] sm:$0xf]  ;;  %s2046_s26 = sshll.u32 %s2557_s15, 3  ;;  %s2048_s15 = sshll.u32 %s3326_s16, 5 }
 0x12b   : > { %v1296_v41 = vpop.f32.mrf.mxu1  ;;  %p229_p7 = scmp.lt.s32.totalorder %s2046_s26, 15 }
 0x12c   : > { %v1406_v1 = vpop.f32.mrf.mxu3  ;;  %v1402_v50 = vadd.f32 %v1401_v19, %v1348_v7  ;;  %v1297_v34 = vadd.f32 %v1296_v41, %v2996_v59  ;;  %v574_v59 = vor.u32 %v573_v36, %v572_v33  ;;  %v535_v41 = vunpack.c.l.b16 %v259_v10 }
 0x12d   : > { %s3328_s26 = smov (!%p229_p7, %s2046_s26), 15 }
 0x12e   : > { %1506 = vmatmul.bf16.gmra.mxu1 %v514_v55  ;;  %1560 = vmatmul.bf16.gmra.mxu2 %v516_v47  ;;  %v1463_v39 = vpop.f32.mrf.mxu0  ;;  %v3153_v62 = vadd.f32 %v1455_v38, %v1402_v50  ;;  %v517_v38 = vrot.slane %v2698_v17, 2  ;;  %v575_v53 = vsel %vm544_vm3, %v570_v3, %v574_v59  ;;  %v618_v17 = vsel %vm603_vm4, %v615_v13, %v617_v21  ;;  %s2047_s7 = sshll.u32 %s3328_s26, 1 }
 0x12f   : > { %s233_s8 = sadd.s32 %s2048_s15, %s2047_s7 }
 0x130   : > { %v518_v45 = vsel %vm503_vm5, %v515_v6, %v517_v38  ;;  %s2049_s16 = sshll.u32 %s233_s8, 3 }
 0x131   : > { %1619 = vmatmul.bf16.gmra.mxu3 %v571_v40  ;;  %v1350_v61 = vpop.f32.mrf.mxu2  ;;  %1673 = vmatmul.bf16.gmra.mxu0 %v616_v2  ;;  %v619_v2 = vrot.slane %v3020_v18, 3  ;;  %s3230_s11 = scalar_lea.vmem %s3314_s4, %s2049_s16 }
 0x132   : > { %v1351_v44 = vadd.f32 %v1350_v61, %v1297_v34 }
 0x133   : > { %v1298_v43 = vpop.f32.mrf.mxu1 }
 0x134   : > { %v1409_v48 = vpop.f32.mrf.mxu3  ;;  %v1405_v30 = vadd.f32 %v1404_v52, %v1351_v44  ;;  %v1299_v42 = vadd.f32 %v1298_v43, %v3017_v15  ;;  %v580_v52 = vshll.u32 %v3020_v18, 16 }
 0x136   : > { %v1465_v22 = vpop.f32.mrf.mxu0  ;;  %v3160_v19 = vadd.f32 %v1458_v20, %v1405_v30  ;;  %v582_v3 = vrot.slane %v580_v52, 3 }
 0x138   : > { %v583_v13 = vor.u32 %v582_v3, %v579_v29 }
 0x139   : > { %v1352_v9 = vpop.f32.mrf.mxu2 }
 0x13a   : > { %v1353_v55 = vadd.f32 %v1352_v9, %v1299_v42 }
 0x13b   : > { %v1301_v49 = vpop.f32.mrf.mxu1 }
 0x13c   : > { %v1411_v8 = vpop.f32.mrf.mxu3  ;;  %v1407_v63 = vadd.f32 %v1406_v1, %v1353_v55  ;;  %v1302_v15 = vadd.f32 %v1301_v49, %v3044_v35 }
 0x13e   : > { %1511 = vmatmul.bf16.gmra.mxu1 %v516_v47  ;;  %1565 = vmatmul.bf16.gmra.mxu2 %v518_v45  ;;  %v1468_v0 = vpop.f32.mrf.mxu0  ;;  %v3168_v20 = vadd.f32 %v1460_v16, %v1407_v63  ;;  %v3177_v16 = vrot.slane %v2999_v60, 2 }
 0x140   : > { %v520_v61 = vsel %vm503_vm5, %v517_v38, %v3177_v16 }
 0x141   : > { %1624 = vmatmul.bf16.gmra.mxu3 %v575_v53  ;;  %v1355_v54 = vpop.f32.mrf.mxu2  ;;  %1678 = vmatmul.bf16.gmra.mxu0 %v618_v17 }
 0x142   : > { %v1356_v25 = vadd.f32 %v1355_v54, %v1302_v15 }
 0x143   : > { %v1303_v56 = vpop.f32.mrf.mxu1 }
 0x144   : > { %v1414_v5 = vpop.f32.mrf.mxu3  ;;  %v1410_v6 = vadd.f32 %v1409_v48, %v1356_v25  ;;  %v1304_v35 = vadd.f32 %v1303_v56, %v3060_v4  ;;  %v537_v48 = vpack.c.b16 %v535_v41, %v535_v41  ;;  %v620_v4 = vsel %vm603_vm4, %v617_v21, %v619_v2 }
 0x145   : > { %v538_v21 = vrot.slane %v3020_v18, 2 }
 0x146   : > { %v1470_v7 = vpop.f32.mrf.mxu0  ;;  %v3174_v1 = vadd.f32 %v1463_v39, %v1410_v6  ;;  %v584_v39 = vsel %vm544_vm3, %v574_v59, %v583_v13  ;;  %v586_v33 = vshrl.u32 %v537_v48, 16  ;;  %v589_v36 = vshll.u32 %v537_v48, 16 }
 0x147   : > { %v621_v23 = vrot.slane %v537_v48, 3  ;;  %v539_v54 = vsel %vm503_vm5, %v3177_v16, %v538_v21 }
 0x148   : > { %v588_v59 = vrot.slane %v586_v33, 2  ;;  %v591_v49 = vrot.slane %v589_v36, 3 }
 0x149   : > { %v1357_v47 = vpop.f32.mrf.mxu2  ;;  %v622_v56 = vsel %vm603_vm4, %v619_v2, %v621_v23 }
 0x14a   : > { %v1358_v50 = vadd.f32 %v1357_v47, %v1304_v35  ;;  %v592_v53 = vor.u32 %v591_v49, %v588_v59 }
 0x14b   : > { %v1306_v34 = vpop.f32.mrf.mxu1 }
 0x14c   : > { %v1416_v40 = vpop.f32.mrf.mxu3  ;;  %v1412_v44 = vadd.f32 %v1411_v8, %v1358_v50  ;;  %v1307_v30 = vadd.f32 %v1306_v34, %v3069_v28  ;;  %v540_v50 = vrot.slane %v537_v48, 2 }
 0x14e   : > { %1516 = vmatmul.bf16.gmra.mxu1 %v518_v45  ;;  %1570 = vmatmul.bf16.gmra.mxu2 %v520_v61  ;;  %v1473_v60 = vpop.f32.mrf.mxu0  ;;  %v3185_v43 = vadd.f32 %v1465_v22, %v1412_v44  ;;  %v541_v44 = vsel %vm503_vm5, %v538_v21, %v540_v50 }
 0x151   : > { %1629 = vmatmul.bf16.gmra.mxu3 %v584_v39  ;;  %v1360_v42 = vpop.f32.mrf.mxu2  ;;  %1683 = vmatmul.bf16.gmra.mxu0 %v620_v4 }
 0x152   : > { %v1361_v9 = vadd.f32 %v1360_v42, %v1307_v30 }
 0x153   : > { %v1308_v55 = vpop.f32.mrf.mxu1 }
 0x154   : > { %v1419_v38 = vpop.f32.mrf.mxu3  ;;  %v1415_v8 = vadd.f32 %v1414_v5, %v1361_v9  ;;  %v1309_v22 = vadd.f32 %v1308_v55, %v3078_v12  ;;  %v593_v5 = vsel %vm544_vm3, %v583_v13, %v592_v53  ;;  %v521_v13 = vrot.slane %v3042_v37, 2  ;;  %v3218_v9 = vld [vmem:[%s3313_s3] ss:$0 sm:$0xff] }
 0x156   : > { %v1475_v45 = vpop.f32.mrf.mxu0  ;;  %v3188_v63 = vadd.f32 %v1468_v0, %v1415_v8 }
 0x159   : > { %v1362_v17 = vpop.f32.mrf.mxu2 }
 0x15a   : > { %v1363_v28 = vadd.f32 %v1362_v17, %v1309_v22 }
 0x15b   : > { %v1311_v52 = vpop.f32.mrf.mxu1 }
 0x15c   : > { %v1421_v15 = vpop.f32.mrf.mxu3  ;;  %v1417_v25 = vadd.f32 %v1416_v40, %v1363_v28  ;;  %v1312_v12 = vadd.f32 %v1311_v52, %v3031_v27  ;;  %v522_v27 = vsel %vm503_vm5, %v3177_v16, %v521_v13  ;;  %v3213_v16 = vld [vmem:[%s3312_s2] ss:$0 sm:$0xff] }
 0x15e   : > { %1521 = vmatmul.bf16.gmra.mxu1 %v520_v61  ;;  %1575 = vmatmul.bf16.gmra.mxu2 %v539_v54  ;;  %v1649_v0 = vpop.f32.mrf.mxu0  ;;  %v3196_v18 = vadd.f32 %v1470_v7, %v1417_v25 }
 0x161   : > { %1634 = vmatmul.bf16.gmra.mxu3 %v593_v5  ;;  %v1365_v6 = vpop.f32.mrf.mxu2  ;;  %1688 = vmatmul.bf16.gmra.mxu0 %v622_v56 }
 0x162   : > { %v1366_v29 = vadd.f32 %v1365_v6, %v1312_v12 }
 0x163   : > { %v1313_v10 = vpop.f32.mrf.mxu1 }
 0x164   : > { %v1595_v3 = vpop.f32.mrf.mxu3  ;;  %v1420_v35 = vadd.f32 %v1419_v38, %v1366_v29  ;;  %v1314_v40 = vadd.f32 %v1313_v10, %v3057_v57 }
 0x166   : > { %v1651_v41 = vpop.f32.mrf.mxu0  ;;  %v3199_v47 = vadd.f32 %v1473_v60, %v1420_v35 }
 0x169   : > { %v1367_v7 = vpop.f32.mrf.mxu2 }
 0x16a   : > { %v1368_v2 = vadd.f32 %v1367_v7, %v1314_v40 }
 0x16b   : > { %v1487_v61 = vpop.f32.mrf.mxu1 }
 0x16c   : > { %v1597_v34 = vpop.f32.mrf.mxu3  ;;  %v1422_v39 = vadd.f32 %v1421_v15, %v1368_v2  ;;  %v1488_v37 = vadd.f32 %v1487_v61, %v3091_v58 }
 0x16e   : > { %1526 = vmatmul.bf16.gmra.mxu1 %v522_v27  ;;  %1580 = vmatmul.bf16.gmra.mxu2 %v541_v44  ;;  %v1654_v60 = vpop.f32.mrf.mxu0  ;;  %v3206_v4 = vadd.f32 %v1475_v45, %v1422_v39 }
 0x171   : > { %v1541_v48 = vpop.f32.mrf.mxu2 }
 0x172   : > { %v1542_v57 = vadd.f32 %v1541_v48, %v1488_v37 }
 0x173   : > { %v1489_v33 = vpop.f32.mrf.mxu1 }
 0x174   : > { %v1600_v30 = vpop.f32.mrf.mxu3  ;;  %v1596_v36 = vadd.f32 %v1595_v3, %v1542_v57  ;;  %v1490_v55 = vadd.f32 %v1489_v33, %v3102_v46 }
 0x176   : > { %v1650_v42 = vadd.f32 %v1649_v0, %v1596_v36  ;;  %v1656_v58 = vpop.f32.mrf.mxu0 }
 0x178   : > { %v1698_v38 = vmul.f32 %v3213_v16, %v1650_v42 }
 0x179   : > { %v1543_v8 = vpop.f32.mrf.mxu2 }
 0x17a   : > { %v1720_v59 = vadd.f32 %v3218_v9, %v1698_v38  ;;  %v1544_v49 = vadd.f32 %v1543_v8, %v1490_v55 }
 0x17b   : > { %v1492_v21 = vpop.f32.mrf.mxu1 }
 0x17c   : > { %v1602_v45 = vpop.f32.mrf.mxu3  ;;  %v1738_v22 = vmax.f32 %v1720_v59, 0.0  ;;  %v1598_v53 = vadd.f32 %v1597_v34, %v1544_v49  ;;  %v1493_v54 = vadd.f32 %v1492_v21, %v3107_v24 }
 0x17e   : > { %v1774_v17 = vrot.slane %v1738_v22, 2  ;;  %v1775_v28 = vrot.slane %v1738_v22, 4  ;;  %v1776_v15 = vrot.slane %v1738_v22, 6  ;;  %1822 = vst [vmem:[#allocation1] ss:$4 sm:$0xff] %v1738_v22  ;;  %v1652_v23 = vadd.f32 %v1651_v41, %v1598_v53  ;;  %v1659_v52 = vpop.f32.mrf.mxu0 }
 0x180   : > { %1824 = vst [vmem:[#allocation1 + $0x1] ss:$4 sm:$0xff] %v1774_v17  ;;  %v1699_v46 = vmul.f32 %v3213_v16, %v1652_v23 }
 0x181   : > { %1826 = vst [vmem:[#allocation1 + $0x2] ss:$4 sm:$0xff] %v1775_v28  ;;  %v1546_v25 = vpop.f32.mrf.mxu2 }
 0x182   : > { %1828 = vst [vmem:[#allocation1 + $0x3] ss:$4 sm:$0xff] %v1776_v15  ;;  %v1721_v5 = vadd.f32 %v3218_v9, %v1699_v46  ;;  %v1547_v0 = vadd.f32 %v1546_v25, %v1493_v54 }
 0x183   : > { %v1494_v12 = vpop.f32.mrf.mxu1 }
 0x184   : > { %v1605_v56 = vpop.f32.mrf.mxu3  ;;  %v1739_v6 = vmax.f32 %v1721_v5, 0.0  ;;  %v1601_v29 = vadd.f32 %v1600_v30, %v1547_v0  ;;  %v1495_v50 = vadd.f32 %v1494_v12, %v3114_v26 }
 0x186   : > { %v1777_v3 = vrot.slane %v1739_v6, 2  ;;  %v1778_v10 = vrot.slane %v1739_v6, 4  ;;  %1830 = vst [vmem:[#allocation1 + $0x20] ss:$4 sm:$0xff] %v1739_v6  ;;  %v1655_v35 = vadd.f32 %v1654_v60, %v1601_v29  ;;  %v1661_v41 = vpop.f32.mrf.mxu0  ;;  %v1779_v24 = vrot.slane %v1739_v6, 6 }
 0x188   : > { %1832 = vst [vmem:[#allocation1 + $0x21] ss:$4 sm:$0xff] %v1777_v3  ;;  %v1700_v13 = vmul.f32 %v3213_v16, %v1655_v35 }
 0x189   : > { %v1837_v40 = vld.sshfl [vmem:[#allocation1] sm:$0xff pattern:$0x73625140]  ;;  %1834 = vst [vmem:[#allocation1 + $0x22] ss:$4 sm:$0xff] %v1778_v10  ;;  %v1548_v7 = vpop.f32.mrf.mxu2 }
 0x18a   : > { %1925 = vst [vmem:[%s3230_s11] sm:$0xff] %v1837_v40  ;;  %v1722_v2 = vadd.f32 %v3218_v9, %v1700_v13  ;;  %v1549_v34 = vadd.f32 %v1548_v7, %v1495_v50 }
 0x18b   : > { %v1497_v27 = vpop.f32.mrf.mxu1  ;;  %1836 = vst [vmem:[#allocation1 + $0x23] ss:$4 sm:$0xff] %v1779_v24 }
 0x18c   : > { %v1607_v61 = vpop.f32.mrf.mxu3  ;;  %v1740_v44 = vmax.f32 %v1722_v2, 0.0  ;;  %v1603_v39 = vadd.f32 %v1602_v45, %v1549_v34  ;;  %v1498_v33 = vadd.f32 %v1497_v27, %v3119_v32 }
 0x18e   : > { %v1780_v60 = vrot.slane %v1740_v44, 2  ;;  %v1781_v37 = vrot.slane %v1740_v44, 4  ;;  %v1782_v48 = vrot.slane %v1740_v44, 6  ;;  %v1657_v57 = vadd.f32 %v1656_v58, %v1603_v39  ;;  %v1664_v30 = vpop.f32.mrf.mxu0 }
 0x190   : > { %1839 = vst [vmem:[#allocation1] ss:$4 sm:$0xff] %v1780_v60  ;;  %v1701_v26 = vmul.f32 %v3213_v16, %v1657_v57 }
 0x191   : > { %1840 = vst [vmem:[#allocation1 + $0x1] ss:$4 sm:$0xff] %v1781_v37  ;;  %v1551_v36 = vpop.f32.mrf.mxu2 }
 0x192   : > { %1841 = vst [vmem:[#allocation1 + $0x2] ss:$4 sm:$0xff] %v1782_v48  ;;  %v1723_v42 = vadd.f32 %v3218_v9, %v1701_v26  ;;  %v1552_v38 = vadd.f32 %v1551_v36, %v1498_v33  ;;  %v1838_v55 = vld.sshfl [vmem:[#allocation1 + $0x20] sm:$0xff pattern:$0x73625140] }
 0x193   : > { %1926 = vst [vmem:[%s3230_s11 + $0x8] sm:$0xff] %v1838_v55  ;;  %v1499_v59 = vpop.f32.mrf.mxu1 }
 0x194   : > { %v1610_v8 = vpop.f32.mrf.mxu3  ;;  %v1741_v49 = vmax.f32 %v1723_v42, 0.0  ;;  %v1606_v45 = vadd.f32 %v1605_v56, %v1552_v38  ;;  %v1500_v17 = vadd.f32 %v1499_v59, %v3127_v11 }
 0x196   : > { %v1783_v21 = vrot.slane %v1741_v49, 2  ;;  %v1784_v58 = vrot.slane %v1741_v49, 4  ;;  %v1785_v22 = vrot.slane %v1741_v49, 6  ;;  %1842 = vst [vmem:[#allocation1 + $0x3] ss:$4 sm:$0xff] %v1741_v49  ;;  %v1660_v53 = vadd.f32 %v1659_v52, %v1606_v45  ;;  %v1666_v15 = vpop.f32.mrf.mxu0 }
 0x198   : > { %v1702_v32 = vmul.f32 %v3213_v16, %v1660_v53  ;;  %1843 = vst [vmem:[#allocation1 + $0x20] ss:$4 sm:$0xff] %v1783_v21 }
 0x199   : > { %1844 = vst [vmem:[#allocation1 + $0x21] ss:$4 sm:$0xff] %v1784_v58  ;;  %v1553_v28 = vpop.f32.mrf.mxu2 }
 0x19a   : > { %v1724_v23 = vadd.f32 %v3218_v9, %v1702_v32  ;;  %1845 = vst [vmem:[#allocation1 + $0x22] ss:$4 sm:$0xff] %v1785_v22  ;;  %v1554_v46 = vadd.f32 %v1553_v28, %v1500_v17 }
 0x19b   : > { %v1502_v25 = vpop.f32.mrf.mxu1 }
 0x19c   : > { %v1612_v54 = vpop.f32.mrf.mxu3  ;;  %v1742_v5 = vmax.f32 %v1724_v23, 0.0  ;;  %v1608_v0 = vadd.f32 %v1607_v61, %v1554_v46  ;;  %v1503_v29 = vadd.f32 %v1502_v25, %v3132_v14 }
 0x19d   : > { %v1847_v56 = vld.sshfl [vmem:[#allocation1] sm:$0xff pattern:$0x73625140] }
 0x19e   : > { %1927 = vst [vmem:[%s3230_s11 + $0x10] sm:$0xff] %v1847_v56  ;;  %v1786_v12 = vrot.slane %v1742_v5, 4  ;;  %v1787_v52 = vrot.slane %v1742_v5, 6  ;;  %v1662_v6 = vadd.f32 %v1661_v41, %v1608_v0  ;;  %v1669_v50 = vpop.f32.mrf.mxu0 }
 0x19f   : > { %1846 = vst [vmem:[#allocation1 + $0x23] ss:$4 sm:$0xff] %v1742_v5 }
 0x1a0   : > { %1849 = vst [vmem:[#allocation1] ss:$4 sm:$0xff] %v1786_v12  ;;  %v1703_v11 = vmul.f32 %v3213_v16, %v1662_v6 }
 0x1a1   : > { %1850 = vst [vmem:[#allocation1 + $0x1] ss:$4 sm:$0xff] %v1787_v52  ;;  %v1556_v3 = vpop.f32.mrf.mxu2 }
 0x1a2   : > { %v1725_v10 = vadd.f32 %v3218_v9, %v1703_v11  ;;  %v1557_v35 = vadd.f32 %v1556_v3, %v1503_v29 }
 0x1a3   : > { %v1504_v13 = vpop.f32.mrf.mxu1 }
 0x1a4   : > { %v1615_v24 = vpop.f32.mrf.mxu3  ;;  %v1743_v40 = vmax.f32 %v1725_v10, 0.0  ;;  %v1611_v7 = vadd.f32 %v1610_v8, %v1557_v35  ;;  %v1505_v44 = vadd.f32 %v1504_v13, %v3140_v31 }
 0x1a6   : > { %v1788_v2 = vrot.slane %v1743_v40, 2  ;;  %v1789_v34 = vrot.slane %v1743_v40, 4  ;;  %1851 = vst [vmem:[#allocation1 + $0x2] ss:$4 sm:$0xff] %v1743_v40  ;;  %v1665_v41 = vadd.f32 %v1664_v30, %v1611_v7  ;;  %v1790_v61 = vrot.slane %v1743_v40, 6  ;;  %v1671_v30 = vpop.f32.mrf.mxu0 }
 0x1a7   : > { %v1848_v27 = vld.sshfl [vmem:[#allocation1 + $0x20] sm:$0xff pattern:$0x73625140] }
 0x1a8   : > { %1852 = vst [vmem:[#allocation1 + $0x3] ss:$4 sm:$0xff] %v1788_v2  ;;  %v1704_v14 = vmul.f32 %v3213_v16, %v1665_v41 }
 0x1a9   : > { %1928 = vst [vmem:[%s3230_s11 + $0x18] sm:$0xff] %v1848_v27  ;;  %v1558_v39 = vpop.f32.mrf.mxu2 }
 0x1aa   : > { %v1726_v60 = vadd.f32 %v3218_v9, %v1704_v14  ;;  %1853 = vst [vmem:[#allocation1 + $0x20] ss:$4 sm:$0xff] %v1789_v34  ;;  %v1559_v37 = vadd.f32 %v1558_v39, %v1505_v44 }
 0x1ab   : > { %1854 = vst [vmem:[#allocation1 + $0x21] ss:$4 sm:$0xff] %v1790_v61  ;;  %v1507_v48 = vpop.f32.mrf.mxu1 }
 0x1ac   : > { %v1617_v57 = vpop.f32.mrf.mxu3  ;;  %v1744_v26 = vmax.f32 %v1726_v60, 0.0  ;;  %v1613_v33 = vadd.f32 %v1612_v54, %v1559_v37  ;;  %v1508_v8 = vadd.f32 %v1507_v48, %v3145_v51 }
 0x1ae   : > { %v1791_v36 = vrot.slane %v1744_v26, 2  ;;  %v1792_v42 = vrot.slane %v1744_v26, 6  ;;  %1855 = vst [vmem:[#allocation1 + $0x22] ss:$4 sm:$0xff] %v1744_v26  ;;  %v1667_v38 = vadd.f32 %v1666_v15, %v1613_v33  ;;  %v1674_v23 = vpop.f32.mrf.mxu0 }
 0x1af   : > { %v1857_v55 = vld.sshfl [vmem:[#allocation1] sm:$0xff pattern:$0x73625140] }
 0x1b0   : > { %1929 = vst [vmem:[%s3230_s11 + $0x20] sm:$0xff] %v1857_v55  ;;  %v1705_v31 = vmul.f32 %v3213_v16, %v1667_v38 }
 0x1b1   : > { %1856 = vst [vmem:[#allocation1 + $0x23] ss:$4 sm:$0xff] %v1791_v36  ;;  %v1561_v59 = vpop.f32.mrf.mxu2 }
 0x1b2   : > { %1859 = vst [vmem:[#allocation1] ss:$4 sm:$0xff] %v1792_v42  ;;  %v1727_v49 = vadd.f32 %v3218_v9, %v1705_v31  ;;  %v1562_v45 = vadd.f32 %v1561_v59, %v1508_v8 }
 0x1b3   : > { %v1509_v21 = vpop.f32.mrf.mxu1 }
 0x1b4   : > { %v1745_v58 = vmax.f32 %v1727_v49, 0.0  ;;  %v1616_v22 = vadd.f32 %v1615_v24, %v1562_v45  ;;  %v1620_v53 = vpop.f32.mrf.mxu3  ;;  %v1510_v54 = vadd.f32 %v1509_v21, %v3153_v62 }
 0x1b6   : > { %v1793_v32 = vrot.slane %v1745_v58, 2  ;;  %v1794_v17 = vrot.slane %v1745_v58, 4  ;;  %1860 = vst [vmem:[#allocation1 + $0x1] ss:$4 sm:$0xff] %v1745_v58  ;;  %v1670_v28 = vadd.f32 %v1669_v50, %v1616_v22  ;;  %v1795_v15 = vrot.slane %v1745_v58, 6  ;;  %v1676_v13 = vpop.f32.mrf.mxu0 }
 0x1b8   : > { %1861 = vst [vmem:[#allocation1 + $0x2] ss:$4 sm:$0xff] %v1793_v32  ;;  %v1706_v51 = vmul.f32 %v3213_v16, %v1670_v28  ;;  %v1858_v46 = vld.sshfl [vmem:[#allocation1 + $0x20] sm:$0xff pattern:$0x73625140] }
 0x1b9   : > { %1862 = vst [vmem:[#allocation1 + $0x3] ss:$4 sm:$0xff] %v1794_v17  ;;  %v1563_v25 = vpop.f32.mrf.mxu2 }
 0x1ba   : > { %v1728_v5 = vadd.f32 %v3218_v9, %v1706_v51  ;;  %1930 = vst [vmem:[%s3230_s11 + $0x28] sm:$0xff] %v1858_v46  ;;  %v1564_v0 = vadd.f32 %v1563_v25, %v1510_v54 }
 0x1bb   : > { %1863 = vst [vmem:[#allocation1 + $0x20] ss:$4 sm:$0xff] %v1795_v15  ;;  %v1512_v56 = vpop.f32.mrf.mxu1 }
 0x1bc   : > { %v1746_v12 = vmax.f32 %v1728_v5, 0.0  ;;  %v1618_v52 = vadd.f32 %v1617_v57, %v1564_v0  ;;  %v1622_v3 = vpop.f32.mrf.mxu3  ;;  %v1513_v35 = vadd.f32 %v1512_v56, %v3160_v19 }
 0x1be   : > { %v1796_v6 = vrot.slane %v1746_v12, 2  ;;  %v1797_v11 = vrot.slane %v1746_v12, 4  ;;  %1864 = vst [vmem:[#allocation1 + $0x21] ss:$4 sm:$0xff] %v1746_v12  ;;  %v1672_v29 = vadd.f32 %v1671_v30, %v1618_v52  ;;  %v1679_v33 = vpop.f32.mrf.mxu0 }
 0x1c0   : > { %v1867_v10 = vld.sshfl [vmem:[#allocation1] sm:$0xff pattern:$0x73625140]  ;;  %1865 = vst [vmem:[#allocation1 + $0x22] ss:$4 sm:$0xff] %v1796_v6  ;;  %v1707_v62 = vmul.f32 %v3213_v16, %v1672_v29 }
 0x1c1   : > { %1931 = vst [vmem:[%s3230_s11 + $0x30] sm:$0xff] %v1867_v10  ;;  %v1566_v24 = vpop.f32.mrf.mxu2 }
 0x1c2   : > { %1866 = vst [vmem:[#allocation1 + $0x23] ss:$4 sm:$0xff] %v1797_v11  ;;  %v1729_v50 = vadd.f32 %v3218_v9, %v1707_v62  ;;  %v1567_v40 = vadd.f32 %v1566_v24, %v1513_v35 }
 0x1c3   : > { %v1514_v7 = vpop.f32.mrf.mxu1 }
 0x1c4   : > { %v1747_v2 = vmax.f32 %v1729_v50, 0.0  ;;  %v1621_v34 = vadd.f32 %v1620_v53, %v1567_v40  ;;  %v1515_v19 = vadd.f32 %v1514_v7, %v3168_v20  ;;  %v1625_v37 = vpop.f32.mrf.mxu3 }
 0x1c6   : > { %v1798_v41 = vrot.slane %v1747_v2, 2  ;;  %v1799_v61 = vrot.slane %v1747_v2, 4  ;;  %v1800_v27 = vrot.slane %v1747_v2, 6  ;;  %1869 = vst [vmem:[#allocation1] ss:$4 sm:$0xff] %v1747_v2  ;;  %v1675_v14 = vadd.f32 %v1674_v23, %v1621_v34  ;;  %v1681_v17 = vpop.f32.mrf.mxu0 }
 0x1c8   : > { %1870 = vst [vmem:[#allocation1 + $0x1] ss:$4 sm:$0xff] %v1798_v41  ;;  %v1708_v44 = vmul.f32 %v3213_v16, %v1675_v14 }
 0x1c9   : > { %1871 = vst [vmem:[#allocation1 + $0x2] ss:$4 sm:$0xff] %v1799_v61  ;;  %v1868_v39 = vld.sshfl [vmem:[#allocation1 + $0x20] sm:$0xff pattern:$0x73625140]  ;;  %v1568_v60 = vpop.f32.mrf.mxu2 }
 0x1ca   : > { %1872 = vst [vmem:[#allocation1 + $0x3] ss:$4 sm:$0xff] %v1800_v27  ;;  %v1730_v48 = vadd.f32 %v3218_v9, %v1708_v44  ;;  %v1569_v57 = vadd.f32 %v1568_v60, %v1515_v19 }
 0x1cb   : > { %1932 = vst [vmem:[%s3230_s11 + $0x38] sm:$0xff] %v1868_v39  ;;  %v1517_v26 = vpop.f32.mrf.mxu1 }
 0x1cc   : > { %v1748_v30 = vmax.f32 %v1730_v48, 0.0  ;;  %v1623_v36 = vadd.f32 %v1622_v3, %v1569_v57  ;;  %v1518_v8 = vadd.f32 %v1517_v26, %v3174_v1  ;;  %v1627_v22 = vpop.f32.mrf.mxu3 }
 0x1ce   : > { %v1801_v42 = vrot.slane %v1748_v30, 2  ;;  %v1802_v38 = vrot.slane %v1748_v30, 4  ;;  %1873 = vst [vmem:[#allocation1 + $0x20] ss:$4 sm:$0xff] %v1748_v30  ;;  %v1677_v55 = vadd.f32 %v1676_v13, %v1623_v36  ;;  %v1803_v31 = vrot.slane %v1748_v30, 6  ;;  %v1684_v62 = vpop.f32.mrf.mxu0 }
 0x1d0   : > { %1874 = vst [vmem:[#allocation1 + $0x21] ss:$4 sm:$0xff] %v1801_v42  ;;  %v1709_v20 = vmul.f32 %v3213_v16, %v1677_v55 }
 0x1d1   : > { %v1877_v59 = vld.sshfl [vmem:[#allocation1] sm:$0xff pattern:$0x73625140]  ;;  %1875 = vst [vmem:[#allocation1 + $0x22] ss:$4 sm:$0xff] %v1802_v38  ;;  %v1571_v49 = vpop.f32.mrf.mxu2 }
 0x1d2   : > { %1933 = vst [vmem:[%s3230_s11 + $0x40] sm:$0xff] %v1877_v59  ;;  %v1731_v45 = vadd.f32 %v3218_v9, %v1709_v20  ;;  %v1572_v21 = vadd.f32 %v1571_v49, %v1518_v8 }
 0x1d3   : > { %1876 = vst [vmem:[#allocation1 + $0x23] ss:$4 sm:$0xff] %v1803_v31  ;;  %v1519_v58 = vpop.f32.mrf.mxu1 }
 0x1d4   : > { %v1749_v53 = vmax.f32 %v1731_v45, 0.0  ;;  %v1626_v32 = vadd.f32 %v1625_v37, %v1572_v21  ;;  %v1520_v46 = vadd.f32 %v1519_v58, %v3185_v43  ;;  %v1630_v6 = vpop.f32.mrf.mxu3 }
 0x1d6   : > { %v1804_v28 = vrot.slane %v1749_v53, 2  ;;  %v1805_v15 = vrot.slane %v1749_v53, 4  ;;  %v1806_v23 = vrot.slane %v1749_v53, 6  ;;  %v1680_v51 = vadd.f32 %v1679_v33, %v1626_v32  ;;  %v1686_v19 = vpop.f32.mrf.mxu0 }
 0x1d8   : > { %1879 = vst [vmem:[#allocation1] ss:$4 sm:$0xff] %v1804_v28  ;;  %v1710_v1 = vmul.f32 %v3213_v16, %v1680_v51 }
 0x1d9   : > { %1880 = vst [vmem:[#allocation1 + $0x1] ss:$4 sm:$0xff] %v1805_v15  ;;  %v1573_v54 = vpop.f32.mrf.mxu2 }
 0x1da   : > { %v1878_v25 = vld.sshfl [vmem:[#allocation1 + $0x20] sm:$0xff pattern:$0x73625140]  ;;  %1881 = vst [vmem:[#allocation1 + $0x2] ss:$4 sm:$0xff] %v1806_v23  ;;  %v1732_v5 = vadd.f32 %v3218_v9, %v1710_v1  ;;  %v1574_v0 = vadd.f32 %v1573_v54, %v1520_v46 }
 0x1db   : > { %1934 = vst [vmem:[%s3230_s11 + $0x48] sm:$0xff] %v1878_v25  ;;  %v1522_v56 = vpop.f32.mrf.mxu1 }
 0x1dc   : > { %v1750_v12 = vmax.f32 %v1732_v5, 0.0  ;;  %v1628_v52 = vadd.f32 %v1627_v22, %v1574_v0  ;;  %v1523_v35 = vadd.f32 %v1522_v56, %v3188_v63  ;;  %v1632_v14 = vpop.f32.mrf.mxu3 }
 0x1de   : > { %v1807_v11 = vrot.slane %v1750_v12, 2  ;;  %v1808_v29 = vrot.slane %v1750_v12, 4  ;;  %v1809_v3 = vrot.slane %v1750_v12, 6  ;;  %1882 = vst [vmem:[#allocation1 + $0x3] ss:$4 sm:$0xff] %v1750_v12  ;;  %v1682_v10 = vadd.f32 %v1681_v17, %v1628_v52  ;;  %v1689_v49 = vpop.f32.mrf.mxu0 }
 0x1e0   : > { %1883 = vst [vmem:[#allocation1 + $0x20] ss:$4 sm:$0xff] %v1807_v11  ;;  %v1711_v43 = vmul.f32 %v3213_v16, %v1682_v10 }
 0x1e1   : > { %1884 = vst [vmem:[#allocation1 + $0x21] ss:$4 sm:$0xff] %v1808_v29  ;;  %v1576_v24 = vpop.f32.mrf.mxu2 }
 0x1e2   : > { %1885 = vst [vmem:[#allocation1 + $0x22] ss:$4 sm:$0xff] %v1809_v3  ;;  %v1733_v13 = vadd.f32 %v3218_v9, %v1711_v43  ;;  %v1577_v50 = vadd.f32 %v1576_v24, %v1523_v35 }
 0x1e3   : > { %v1524_v40 = vpop.f32.mrf.mxu1 }
 0x1e4   : > { %v1751_v7 = vmax.f32 %v1733_v13, 0.0  ;;  %v1631_v2 = vadd.f32 %v1630_v6, %v1577_v50  ;;  %v1525_v44 = vadd.f32 %v1524_v40, %v3196_v18  ;;  %v1635_v31 = vpop.f32.mrf.mxu3 }
 0x1e5   : > { %v1887_v34 = vld.sshfl [vmem:[#allocation1] sm:$0xff pattern:$0x73625140] }
 0x1e6   : > { %1935 = vst [vmem:[%s3230_s11 + $0x50] sm:$0xff] %v1887_v34  ;;  %v1810_v41 = vrot.slane %v1751_v7, 4  ;;  %v1811_v61 = vrot.slane %v1751_v7, 6  ;;  %v1685_v27 = vadd.f32 %v1684_v62, %v1631_v2  ;;  %v1691_v25 = vpop.f32.mrf.mxu0 }
 0x1e7   : > { %1886 = vst [vmem:[#allocation1 + $0x23] ss:$4 sm:$0xff] %v1751_v7 }
 0x1e8   : > { %1889 = vst [vmem:[#allocation1] ss:$4 sm:$0xff] %v1810_v41  ;;  %v1712_v63 = vmul.f32 %v3213_v16, %v1685_v27 }
 0x1e9   : > { %1890 = vst [vmem:[#allocation1 + $0x1] ss:$4 sm:$0xff] %v1811_v61  ;;  %v1578_v39 = vpop.f32.mrf.mxu2 }
 0x1ea   : > { %v1734_v60 = vadd.f32 %v3218_v9, %v1712_v63  ;;  %v1579_v37 = vadd.f32 %v1578_v39, %v1525_v44 }
 0x1eb   : > { %v1527_v48 = vpop.f32.mrf.mxu1 }
 0x1ec   : > { %v1752_v57 = vmax.f32 %v1734_v60, 0.0  ;;  %v1633_v26 = vadd.f32 %v1632_v14, %v1579_v37  ;;  %v1528_v18 = vadd.f32 %v1527_v48, %v3199_v47  ;;  %v1637_v1 = vpop.f32.mrf.mxu3 }
 0x1ee   : > { %v1888_v33 = vld.sshfl [vmem:[#allocation1 + $0x20] sm:$0xff pattern:$0x73625140]  ;;  %v1812_v30 = vrot.slane %v1752_v57, 2  ;;  %v1813_v36 = vrot.slane %v1752_v57, 4  ;;  %v1687_v42 = vadd.f32 %v1686_v19, %v1633_v26  ;;  %v1814_v38 = vrot.slane %v1752_v57, 6 }
 0x1ef   : > { %1936 = vst [vmem:[%s3230_s11 + $0x58] sm:$0xff] %v1888_v33 }
 0x1f0   : > { %1891 = vst [vmem:[#allocation1 + $0x2] ss:$4 sm:$0xff] %v1752_v57  ;;  %v1713_v55 = vmul.f32 %v3213_v16, %v1687_v42 }
 0x1f1   : > { %1892 = vst [vmem:[#allocation1 + $0x3] ss:$4 sm:$0xff] %v1812_v30  ;;  %v1581_v20 = vpop.f32.mrf.mxu2 }
 0x1f2   : > { %1893 = vst [vmem:[#allocation1 + $0x20] ss:$4 sm:$0xff] %v1813_v36  ;;  %v1735_v8 = vadd.f32 %v3218_v9, %v1713_v55  ;;  %v1582_v59 = vadd.f32 %v1581_v20, %v1528_v18 }
 0x1f3   : > { %1894 = vst [vmem:[#allocation1 + $0x21] ss:$4 sm:$0xff] %v1814_v38  ;;  %v1529_v58 = vpop.f32.mrf.mxu1 }
 0x1f4   : > { %v1753_v45 = vmax.f32 %v1735_v8, 0.0  ;;  %v1636_v21 = vadd.f32 %v1635_v31, %v1582_v59  ;;  %v1530_v28 = vadd.f32 %v1529_v58, %v3206_v4 }
 0x1f6   : > { %v1815_v22 = vrot.slane %v1753_v45, 2  ;;  %v1816_v53 = vrot.slane %v1753_v45, 6  ;;  %1895 = vst [vmem:[#allocation1 + $0x22] ss:$4 sm:$0xff] %v1753_v45  ;;  %v1690_v32 = vadd.f32 %v1689_v49, %v1636_v21 }
 0x1f8   : > { %v1897_v17 = vld.sshfl [vmem:[#allocation1] sm:$0xff pattern:$0x73625140]  ;;  %1896 = vst [vmem:[#allocation1 + $0x23] ss:$4 sm:$0xff] %v1815_v22  ;;  %v1714_v47 = vmul.f32 %v3213_v16, %v1690_v32 }
 0x1f9   : > { %1937 = vst [vmem:[%s3230_s11 + $0x60] sm:$0xff] %v1897_v17  ;;  %v1583_v15 = vpop.f32.mrf.mxu2 }
 0x1fa   : > { %1899 = vst [vmem:[#allocation1] ss:$4 sm:$0xff] %v1816_v53  ;;  %v1736_v23 = vadd.f32 %v3218_v9, %v1714_v47  ;;  %v1584_v51 = vadd.f32 %v1583_v15, %v1530_v28 }
 0x1fc   : > { %v1754_v46 = vmax.f32 %v1736_v23, 0.0  ;;  %v1638_v54 = vadd.f32 %v1637_v1, %v1584_v51 }
 0x1fe   : > { %v1817_v5 = vrot.slane %v1754_v46, 2  ;;  %v1818_v0 = vrot.slane %v1754_v46, 4  ;;  %1900 = vst [vmem:[#allocation1 + $0x1] ss:$4 sm:$0xff] %v1754_v46  ;;  %v1692_v56 = vadd.f32 %v1691_v25, %v1638_v54  ;;  %v1819_v52 = vrot.slane %v1754_v46, 6 }
 0x1ff   : > { %v1898_v12 = vld.sshfl [vmem:[#allocation1 + $0x20] sm:$0xff pattern:$0x73625140] }
 0x200   : > { %1938 = vst [vmem:[%s3230_s11 + $0x68] sm:$0xff] %v1898_v12  ;;  %v1715_v4 = vmul.f32 %v3213_v16, %v1692_v56 }
 0x201   : > { %1901 = vst [vmem:[#allocation1 + $0x2] ss:$4 sm:$0xff] %v1817_v5 }
 0x202   : > { %1902 = vst [vmem:[#allocation1 + $0x3] ss:$4 sm:$0xff] %v1818_v0  ;;  %v1737_v6 = vadd.f32 %v3218_v9, %v1715_v4 }
 0x203   : > { %1903 = vst [vmem:[#allocation1 + $0x20] ss:$4 sm:$0xff] %v1819_v52 }
 0x204   : > { %v1755_v11 = vmax.f32 %v1737_v6, 0.0 }
 0x206   : > { %v1820_v29 = vrot.slane %v1755_v11, 2  ;;  %v1821_v3 = vrot.slane %v1755_v11, 4  ;;  %1904 = vst [vmem:[#allocation1 + $0x21] ss:$4 sm:$0xff] %v1755_v11 }
 0x208   : > { %1905 = vst [vmem:[#allocation1 + $0x22] ss:$4 sm:$0xff] %v1820_v29 }
 0x209   : > { %v1907_v10 = vld.sshfl [vmem:[#allocation1] sm:$0xff pattern:$0x73625140]  ;;  %1906 = vst [vmem:[#allocation1 + $0x23] ss:$4 sm:$0xff] %v1821_v3 }
 0x20a   : > { %1939 = vst [vmem:[%s3230_s11 + $0x70] sm:$0xff] %v1907_v10 }
 0x210   : > { %v1908_v62 = vld.sshfl [vmem:[#allocation1 + $0x20] sm:$0xff pattern:$0x73625140] }
 0x211   : > { %1940 = vst [vmem:[%s3230_s11 + $0x78] sm:$0xff] %v1908_v62 }
 0x212 PF: > { %s14_s19 = sadd.s32 1, %s2573_s19   ;;  %s3315_s15 = smov %s2565_s17 }
 0x213   : > { %p11_p8 = scmp.ge.s32.totalorder %s14_s19, 6   ;;  %s3316_s16 = smov %s2569_s18 }
 0x214   : > { %s3317_s17 = smov %s3320_s20  ;;  %s3318_s18 = smov %s3324_s21 }
 0x215   :  { %13 = sbr.rel (!%p11_p8) target bundleno = 3 (0x3), region = 73 }

</bundles_post_ra>
